<compile_context>
chip_gen: v6e
topology: v6e:2x2x1
jax: 0.10.0
libtpu: 0.0.40
codegen_flags: <defaults>
</compile_context>

<pallas_src>
import functools

import jax
import jax.numpy as jnp
from jax.experimental import pallas as pl
from jax.experimental.pallas import tpu as pltpu


# --------------------------------------------------------------------------- helpers

_VMEM_LIMIT = 32 * 1024 * 1024   # explicit scoped-VMEM budget (safe on v5e/v6e/v7x)


def _cparams(semantics):
    return pltpu.CompilerParams(dimension_semantics=semantics,
                                vmem_limit_bytes=_VMEM_LIMIT)


def _row_tile(n, target=1024):
    """(tile, padded_rows): one block if n<=target, else 8-aligned tiles + pad."""
    if n <= target:
        return n, n
    t = target - (target % 8)
    n_pad = ((n + t - 1) // t) * t
    return t, n_pad


def _pick_tl(h_lo, w_lo, max_tl=8, target_rows=512):
    """Low-res image rows per decoder-stage block (kept small: loop is unrolled)."""
    if h_lo * w_lo <= target_rows and h_lo <= max_tl:
        return h_lo
    for tl in range(min(h_lo, max_tl), 0, -1):
        if h_lo % tl == 0 and (tl * w_lo) % 8 == 0 and tl * w_lo <= target_rows:
            return tl
    # TODO(synk): irregular spatial sizes fall back to a full-height block.
    return h_lo


def space_to_depth(x, p):
    """Patch extraction of a p x p / stride-p conv (pure layout, XLA side)."""
    B, H, W, C = x.shape
    x = x.reshape(B, H // p, p, W // p, p, C)
    x = x.transpose(0, 1, 3, 2, 4, 5)
    return x.reshape(B, H // p, W // p, p * p * C)


# --------------------------------------------------------------------------- encoder

def _enc_stage_kernel(x_ref, w1_ref, b1_ref, w2_ref, b2_ref, o_ref, *, act1):
    """Fused encoder stage: y = gelu(act1(x @ W1 + b1) @ W2 + b2)."""
    h = jnp.dot(x_ref[0], w1_ref[...],
                preferred_element_type=jnp.float32) + b1_ref[...]
    if act1 == "gelu":
        h = jax.nn.gelu(h)
    y = jnp.dot(h.astype(w2_ref.dtype), w2_ref[...],
                preferred_element_type=jnp.float32) + b2_ref[...]
    o_ref[0] = jax.nn.gelu(y).astype(o_ref.dtype)


def enc_stage(x_nhwc, w1, b1, w2, b2, act1):
    B, H, W, K = x_nhwc.shape
    HW = H * W
    N1, N2 = w1.shape[1], w2.shape[1]
    th, hw_pad = _row_tile(HW)
    x = x_nhwc.reshape(B, HW, K)
    if hw_pad != HW:
        x = jnp.pad(x, ((0, 0), (0, hw_pad - HW), (0, 0)))
    kern = functools.partial(_enc_stage_kernel, act1=act1)
    y = pl.pallas_call(
        kern,
        out_shape=jax.ShapeDtypeStruct((B, hw_pad, N2), jnp.bfloat16),
        grid=(B, hw_pad // th),
        in_specs=[
            pl.BlockSpec((1, th, K), lambda b, i: (b, i, 0)),
            pl.BlockSpec((K, N1), lambda b, i: (0, 0)),
            pl.BlockSpec((1, N1), lambda b, i: (0, 0)),
            pl.BlockSpec((N1, N2), lambda b, i: (0, 0)),
            pl.BlockSpec((1, N2), lambda b, i: (0, 0)),
        ],
        out_specs=pl.BlockSpec((1, th, N2), lambda b, i: (b, i, 0)),
        compiler_params=_cparams(("parallel", "parallel")),
    )(x, w1, b1.reshape(1, N1), w2, b2.reshape(1, N2))
    if hw_pad != HW:
        y = y[:, :HW]
    return y.reshape(B, H, W, N2)


# --------------------------------------------------------------------------- decoder

def _dec_stage_kernel(d_ref, g_ref, skip_ref, wdp_ref, bdp_ref, wsb_ref,
                      w1p_ref, b1_ref, w2_ref, b2_ref,
                      t_ref, gout_ref, acc_ref, *, tl, w_lo, inv_hw):
    """One whole decoder stage per grid step (pair layout, see module docstring).

    t[hh, ww] = relu((d[hh//2, ww//2] * gate) @ W_d + b + skip[hh, ww] @ W_s)
    gate_out  = sigmoid(relu(mean_hw(t) @ W1 + b1) @ W2 + b2)      (SE, fused)
    """
    i = pl.program_id(1)

    @pl.when(i == 0)
    def _():
        acc_ref[...] = jnp.zeros_like(acc_ref)

    # SE gate from the previous stage folded into the d-path weights (K x 2C
    # scale instead of rescaling the activation tile; no f32 tile upcast).
    wd = (wdp_ref[...].astype(jnp.float32) * g_ref[0]).astype(jnp.bfloat16)
    # gated low-res 1x1 conv (bias included); result already in "w-pair" layout
    # (the width duplication of the 2x upsample lives in the duplicated weights).
    y = jnp.dot(d_ref[0], wd, preferred_element_type=jnp.float32) + bdp_ref[...]
    # skip-path 1x1 conv at high res on the pair layout (block-diagonal weights).
    s = jnp.dot(skip_ref[0], wsb_ref[...], preferred_element_type=jnp.float32)

    # Height duplication of the 2x nearest upsample: every low-res row group
    # feeds two consecutive high-res row groups.  Static unrolled loop; all
    # slices are static, everything stays in VMEM.
    part = acc_ref[...]
    for j in range(tl):
        yj = y[j * w_lo:(j + 1) * w_lo]
        for r in (0, 1):
            o = (2 * j + r) * w_lo
            t_blk = jnp.maximum(s[o:o + w_lo] + yj, 0.0)
            t_ref[0, o:o + w_lo, :] = t_blk.astype(t_ref.dtype)
            part = part + jnp.sum(t_blk, axis=0, keepdims=True)
    acc_ref[...] = part

    # SE finalize: FC-ReLU-FC-sigmoid on the fused spatial mean.  W1_pair sums
    # both w-halves of the pair layout, so no lane slicing is needed.
    @pl.when(i == pl.num_programs(1) - 1)
    def _():
        m = acc_ref[...] * inv_hw                                   # (1, 2C)
        h1 = jnp.maximum(
            jnp.dot(m.astype(w1p_ref.dtype), w1p_ref[...],
                    preferred_element_type=jnp.float32) + b1_ref[...], 0.0)
        z = jnp.dot(h1.astype(w2_ref.dtype), w2_ref[...],
                    preferred_element_type=jnp.float32) + b2_ref[...]
        gout_ref[0] = jax.nn.sigmoid(z)


def dec_stage(d_nhwc, gate_col, skip_nhwc, w_d, w_s, b_f, se_params):
    B, h_lo, w_lo, Cd = d_nhwc.shape
    _, H2, W2, Cs = skip_nhwc.shape
    C = w_d.shape[1]
    (w1, b1), (w2, b2) = se_params
    R = w1.shape[1]

    # tiny weight plumbing for the pair layout (XLA side, negligible)
    wd_pair = jnp.concatenate([w_d, w_d], axis=1)                    # (Cd, 2C)
    bd_pair = jnp.concatenate([b_f, b_f], axis=0).reshape(1, 2 * C)  # (1, 2C)
    zcs = jnp.zeros((Cs, C), w_s.dtype)
    ws_blk = jnp.concatenate(
        [jnp.concatenate([w_s, zcs], axis=1),
         jnp.concatenate([zcs, w_s], axis=1)], axis=0)               # (2Cs, 2C)
    w1_pair = jnp.concatenate([w1, w1], axis=0)                      # (2C, R)

    tl = _pick_tl(h_lo, w_lo)
    d_flat = d_nhwc.reshape(B, h_lo * w_lo, Cd)
    skip_pair = skip_nhwc.reshape(B, H2 * w_lo, 2 * Cs)              # free view
    inv_hw = 1.0 / float(H2 * W2)

    kern = functools.partial(_dec_stage_kernel, tl=tl, w_lo=w_lo, inv_hw=inv_hw)
    t_pair, gate_row = pl.pallas_call(
        kern,
        out_shape=(jax.ShapeDtypeStruct((B, H2 * w_lo, 2 * C), jnp.bfloat16),
                   jax.ShapeDtypeStruct((B, 1, C), jnp.float32)),
        grid=(B, h_lo // tl),
        in_specs=[
            pl.BlockSpec((1, tl * w_lo, Cd), lambda b, i: (b, i, 0)),
            pl.BlockSpec((1, Cd, 1), lambda b, i: (b, 0, 0)),
            pl.BlockSpec((1, 2 * tl * w_lo, 2 * Cs), lambda b, i: (b, i, 0)),
            pl.BlockSpec((Cd, 2 * C), lambda b, i: (0, 0)),
            pl.BlockSpec((1, 2 * C), lambda b, i: (0, 0)),
            pl.BlockSpec((2 * Cs, 2 * C), lambda b, i: (0, 0)),
            pl.BlockSpec((2 * C, R), lambda b, i: (0, 0)),
            pl.BlockSpec((1, R), lambda b, i: (0, 0)),
            pl.BlockSpec((R, C), lambda b, i: (0, 0)),
            pl.BlockSpec((1, C), lambda b, i: (0, 0)),
        ],
        out_specs=(pl.BlockSpec((1, 2 * tl * w_lo, 2 * C), lambda b, i: (b, i, 0)),
                   pl.BlockSpec((1, 1, C), lambda b, i: (b, 0, 0))),
        scratch_shapes=[pltpu.VMEM((1, 2 * C), jnp.float32)],
        compiler_params=_cparams(("parallel", "arbitrary")),
    )(d_flat, gate_col, skip_pair, wd_pair, bd_pair, ws_blk,
      w1_pair, b1.reshape(1, R), w2, b2.reshape(1, C))

    t = t_pair.reshape(B, H2, W2, C)                                 # free view
    gate_col_next = jnp.swapaxes(gate_row, 1, 2)                     # (B, C, 1)
    return t, gate_col_next


# ------------------------------------------------------------------------------ head

def _head_kernel(x_ref, g_ref, w_ref, b_ref, o_ref):
    """logits = (x * gate) @ W + b, with the gate folded into the weight rows."""
    w = (w_ref[...].astype(jnp.float32) * g_ref[0]).astype(jnp.bfloat16)
    y = jnp.dot(x_ref[0], w, preferred_element_type=jnp.float32) + b_ref[...]
    o_ref[0] = y


def head(t_nhwc, gate_col, w_pad, b_pad):
    B, H4, W4, C = t_nhwc.shape
    HW = H4 * W4
    N = w_pad.shape[1]                      # 128 (lane-padded)
    th, hw_pad = _row_tile(HW)
    x = t_nhwc.reshape(B, HW, C)
    if hw_pad != HW:
        x = jnp.pad(x, ((0, 0), (0, hw_pad - HW), (0, 0)))
    y = pl.pallas_call(
        _head_kernel,
        out_shape=jax.ShapeDtypeStruct((B, hw_pad, N), jnp.float32),
        grid=(B, hw_pad // th),
        in_specs=[
            pl.BlockSpec((1, th, C), lambda b, i: (b, i, 0)),
            pl.BlockSpec((1, C, 1), lambda b, i: (b, 0, 0)),
            pl.BlockSpec((C, N), lambda b, i: (0, 0)),
            pl.BlockSpec((1, N), lambda b, i: (0, 0)),
        ],
        out_specs=pl.BlockSpec((1, th, N), lambda b, i: (b, i, 0)),
        compiler_params=_cparams(("parallel", "parallel")),
    )(x, gate_col, w_pad, b_pad.reshape(1, N))
    if hw_pad != HW:
        y = y[:, :HW]
    return y.reshape(B, H4, W4, N)


# ------------------------------------------------------------------------- parameters

def init_params(key, in_channels, dims, num_classes):
    del in_channels  # patch-embed always stores the 3-channel weight; 1-ch is folded
    params = {}

    def nxt():
        nonlocal key
        key, sub = jax.random.split(key)
        return sub

    def dense(k_in, k_out):
        w = (jax.random.normal(nxt(), (k_in, k_out), jnp.float32)
             / jnp.sqrt(jnp.float32(k_in)))
        return (w.astype(jnp.bfloat16), jnp.zeros((k_out,), jnp.float32))

    params["patch_embed"] = dense(4 * 4 * 3, dims[0])
    for i in range(4):
        params[f"block{i}"] = dense(dims[i], dims[i])
        if i > 0:
            params[f"down{i}"] = dense(4 * dims[i - 1], dims[i])
    for i in range(3):  # decoder fuse at scales 2, 1, 0
        params[f"fuse{i}"] = dense(dims[i + 1] + dims[i], dims[i])
        r = max(dims[i] // 4, 4)
        params[f"se{i}"] = (dense(dims[i], r), dense(r, dims[i]))

    # lane-dense head: pad N (=num_classes) up to 128 so stores are unmasked.
    wh, bh = dense(dims[0], num_classes)
    wh_pad = jnp.zeros((dims[0], 128), jnp.bfloat16).at[:, :num_classes].set(wh)
    bh_pad = jnp.zeros((128,), jnp.float32).at[:num_classes].set(bh)
    params["head"] = (wh_pad, bh_pad)
    return params


# ---------------------------------------------------------------------------- forward

def mcavm_unet_forward(params, x_nchw, dims, num_classes):
    B, Cin, H, W = x_nchw.shape
    x = jnp.transpose(x_nchw, (0, 2, 3, 1)).astype(jnp.bfloat16)   # NHWC, bf16 storage

    we, be = params["patch_embed"]
    if Cin == 1:
        # fold the grayscale -> 3-channel repeat into the patch-embed weight
        we = we.astype(jnp.float32).reshape(16, 3, -1).sum(axis=1).astype(jnp.bfloat16)

    # -------- encoder: multi-scale features at H/4, H/8, H/16, H/32
    # TODO(synk): space_to_depth re-layout is done by XLA; folding it into the
    # enc_stage input BlockSpec would save one HBM round-trip per stage.
    feats = []
    h = space_to_depth(x, 4)
    h = enc_stage(h, we, be, *params["block0"], act1="gelu")
    feats.append(h)
    for i in range(1, 4):
        h = space_to_depth(h, 2)
        h = enc_stage(h, *params[f"down{i}"], *params[f"block{i}"], act1="none")
        feats.append(h)

    # -------- decoder (deepest first): one fused kernel per stage; the SE gate
    # produced by stage i is deferred into stage i-1's (or the head's) weights.
    d = feats[3]
    gate = jnp.ones((B, dims[3], 1), jnp.float32)
    for i in (2, 1, 0):
        wf, bf = params[f"fuse{i}"]
        w_d, w_s = wf[: dims[i + 1]], wf[dims[i + 1]:]
        d, gate = dec_stage(d, gate, feats[i], w_d, w_s, bf, params[f"se{i}"])

    # -------- head at H/4 (lane-padded to 128), then NCHW transpose BEFORE the
    # 4x nearest upsample so both repeats are lane-dense on W (exact for nearest).
    wh, bh = params["head"]
    logits = head(d, gate, wh, bh)                  # (B, H/4, W/4, 128) f32
    logits = logits[..., :num_classes]
    logits = jnp.transpose(logits, (0, 3, 1, 2))    # (B, nc, H/4, W/4)
    logits = jnp.repeat(jnp.repeat(logits, 4, axis=2), 4, axis=3)
    return logits                                   # (B, nc, H, W) f32


# ------------------------------------------------------------------------------- main

if __name__ == "__main__":
    in_channels = 3
    num_classes = 9
    dims = [16, 32, 64, 128]                      # scaled-down "tiny" dims
    B, H, W = 2, 32, 32

    key = jax.random.PRNGKey(0)
    pkey, xkey = jax.random.split(key)
    params = init_params(pkey, in_channels, dims, num_classes)
    x = jax.random.normal(xkey, (B, in_channels, H, W), jnp.float32)

    fwd = jax.jit(functools.partial(mcavm_unet_forward, dims=dims,
                                    num_classes=num_classes))
    out = fwd(params, x)
    jax.block_until_ready(out)

    assert out.shape == (B, num_classes, H, W), out.shape
    assert out.dtype == jnp.float32
    assert bool(jnp.all(jnp.isfinite(out)))
    print("KERNEL_OK")
</pallas_src>

<mosaic_0001>
module attributes {stable_mosaic.version = 11 : i64} {
  func.func @_enc_stage_kernel(%arg0: i32, %arg1: i32, %arg2: memref<1x64x48xbf16, #tpu.memory_space<vmem>>, %arg3: memref<48x16xbf16, #tpu.memory_space<vmem>>, %arg4: memref<1x16xf32, #tpu.memory_space<vmem>>, %arg5: memref<16x16xbf16, #tpu.memory_space<vmem>>, %arg6: memref<1x16xf32, #tpu.memory_space<vmem>>, %arg7: memref<1x64x16xbf16, #tpu.memory_space<vmem>>) attributes {dimension_semantics = [#tpu.dimension_semantics<parallel>, #tpu.dimension_semantics<parallel>], iteration_bounds = array<i64: 2, 1>, scalar_prefetch = 0 : i64, scratch_operands = 0 : i64, tpu.core_type = #tpu.core_type<tc>, window_params = [{transform_indices = @transform_0, window_bounds = array<i64: 1, 64, 48>}, {pipeline_mode = #tpu.pipeline_mode<synchronous>, transform_indices = @transform_1, window_bounds = array<i64: 48, 16>}, {pipeline_mode = #tpu.pipeline_mode<synchronous>, transform_indices = @transform_2, window_bounds = array<i64: 1, 16>}, {pipeline_mode = #tpu.pipeline_mode<synchronous>, transform_indices = @transform_3, window_bounds = array<i64: 16, 16>}, {pipeline_mode = #tpu.pipeline_mode<synchronous>, transform_indices = @transform_4, window_bounds = array<i64: 1, 16>}, {transform_indices = @transform_5, window_bounds = array<i64: 1, 64, 16>}]} {
    %c0 = arith.constant 0 : index
    %c0_0 = arith.constant 0 : index
    %c0_1 = arith.constant 0 : index
    %0 = vector.load %arg2[%c0, %c0_0, %c0_1] : memref<1x64x48xbf16, #tpu.memory_space<vmem>>, vector<1x64x48xbf16>
    %1 = vector.shape_cast %0 : vector<1x64x48xbf16> to vector<64x48xbf16>
    %c0_2 = arith.constant 0 : index
    %c0_3 = arith.constant 0 : index
    %2 = vector.load %arg3[%c0_2, %c0_3] : memref<48x16xbf16, #tpu.memory_space<vmem>>, vector<48x16xbf16>
    %cst = arith.constant dense<0.000000e+00> : vector<64x16xf32>
    %3 = tpu.matmul %1, %2, %cst {dimension_numbers = #tpu.dot_dimension_numbers<[1], [0], [0], [1], [0, 0, 1, 1], [], []>} : vector<64x48xbf16>, vector<48x16xbf16>, vector<64x16xf32> -> vector<64x16xf32>
    %c0_4 = arith.constant 0 : index
    %c0_5 = arith.constant 0 : index
    %4 = vector.load %arg4[%c0_4, %c0_5] : memref<1x16xf32, #tpu.memory_space<vmem>>, vector<1x16xf32>
    %5 = vector.broadcast %4 : vector<1x16xf32> to vector<64x16xf32>
    %6 = arith.addf %3, %5 : vector<64x16xf32>
    %7 = arith.mulf %6, %6 : vector<64x16xf32>
    %8 = arith.mulf %6, %7 : vector<64x16xf32>
    %cst_6 = arith.constant 4.471500e-02 : f32
    %9 = vector.broadcast %cst_6 : f32 to vector<64x16xf32>
    %10 = arith.mulf %9, %8 : vector<64x16xf32>
    %11 = arith.addf %6, %10 : vector<64x16xf32>
    %cst_7 = arith.constant 0.797884583 : f32
    %12 = vector.broadcast %cst_7 : f32 to vector<64x16xf32>
    %13 = arith.mulf %12, %11 : vector<64x16xf32>
    %14 = math.tanh %13 : vector<64x16xf32>
    %cst_8 = arith.constant 1.000000e+00 : f32
    %15 = vector.broadcast %cst_8 : f32 to vector<64x16xf32>
    %16 = arith.addf %15, %14 : vector<64x16xf32>
    %cst_9 = arith.constant 5.000000e-01 : f32
    %17 = vector.broadcast %cst_9 : f32 to vector<64x16xf32>
    %18 = arith.mulf %17, %16 : vector<64x16xf32>
    %19 = arith.mulf %6, %18 : vector<64x16xf32>
    %20 = arith.truncf %19 : vector<64x16xf32> to vector<64x16xbf16>
    %c0_10 = arith.constant 0 : index
    %c0_11 = arith.constant 0 : index
    %21 = vector.load %arg5[%c0_10, %c0_11] : memref<16x16xbf16, #tpu.memory_space<vmem>>, vector<16x16xbf16>
    %cst_12 = arith.constant dense<0.000000e+00> : vector<64x16xf32>
    %22 = tpu.matmul %20, %21, %cst_12 {dimension_numbers = #tpu.dot_dimension_numbers<[1], [0], [0], [1], [0, 0, 1, 1], [], []>} : vector<64x16xbf16>, vector<16x16xbf16>, vector<64x16xf32> -> vector<64x16xf32>
    %c0_13 = arith.constant 0 : index
    %c0_14 = arith.constant 0 : index
    %23 = vector.load %arg6[%c0_13, %c0_14] : memref<1x16xf32, #tpu.memory_space<vmem>>, vector<1x16xf32>
    %24 = vector.broadcast %23 : vector<1x16xf32> to vector<64x16xf32>
    %25 = arith.addf %22, %24 : vector<64x16xf32>
    %26 = arith.mulf %25, %25 : vector<64x16xf32>
    %27 = arith.mulf %25, %26 : vector<64x16xf32>
    %cst_15 = arith.constant 4.471500e-02 : f32
    %28 = vector.broadcast %cst_15 : f32 to vector<64x16xf32>
    %29 = arith.mulf %28, %27 : vector<64x16xf32>
    %30 = arith.addf %25, %29 : vector<64x16xf32>
    %cst_16 = arith.constant 0.797884583 : f32
    %31 = vector.broadcast %cst_16 : f32 to vector<64x16xf32>
    %32 = arith.mulf %31, %30 : vector<64x16xf32>
    %33 = math.tanh %32 : vector<64x16xf32>
    %cst_17 = arith.constant 1.000000e+00 : f32
    %34 = vector.broadcast %cst_17 : f32 to vector<64x16xf32>
    %35 = arith.addf %34, %33 : vector<64x16xf32>
    %cst_18 = arith.constant 5.000000e-01 : f32
    %36 = vector.broadcast %cst_18 : f32 to vector<64x16xf32>
    %37 = arith.mulf %36, %35 : vector<64x16xf32>
    %38 = arith.mulf %25, %37 : vector<64x16xf32>
    %39 = arith.truncf %38 : vector<64x16xf32> to vector<64x16xbf16>
    %c0_19 = arith.constant 0 : index
    %c0_20 = arith.constant 0 : index
    %c0_21 = arith.constant 0 : index
    %40 = vector.load %arg7[%c0_19, %c0_20, %c0_21] : memref<1x64x16xbf16, #tpu.memory_space<vmem>>, vector<1x64x16xbf16>
    %41 = vector.shape_cast %40 : vector<1x64x16xbf16> to vector<64x16xbf16>
    %42 = vector.shape_cast %39 : vector<64x16xbf16> to vector<1x64x16xbf16>
    tpu.vector_store %arg7[%c0_19, %c0_20, %c0_21], %42 {strides = array<i32>} : memref<1x64x16xbf16, #tpu.memory_space<vmem>>, vector<1x64x16xbf16>,
    return
  }
  func.func @transform_0(%arg0: i32, %arg1: i32) -> (i32, i32, i32) {
    %c0_i32 = arith.constant 0 : i32
    %c0_i32_0 = arith.constant 0 : i32
    return %arg0, %arg1, %c0_i32 : i32, i32, i32
  }
  func.func @transform_1(%arg0: i32, %arg1: i32) -> (i32, i32) {
    %c0_i32 = arith.constant 0 : i32
    %c0_i32_0 = arith.constant 0 : i32
    %c0_i32_1 = arith.constant 0 : i32
    return %c0_i32, %c0_i32_0 : i32, i32
  }
  func.func @transform_2(%arg0: i32, %arg1: i32) -> (i32, i32) {
    %c0_i32 = arith.constant 0 : i32
    %c0_i32_0 = arith.constant 0 : i32
    %c0_i32_1 = arith.constant 0 : i32
    return %c0_i32, %c0_i32_0 : i32, i32
  }
  func.func @transform_3(%arg0: i32, %arg1: i32) -> (i32, i32) {
    %c0_i32 = arith.constant 0 : i32
    %c0_i32_0 = arith.constant 0 : i32
    %c0_i32_1 = arith.constant 0 : i32
    return %c0_i32, %c0_i32_0 : i32, i32
  }
  func.func @transform_4(%arg0: i32, %arg1: i32) -> (i32, i32) {
    %c0_i32 = arith.constant 0 : i32
    %c0_i32_0 = arith.constant 0 : i32
    %c0_i32_1 = arith.constant 0 : i32
    return %c0_i32, %c0_i32_0 : i32, i32
  }
  func.func @transform_5(%arg0: i32, %arg1: i32) -> (i32, i32, i32) {
    %c0_i32 = arith.constant 0 : i32
    %c0_i32_0 = arith.constant 0 : i32
    return %arg0, %arg1, %c0_i32 : i32, i32, i32
  }
}

module attributes {stable_mosaic.version = 11 : i64} {
  func.func @_enc_stage_kernel(%arg0: i32, %arg1: i32, %arg2: memref<1x16x64xbf16, #tpu.memory_space<vmem>>, %arg3: memref<64x32xbf16, #tpu.memory_space<vmem>>, %arg4: memref<1x32xf32, #tpu.memory_space<vmem>>, %arg5: memref<32x32xbf16, #tpu.memory_space<vmem>>, %arg6: memref<1x32xf32, #tpu.memory_space<vmem>>, %arg7: memref<1x16x32xbf16, #tpu.memory_space<vmem>>) attributes {dimension_semantics = [#tpu.dimension_semantics<parallel>, #tpu.dimension_semantics<parallel>], iteration_bounds = array<i64: 2, 1>, scalar_prefetch = 0 : i64, scratch_operands = 0 : i64, tpu.core_type = #tpu.core_type<tc>, window_params = [{transform_indices = @transform_0, window_bounds = array<i64: 1, 16, 64>}, {pipeline_mode = #tpu.pipeline_mode<synchronous>, transform_indices = @transform_1, window_bounds = array<i64: 64, 32>}, {pipeline_mode = #tpu.pipeline_mode<synchronous>, transform_indices = @transform_2, window_bounds = array<i64: 1, 32>}, {pipeline_mode = #tpu.pipeline_mode<synchronous>, transform_indices = @transform_3, window_bounds = array<i64: 32, 32>}, {pipeline_mode = #tpu.pipeline_mode<synchronous>, transform_indices = @transform_4, window_bounds = array<i64: 1, 32>}, {transform_indices = @transform_5, window_bounds = array<i64: 1, 16, 32>}]} {
    %c0 = arith.constant 0 : index
    %c0_0 = arith.constant 0 : index
    %c0_1 = arith.constant 0 : index
    %0 = vector.load %arg2[%c0, %c0_0, %c0_1] : memref<1x16x64xbf16, #tpu.memory_space<vmem>>, vector<1x16x64xbf16>
    %1 = vector.shape_cast %0 : vector<1x16x64xbf16> to vector<16x64xbf16>
    %c0_2 = arith.constant 0 : index
    %c0_3 = arith.constant 0 : index
    %2 = vector.load %arg3[%c0_2, %c0_3] : memref<64x32xbf16, #tpu.memory_space<vmem>>, vector<64x32xbf16>
    %cst = arith.constant dense<0.000000e+00> : vector<16x32xf32>
    %3 = tpu.matmul %1, %2, %cst {dimension_numbers = #tpu.dot_dimension_numbers<[1], [0], [0], [1], [0, 0, 1, 1], [], []>} : vector<16x64xbf16>, vector<64x32xbf16>, vector<16x32xf32> -> vector<16x32xf32>
    %c0_4 = arith.constant 0 : index
    %c0_5 = arith.constant 0 : index
    %4 = vector.load %arg4[%c0_4, %c0_5] : memref<1x32xf32, #tpu.memory_space<vmem>>, vector<1x32xf32>
    %5 = vector.broadcast %4 : vector<1x32xf32> to vector<16x32xf32>
    %6 = arith.addf %3, %5 : vector<16x32xf32>
    %7 = arith.truncf %6 : vector<16x32xf32> to vector<16x32xbf16>
    %c0_6 = arith.constant 0 : index
    %c0_7 = arith.constant 0 : index
    %8 = vector.load %arg5[%c0_6, %c0_7] : memref<32x32xbf16, #tpu.memory_space<vmem>>, vector<32x32xbf16>
    %cst_8 = arith.constant dense<0.000000e+00> : vector<16x32xf32>
    %9 = tpu.matmul %7, %8, %cst_8 {dimension_numbers = #tpu.dot_dimension_numbers<[1], [0], [0], [1], [0, 0, 1, 1], [], []>} : vector<16x32xbf16>, vector<32x32xbf16>, vector<16x32xf32> -> vector<16x32xf32>
    %c0_9 = arith.constant 0 : index
    %c0_10 = arith.constant 0 : index
    %10 = vector.load %arg6[%c0_9, %c0_10] : memref<1x32xf32, #tpu.memory_space<vmem>>, vector<1x32xf32>
    %11 = vector.broadcast %10 : vector<1x32xf32> to vector<16x32xf32>
    %12 = arith.addf %9, %11 : vector<16x32xf32>
    %13 = arith.mulf %12, %12 : vector<16x32xf32>
    %14 = arith.mulf %12, %13 : vector<16x32xf32>
    %cst_11 = arith.constant 4.471500e-02 : f32
    %15 = vector.broadcast %cst_11 : f32 to vector<16x32xf32>
    %16 = arith.mulf %15, %14 : vector<16x32xf32>
    %17 = arith.addf %12, %16 : vector<16x32xf32>
    %cst_12 = arith.constant 0.797884583 : f32
    %18 = vector.broadcast %cst_12 : f32 to vector<16x32xf32>
    %19 = arith.mulf %18, %17 : vector<16x32xf32>
    %20 = math.tanh %19 : vector<16x32xf32>
    %cst_13 = arith.constant 1.000000e+00 : f32
    %21 = vector.broadcast %cst_13 : f32 to vector<16x32xf32>
    %22 = arith.addf %21, %20 : vector<16x32xf32>
    %cst_14 = arith.constant 5.000000e-01 : f32
    %23 = vector.broadcast %cst_14 : f32 to vector<16x32xf32>
    %24 = arith.mulf %23, %22 : vector<16x32xf32>
    %25 = arith.mulf %12, %24 : vector<16x32xf32>
    %26 = arith.truncf %25 : vector<16x32xf32> to vector<16x32xbf16>
    %c0_15 = arith.constant 0 : index
    %c0_16 = arith.constant 0 : index
    %c0_17 = arith.constant 0 : index
    %27 = vector.load %arg7[%c0_15, %c0_16, %c0_17] : memref<1x16x32xbf16, #tpu.memory_space<vmem>>, vector<1x16x32xbf16>
    %28 = vector.shape_cast %27 : vector<1x16x32xbf16> to vector<16x32xbf16>
    %29 = vector.shape_cast %26 : vector<16x32xbf16> to vector<1x16x32xbf16>
    tpu.vector_store %arg7[%c0_15, %c0_16, %c0_17], %29 {strides = array<i32>} : memref<1x16x32xbf16, #tpu.memory_space<vmem>>, vector<1x16x32xbf16>,
    return
  }
  func.func @transform_0(%arg0: i32, %arg1: i32) -> (i32, i32, i32) {
    %c0_i32 = arith.constant 0 : i32
    %c0_i32_0 = arith.constant 0 : i32
    return %arg0, %arg1, %c0_i32 : i32, i32, i32
  }
  func.func @transform_1(%arg0: i32, %arg1: i32) -> (i32, i32) {
    %c0_i32 = arith.constant 0 : i32
    %c0_i32_0 = arith.constant 0 : i32
    %c0_i32_1 = arith.constant 0 : i32
    return %c0_i32, %c0_i32_0 : i32, i32
  }
  func.func @transform_2(%arg0: i32, %arg1: i32) -> (i32, i32) {
    %c0_i32 = arith.constant 0 : i32
    %c0_i32_0 = arith.constant 0 : i32
    %c0_i32_1 = arith.constant 0 : i32
    return %c0_i32, %c0_i32_0 : i32, i32
  }
  func.func @transform_3(%arg0: i32, %arg1: i32) -> (i32, i32) {
    %c0_i32 = arith.constant 0 : i32
    %c0_i32_0 = arith.constant 0 : i32
    %c0_i32_1 = arith.constant 0 : i32
    return %c0_i32, %c0_i32_0 : i32, i32
  }
  func.func @transform_4(%arg0: i32, %arg1: i32) -> (i32, i32) {
    %c0_i32 = arith.constant 0 : i32
    %c0_i32_0 = arith.constant 0 : i32
    %c0_i32_1 = arith.constant 0 : i32
    return %c0_i32, %c0_i32_0 : i32, i32
  }
  func.func @transform_5(%arg0: i32, %arg1: i32) -> (i32, i32, i32) {
    %c0_i32 = arith.constant 0 : i32
    %c0_i32_0 = arith.constant 0 : i32
    return %arg0, %arg1, %c0_i32 : i32, i32, i32
  }
}

module attributes {stable_mosaic.version = 11 : i64} {
  func.func @_enc_stage_kernel(%arg0: i32, %arg1: i32, %arg2: memref<1x4x128xbf16, #tpu.memory_space<vmem>>, %arg3: memref<128x64xbf16, #tpu.memory_space<vmem>>, %arg4: memref<1x64xf32, #tpu.memory_space<vmem>>, %arg5: memref<64x64xbf16, #tpu.memory_space<vmem>>, %arg6: memref<1x64xf32, #tpu.memory_space<vmem>>, %arg7: memref<1x4x64xbf16, #tpu.memory_space<vmem>>) attributes {dimension_semantics = [#tpu.dimension_semantics<parallel>, #tpu.dimension_semantics<parallel>], iteration_bounds = array<i64: 2, 1>, scalar_prefetch = 0 : i64, scratch_operands = 0 : i64, tpu.core_type = #tpu.core_type<tc>, window_params = [{transform_indices = @transform_0, window_bounds = array<i64: 1, 4, 128>}, {pipeline_mode = #tpu.pipeline_mode<synchronous>, transform_indices = @transform_1, window_bounds = array<i64: 128, 64>}, {pipeline_mode = #tpu.pipeline_mode<synchronous>, transform_indices = @transform_2, window_bounds = array<i64: 1, 64>}, {pipeline_mode = #tpu.pipeline_mode<synchronous>, transform_indices = @transform_3, window_bounds = array<i64: 64, 64>}, {pipeline_mode = #tpu.pipeline_mode<synchronous>, transform_indices = @transform_4, window_bounds = array<i64: 1, 64>}, {transform_indices = @transform_5, window_bounds = array<i64: 1, 4, 64>}]} {
    %c0 = arith.constant 0 : index
    %c0_0 = arith.constant 0 : index
    %c0_1 = arith.constant 0 : index
    %0 = vector.load %arg2[%c0, %c0_0, %c0_1] : memref<1x4x128xbf16, #tpu.memory_space<vmem>>, vector<1x4x128xbf16>
    %1 = vector.shape_cast %0 : vector<1x4x128xbf16> to vector<4x128xbf16>
    %c0_2 = arith.constant 0 : index
    %c0_3 = arith.constant 0 : index
    %2 = vector.load %arg3[%c0_2, %c0_3] : memref<128x64xbf16, #tpu.memory_space<vmem>>, vector<128x64xbf16>
    %cst = arith.constant dense<0.000000e+00> : vector<4x64xf32>
    %3 = tpu.matmul %1, %2, %cst {dimension_numbers = #tpu.dot_dimension_numbers<[1], [0], [0], [1], [0, 0, 1, 1], [], []>} : vector<4x128xbf16>, vector<128x64xbf16>, vector<4x64xf32> -> vector<4x64xf32>
    %c0_4 = arith.constant 0 : index
    %c0_5 = arith.constant 0 : index
    %4 = vector.load %arg4[%c0_4, %c0_5] : memref<1x64xf32, #tpu.memory_space<vmem>>, vector<1x64xf32>
    %5 = vector.broadcast %4 : vector<1x64xf32> to vector<4x64xf32>
    %6 = arith.addf %3, %5 : vector<4x64xf32>
    %7 = arith.truncf %6 : vector<4x64xf32> to vector<4x64xbf16>
    %c0_6 = arith.constant 0 : index
    %c0_7 = arith.constant 0 : index
    %8 = vector.load %arg5[%c0_6, %c0_7] : memref<64x64xbf16, #tpu.memory_space<vmem>>, vector<64x64xbf16>
    %cst_8 = arith.constant dense<0.000000e+00> : vector<4x64xf32>
    %9 = tpu.matmul %7, %8, %cst_8 {dimension_numbers = #tpu.dot_dimension_numbers<[1], [0], [0], [1], [0, 0, 1, 1], [], []>} : vector<4x64xbf16>, vector<64x64xbf16>, vector<4x64xf32> -> vector<4x64xf32>
    %c0_9 = arith.constant 0 : index
    %c0_10 = arith.constant 0 : index
    %10 = vector.load %arg6[%c0_9, %c0_10] : memref<1x64xf32, #tpu.memory_space<vmem>>, vector<1x64xf32>
    %11 = vector.broadcast %10 : vector<1x64xf32> to vector<4x64xf32>
    %12 = arith.addf %9, %11 : vector<4x64xf32>
    %13 = arith.mulf %12, %12 : vector<4x64xf32>
    %14 = arith.mulf %12, %13 : vector<4x64xf32>
    %cst_11 = arith.constant 4.471500e-02 : f32
    %15 = vector.broadcast %cst_11 : f32 to vector<4x64xf32>
    %16 = arith.mulf %15, %14 : vector<4x64xf32>
    %17 = arith.addf %12, %16 : vector<4x64xf32>
    %cst_12 = arith.constant 0.797884583 : f32
    %18 = vector.broadcast %cst_12 : f32 to vector<4x64xf32>
    %19 = arith.mulf %18, %17 : vector<4x64xf32>
    %20 = math.tanh %19 : vector<4x64xf32>
    %cst_13 = arith.constant 1.000000e+00 : f32
    %21 = vector.broadcast %cst_13 : f32 to vector<4x64xf32>
    %22 = arith.addf %21, %20 : vector<4x64xf32>
    %cst_14 = arith.constant 5.000000e-01 : f32
    %23 = vector.broadcast %cst_14 : f32 to vector<4x64xf32>
    %24 = arith.mulf %23, %22 : vector<4x64xf32>
    %25 = arith.mulf %12, %24 : vector<4x64xf32>
    %26 = arith.truncf %25 : vector<4x64xf32> to vector<4x64xbf16>
    %c0_15 = arith.constant 0 : index
    %c0_16 = arith.constant 0 : index
    %c0_17 = arith.constant 0 : index
    %27 = vector.load %arg7[%c0_15, %c0_16, %c0_17] : memref<1x4x64xbf16, #tpu.memory_space<vmem>>, vector<1x4x64xbf16>
    %28 = vector.shape_cast %27 : vector<1x4x64xbf16> to vector<4x64xbf16>
    %29 = vector.shape_cast %26 : vector<4x64xbf16> to vector<1x4x64xbf16>
    tpu.vector_store %arg7[%c0_15, %c0_16, %c0_17], %29 {strides = array<i32>} : memref<1x4x64xbf16, #tpu.memory_space<vmem>>, vector<1x4x64xbf16>,
    return
  }
  func.func @transform_0(%arg0: i32, %arg1: i32) -> (i32, i32, i32) {
    %c0_i32 = arith.constant 0 : i32
    %c0_i32_0 = arith.constant 0 : i32
    return %arg0, %arg1, %c0_i32 : i32, i32, i32
  }
  func.func @transform_1(%arg0: i32, %arg1: i32) -> (i32, i32) {
    %c0_i32 = arith.constant 0 : i32
    %c0_i32_0 = arith.constant 0 : i32
    %c0_i32_1 = arith.constant 0 : i32
    return %c0_i32, %c0_i32_0 : i32, i32
  }
  func.func @transform_2(%arg0: i32, %arg1: i32) -> (i32, i32) {
    %c0_i32 = arith.constant 0 : i32
    %c0_i32_0 = arith.constant 0 : i32
    %c0_i32_1 = arith.constant 0 : i32
    return %c0_i32, %c0_i32_0 : i32, i32
  }
  func.func @transform_3(%arg0: i32, %arg1: i32) -> (i32, i32) {
    %c0_i32 = arith.constant 0 : i32
    %c0_i32_0 = arith.constant 0 : i32
    %c0_i32_1 = arith.constant 0 : i32
    return %c0_i32, %c0_i32_0 : i32, i32
  }
  func.func @transform_4(%arg0: i32, %arg1: i32) -> (i32, i32) {
    %c0_i32 = arith.constant 0 : i32
    %c0_i32_0 = arith.constant 0 : i32
    %c0_i32_1 = arith.constant 0 : i32
    return %c0_i32, %c0_i32_0 : i32, i32
  }
  func.func @transform_5(%arg0: i32, %arg1: i32) -> (i32, i32, i32) {
    %c0_i32 = arith.constant 0 : i32
    %c0_i32_0 = arith.constant 0 : i32
    return %arg0, %arg1, %c0_i32 : i32, i32, i32
  }
}

module attributes {stable_mosaic.version = 11 : i64} {
  func.func @_enc_stage_kernel(%arg0: i32, %arg1: i32, %arg2: memref<1x1x256xbf16, #tpu.memory_space<vmem>>, %arg3: memref<256x128xbf16, #tpu.memory_space<vmem>>, %arg4: memref<1x128xf32, #tpu.memory_space<vmem>>, %arg5: memref<128x128xbf16, #tpu.memory_space<vmem>>, %arg6: memref<1x128xf32, #tpu.memory_space<vmem>>, %arg7: memref<1x1x128xbf16, #tpu.memory_space<vmem>>) attributes {dimension_semantics = [#tpu.dimension_semantics<parallel>, #tpu.dimension_semantics<parallel>], iteration_bounds = array<i64: 2, 1>, scalar_prefetch = 0 : i64, scratch_operands = 0 : i64, tpu.core_type = #tpu.core_type<tc>, window_params = [{transform_indices = @transform_0, window_bounds = array<i64: 1, 1, 256>}, {pipeline_mode = #tpu.pipeline_mode<synchronous>, transform_indices = @transform_1, window_bounds = array<i64: 256, 128>}, {pipeline_mode = #tpu.pipeline_mode<synchronous>, transform_indices = @transform_2, window_bounds = array<i64: 1, 128>}, {pipeline_mode = #tpu.pipeline_mode<synchronous>, transform_indices = @transform_3, window_bounds = array<i64: 128, 128>}, {pipeline_mode = #tpu.pipeline_mode<synchronous>, transform_indices = @transform_4, window_bounds = array<i64: 1, 128>}, {transform_indices = @transform_5, window_bounds = array<i64: 1, 1, 128>}]} {
    %c0 = arith.constant 0 : index
    %c0_0 = arith.constant 0 : index
    %c0_1 = arith.constant 0 : index
    %0 = vector.load %arg2[%c0, %c0_0, %c0_1] : memref<1x1x256xbf16, #tpu.memory_space<vmem>>, vector<1x1x256xbf16>
    %1 = vector.shape_cast %0 : vector<1x1x256xbf16> to vector<1x256xbf16>
    %c0_2 = arith.constant 0 : index
    %c0_3 = arith.constant 0 : index
    %2 = vector.load %arg3[%c0_2, %c0_3] : memref<256x128xbf16, #tpu.memory_space<vmem>>, vector<256x128xbf16>
    %cst = arith.constant dense<0.000000e+00> : vector<1x128xf32>
    %3 = tpu.matmul %1, %2, %cst {dimension_numbers = #tpu.dot_dimension_numbers<[1], [0], [0], [1], [0, 0, 1, 1], [], []>} : vector<1x256xbf16>, vector<256x128xbf16>, vector<1x128xf32> -> vector<1x128xf32>
    %c0_4 = arith.constant 0 : index
    %c0_5 = arith.constant 0 : index
    %4 = vector.load %arg4[%c0_4, %c0_5] : memref<1x128xf32, #tpu.memory_space<vmem>>, vector<1x128xf32>
    %5 = arith.addf %3, %4 : vector<1x128xf32>
    %6 = arith.truncf %5 : vector<1x128xf32> to vector<1x128xbf16>
    %c0_6 = arith.constant 0 : index
    %c0_7 = arith.constant 0 : index
    %7 = vector.load %arg5[%c0_6, %c0_7] : memref<128x128xbf16, #tpu.memory_space<vmem>>, vector<128x128xbf16>
    %cst_8 = arith.constant dense<0.000000e+00> : vector<1x128xf32>
    %8 = tpu.matmul %6, %7, %cst_8 {dimension_numbers = #tpu.dot_dimension_numbers<[1], [0], [0], [1], [0, 0, 1, 1], [], []>} : vector<1x128xbf16>, vector<128x128xbf16>, vector<1x128xf32> -> vector<1x128xf32>
    %c0_9 = arith.constant 0 : index
    %c0_10 = arith.constant 0 : index
    %9 = vector.load %arg6[%c0_9, %c0_10] : memref<1x128xf32, #tpu.memory_space<vmem>>, vector<1x128xf32>
    %10 = arith.addf %8, %9 : vector<1x128xf32>
    %11 = arith.mulf %10, %10 : vector<1x128xf32>
    %12 = arith.mulf %10, %11 : vector<1x128xf32>
    %cst_11 = arith.constant 4.471500e-02 : f32
    %13 = vector.broadcast %cst_11 : f32 to vector<1x128xf32>
    %14 = arith.mulf %13, %12 : vector<1x128xf32>
    %15 = arith.addf %10, %14 : vector<1x128xf32>
    %cst_12 = arith.constant 0.797884583 : f32
    %16 = vector.broadcast %cst_12 : f32 to vector<1x128xf32>
    %17 = arith.mulf %16, %15 : vector<1x128xf32>
    %18 = math.tanh %17 : vector<1x128xf32>
    %cst_13 = arith.constant 1.000000e+00 : f32
    %19 = vector.broadcast %cst_13 : f32 to vector<1x128xf32>
    %20 = arith.addf %19, %18 : vector<1x128xf32>
    %cst_14 = arith.constant 5.000000e-01 : f32
    %21 = vector.broadcast %cst_14 : f32 to vector<1x128xf32>
    %22 = arith.mulf %21, %20 : vector<1x128xf32>
    %23 = arith.mulf %10, %22 : vector<1x128xf32>
    %24 = arith.truncf %23 : vector<1x128xf32> to vector<1x128xbf16>
    %c0_15 = arith.constant 0 : index
    %c0_16 = arith.constant 0 : index
    %c0_17 = arith.constant 0 : index
    %25 = vector.load %arg7[%c0_15, %c0_16, %c0_17] : memref<1x1x128xbf16, #tpu.memory_space<vmem>>, vector<1x1x128xbf16>
    %26 = vector.shape_cast %25 : vector<1x1x128xbf16> to vector<1x128xbf16>
    %27 = vector.shape_cast %24 : vector<1x128xbf16> to vector<1x1x128xbf16>
    tpu.vector_store %arg7[%c0_15, %c0_16, %c0_17], %27 {strides = array<i32>} : memref<1x1x128xbf16, #tpu.memory_space<vmem>>, vector<1x1x128xbf16>,
    return
  }
  func.func @transform_0(%arg0: i32, %arg1: i32) -> (i32, i32, i32) {
    %c0_i32 = arith.constant 0 : i32
    %c0_i32_0 = arith.constant 0 : i32
    return %arg0, %arg1, %c0_i32 : i32, i32, i32
  }
  func.func @transform_1(%arg0: i32, %arg1: i32) -> (i32, i32) {
    %c0_i32 = arith.constant 0 : i32
    %c0_i32_0 = arith.constant 0 : i32
    %c0_i32_1 = arith.constant 0 : i32
    return %c0_i32, %c0_i32_0 : i32, i32
  }
  func.func @transform_2(%arg0: i32, %arg1: i32) -> (i32, i32) {
    %c0_i32 = arith.constant 0 : i32
    %c0_i32_0 = arith.constant 0 : i32
    %c0_i32_1 = arith.constant 0 : i32
    return %c0_i32, %c0_i32_0 : i32, i32
  }
  func.func @transform_3(%arg0: i32, %arg1: i32) -> (i32, i32) {
    %c0_i32 = arith.constant 0 : i32
    %c0_i32_0 = arith.constant 0 : i32
    %c0_i32_1 = arith.constant 0 : i32
    return %c0_i32, %c0_i32_0 : i32, i32
  }
  func.func @transform_4(%arg0: i32, %arg1: i32) -> (i32, i32) {
    %c0_i32 = arith.constant 0 : i32
    %c0_i32_0 = arith.constant 0 : i32
    %c0_i32_1 = arith.constant 0 : i32
    return %c0_i32, %c0_i32_0 : i32, i32
  }
  func.func @transform_5(%arg0: i32, %arg1: i32) -> (i32, i32, i32) {
    %c0_i32 = arith.constant 0 : i32
    %c0_i32_0 = arith.constant 0 : i32
    return %arg0, %arg1, %c0_i32 : i32, i32, i32
  }
}

module attributes {stable_mosaic.version = 11 : i64} {
  func.func @_dec_stage_kernel(%arg0: i32, %arg1: i32, %arg2: memref<1x1x128xbf16, #tpu.memory_space<vmem>>, %arg3: memref<1x128x1xf32, #tpu.memory_space<vmem>>, %arg4: memref<1x2x128xbf16, #tpu.memory_space<vmem>>, %arg5: memref<128x128xbf16, #tpu.memory_space<vmem>>, %arg6: memref<1x128xf32, #tpu.memory_space<vmem>>, %arg7: memref<128x128xbf16, #tpu.memory_space<vmem>>, %arg8: memref<128x16xbf16, #tpu.memory_space<vmem>>, %arg9: memref<1x16xf32, #tpu.memory_space<vmem>>, %arg10: memref<16x64xbf16, #tpu.memory_space<vmem>>, %arg11: memref<1x64xf32, #tpu.memory_space<vmem>>, %arg12: memref<1x2x128xbf16, #tpu.memory_space<vmem>>, %arg13: memref<1x1x64xf32, #tpu.memory_space<vmem>>, %arg14: memref<1x128xf32, #tpu.memory_space<vmem>>) attributes {dimension_semantics = [#tpu.dimension_semantics<parallel>, #tpu.dimension_semantics<arbitrary>], iteration_bounds = array<i64: 2, 1>, scalar_prefetch = 0 : i64, scratch_operands = 1 : i64, tpu.core_type = #tpu.core_type<tc>, window_params = [{transform_indices = @transform_0, window_bounds = array<i64: 1, 1, 128>}, {transform_indices = @transform_1, window_bounds = array<i64: 1, 128, 1>}, {transform_indices = @transform_2, window_bounds = array<i64: 1, 2, 128>}, {pipeline_mode = #tpu.pipeline_mode<synchronous>, transform_indices = @transform_3, window_bounds = array<i64: 128, 128>}, {pipeline_mode = #tpu.pipeline_mode<synchronous>, transform_indices = @transform_4, window_bounds = array<i64: 1, 128>}, {pipeline_mode = #tpu.pipeline_mode<synchronous>, transform_indices = @transform_5, window_bounds = array<i64: 128, 128>}, {pipeline_mode = #tpu.pipeline_mode<synchronous>, transform_indices = @transform_6, window_bounds = array<i64: 128, 16>}, {pipeline_mode = #tpu.pipeline_mode<synchronous>, transform_indices = @transform_7, window_bounds = array<i64: 1, 16>}, {pipeline_mode = #tpu.pipeline_mode<synchronous>, transform_indices = @transform_8, window_bounds = array<i64: 16, 64>}, {pipeline_mode = #tpu.pipeline_mode<synchronous>, transform_indices = @transform_9, window_bounds = array<i64: 1, 64>}, {transform_indices = @transform_10, window_bounds = array<i64: 1, 2, 128>}, {transform_indices = @transform_11, window_bounds = array<i64: 1, 1, 64>}]} {
    %c0_i32 = arith.constant 0 : i32
    %0 = arith.cmpi eq, %arg1, %c0_i32 : i32
    %1 = arith.extui %0 : i1 to i32
    %c0_i32_0 = arith.constant 0 : i32
    %2 = arith.cmpi ne, %1, %c0_i32_0 : i32
    scf.if %2 {
      %cst_31 = arith.constant 0.000000e+00 : f32
      %46 = vector.broadcast %cst_31 : f32 to vector<1x128xf32>
      %c0_32 = arith.constant 0 : index
      %c0_33 = arith.constant 0 : index
      %47 = vector.load %arg14[%c0_32, %c0_33] : memref<1x128xf32, #tpu.memory_space<vmem>>, vector<1x128xf32>
      tpu.vector_store %arg14[%c0_32, %c0_33], %46 {strides = array<i32>} : memref<1x128xf32, #tpu.memory_space<vmem>>, vector<1x128xf32>,
    } else {
    }
    %c0 = arith.constant 0 : index
    %c0_1 = arith.constant 0 : index
    %3 = vector.load %arg5[%c0, %c0_1] : memref<128x128xbf16, #tpu.memory_space<vmem>>, vector<128x128xbf16>
    %4 = arith.extf %3 : vector<128x128xbf16> to vector<128x128xf32>
    %c0_2 = arith.constant 0 : index
    %c0_3 = arith.constant 0 : index
    %c0_4 = arith.constant 0 : index
    %5 = vector.load %arg3[%c0_2, %c0_3, %c0_4] : memref<1x128x1xf32, #tpu.memory_space<vmem>>, vector<1x128x1xf32>
    %6 = vector.shape_cast %5 : vector<1x128x1xf32> to vector<128x1xf32>
    %7 = vector.broadcast %6 : vector<128x1xf32> to vector<128x128xf32>
    %8 = arith.mulf %4, %7 : vector<128x128xf32>
    %9 = arith.truncf %8 : vector<128x128xf32> to vector<128x128xbf16>
    %c0_5 = arith.constant 0 : index
    %c0_6 = arith.constant 0 : index
    %c0_7 = arith.constant 0 : index
    %10 = vector.load %arg2[%c0_5, %c0_6, %c0_7] : memref<1x1x128xbf16, #tpu.memory_space<vmem>>, vector<1x1x128xbf16>
    %11 = vector.shape_cast %10 : vector<1x1x128xbf16> to vector<1x128xbf16>
    %cst = arith.constant dense<0.000000e+00> : vector<1x128xf32>
    %12 = tpu.matmul %11, %9, %cst {dimension_numbers = #tpu.dot_dimension_numbers<[1], [0], [0], [1], [0, 0, 1, 1], [], []>} : vector<1x128xbf16>, vector<128x128xbf16>, vector<1x128xf32> -> vector<1x128xf32>
    %c0_8 = arith.constant 0 : index
    %c0_9 = arith.constant 0 : index
    %13 = vector.load %arg6[%c0_8, %c0_9] : memref<1x128xf32, #tpu.memory_space<vmem>>, vector<1x128xf32>
    %14 = arith.addf %12, %13 : vector<1x128xf32>
    %c0_10 = arith.constant 0 : index
    %c0_11 = arith.constant 0 : index
    %c0_12 = arith.constant 0 : index
    %15 = vector.load %arg4[%c0_10, %c0_11, %c0_12] : memref<1x2x128xbf16, #tpu.memory_space<vmem>>, vector<1x2x128xbf16>
    %16 = vector.shape_cast %15 : vector<1x2x128xbf16> to vector<2x128xbf16>
    %c0_13 = arith.constant 0 : index
    %c0_14 = arith.constant 0 : index
    %17 = vector.load %arg7[%c0_13, %c0_14] : memref<128x128xbf16, #tpu.memory_space<vmem>>, vector<128x128xbf16>
    %cst_15 = arith.constant dense<0.000000e+00> : vector<2x128xf32>
    %18 = tpu.matmul %16, %17, %cst_15 {dimension_numbers = #tpu.dot_dimension_numbers<[1], [0], [0], [1], [0, 0, 1, 1], [], []>} : vector<2x128xbf16>, vector<128x128xbf16>, vector<2x128xf32> -> vector<2x128xf32>
    %c0_16 = arith.constant 0 : index
    %c0_17 = arith.constant 0 : index
    %19 = vector.load %arg14[%c0_16, %c0_17] : memref<1x128xf32, #tpu.memory_space<vmem>>, vector<1x128xf32>
    %20 = vector.extract_strided_slice %18 {offsets = [0, 0], sizes = [1, 128], strides = [1, 1]} : vector<2x128xf32> to vector<1x128xf32>
    %21 = arith.addf %20, %14 : vector<1x128xf32>
    %cst_18 = arith.constant 0.000000e+00 : f32
    %22 = vector.broadcast %cst_18 : f32 to vector<1x128xf32>
    %23 = arith.maximumf %21, %22 : vector<1x128xf32>
    %24 = arith.truncf %23 : vector<1x128xf32> to vector<1x128xbf16>
    %c0_19 = arith.constant 0 : index
    %c0_20 = arith.constant 0 : index
    %c0_21 = arith.constant 0 : index
    %25 = vector.load %arg12[%c0_19, %c0_20, %c0_21] : memref<1x2x128xbf16, #tpu.memory_space<vmem>>, vector<1x1x128xbf16>
    %26 = vector.shape_cast %25 : vector<1x1x128xbf16> to vector<1x128xbf16>
    %27 = vector.shape_cast %24 : vector<1x128xbf16> to vector<1x1x128xbf16>
    tpu.vector_store %arg12[%c0_19, %c0_20, %c0_21], %27 {strides = array<i32>} : memref<1x2x128xbf16, #tpu.memory_space<vmem>>, vector<1x1x128xbf16>,
    %cst_22 = arith.constant dense<0.000000e+00> : vector<128xf32>
    %28 = vector.multi_reduction <add>, %23, %cst_22 [0] : vector<1x128xf32> to vector<128xf32>
    %29 = vector.shape_cast %28 : vector<128xf32> to vector<1x128xf32>
    %30 = arith.addf %19, %29 : vector<1x128xf32>
    %31 = vector.extract_strided_slice %18 {offsets = [1, 0], sizes = [1, 128], strides = [1, 1]} : vector<2x128xf32> to vector<1x128xf32>
    %32 = arith.addf %31, %14 : vector<1x128xf32>
    %cst_23 = arith.constant 0.000000e+00 : f32
    %33 = vector.broadcast %cst_23 : f32 to vector<1x128xf32>
    %34 = arith.maximumf %32, %33 : vector<1x128xf32>
    %35 = arith.truncf %34 : vector<1x128xf32> to vector<1x128xbf16>
    %c0_24 = arith.constant 0 : index
    %c1 = arith.constant 1 : index
    %c0_25 = arith.constant 0 : index
    %36 = vector.load %arg12[%c0_24, %c1, %c0_25] : memref<1x2x128xbf16, #tpu.memory_space<vmem>>, vector<1x1x128xbf16>
    %37 = vector.shape_cast %36 : vector<1x1x128xbf16> to vector<1x128xbf16>
    %38 = vector.shape_cast %35 : vector<1x128xbf16> to vector<1x1x128xbf16>
    tpu.vector_store %arg12[%c0_24, %c1, %c0_25], %38 {strides = array<i32>} : memref<1x2x128xbf16, #tpu.memory_space<vmem>>, vector<1x1x128xbf16>,
    %cst_26 = arith.constant dense<0.000000e+00> : vector<128xf32>
    %39 = vector.multi_reduction <add>, %34, %cst_26 [0] : vector<1x128xf32> to vector<128xf32>
    %40 = vector.shape_cast %39 : vector<128xf32> to vector<1x128xf32>
    %41 = arith.addf %30, %40 : vector<1x128xf32>
    %c0_27 = arith.constant 0 : index
    %c0_28 = arith.constant 0 : index
    %42 = vector.load %arg14[%c0_27, %c0_28] : memref<1x128xf32, #tpu.memory_space<vmem>>, vector<1x128xf32>
    tpu.vector_store %arg14[%c0_27, %c0_28], %41 {strides = array<i32>} : memref<1x128xf32, #tpu.memory_space<vmem>>, vector<1x128xf32>,
    %c0_i32_29 = arith.constant 0 : i32
    %43 = arith.cmpi eq, %arg1, %c0_i32_29 : i32
    %44 = arith.extui %43 : i1 to i32
    %c0_i32_30 = arith.constant 0 : i32
    %45 = arith.cmpi ne, %44, %c0_i32_30 : i32
    scf.if %45 {
      %c0_31 = arith.constant 0 : index
      %c0_32 = arith.constant 0 : index
      %46 = vector.load %arg14[%c0_31, %c0_32] : memref<1x128xf32, #tpu.memory_space<vmem>>, vector<1x128xf32>
      %cst_33 = arith.constant 2.500000e-01 : f32
      %47 = vector.broadcast %cst_33 : f32 to vector<1x128xf32>
      %48 = arith.mulf %46, %47 : vector<1x128xf32>
      %49 = arith.truncf %48 : vector<1x128xf32> to vector<1x128xbf16>
      %c0_34 = arith.constant 0 : index
      %c0_35 = arith.constant 0 : index
      %50 = vector.load %arg8[%c0_34, %c0_35] : memref<128x16xbf16, #tpu.memory_space<vmem>>, vector<128x16xbf16>
      %cst_36 = arith.constant dense<0.000000e+00> : vector<1x16xf32>
      %51 = tpu.matmul %49, %50, %cst_36 {dimension_numbers = #tpu.dot_dimension_numbers<[1], [0], [0], [1], [0, 0, 1, 1], [], []>} : vector<1x128xbf16>, vector<128x16xbf16>, vector<1x16xf32> -> vector<1x16xf32>
      %c0_37 = arith.constant 0 : index
      %c0_38 = arith.constant 0 : index
      %52 = vector.load %arg9[%c0_37, %c0_38] : memref<1x16xf32, #tpu.memory_space<vmem>>, vector<1x16xf32>
      %53 = arith.addf %51, %52 : vector<1x16xf32>
      %cst_39 = arith.constant 0.000000e+00 : f32
      %54 = vector.broadcast %cst_39 : f32 to vector<1x16xf32>
      %55 = arith.maximumf %53, %54 : vector<1x16xf32>
      %56 = arith.truncf %55 : vector<1x16xf32> to vector<1x16xbf16>
      %c0_40 = arith.constant 0 : index
      %c0_41 = arith.constant 0 : index
      %57 = vector.load %arg10[%c0_40, %c0_41] : memref<16x64xbf16, #tpu.memory_space<vmem>>, vector<16x64xbf16>
      %cst_42 = arith.constant dense<0.000000e+00> : vector<1x64xf32>
      %58 = tpu.matmul %56, %57, %cst_42 {dimension_numbers = #tpu.dot_dimension_numbers<[1], [0], [0], [1], [0, 0, 1, 1], [], []>} : vector<1x16xbf16>, vector<16x64xbf16>, vector<1x64xf32> -> vector<1x64xf32>
      %c0_43 = arith.constant 0 : index
      %c0_44 = arith.constant 0 : index
      %59 = vector.load %arg11[%c0_43, %c0_44] : memref<1x64xf32, #tpu.memory_space<vmem>>, vector<1x64xf32>
      %60 = arith.addf %58, %59 : vector<1x64xf32>
      %61 = arith.negf %60 : vector<1x64xf32>
      %62 = math.exp %61 : vector<1x64xf32>
      %cst_45 = arith.constant 1.000000e+00 : f32
      %63 = vector.broadcast %cst_45 : f32 to vector<1x64xf32>
      %64 = arith.addf %63, %62 : vector<1x64xf32>
      %65 = arith.divf %63, %64 : vector<1x64xf32>
      %c0_46 = arith.constant 0 : index
      %c0_47 = arith.constant 0 : index
      %c0_48 = arith.constant 0 : index
      %66 = vector.load %arg13[%c0_46, %c0_47, %c0_48] : memref<1x1x64xf32, #tpu.memory_space<vmem>>, vector<1x1x64xf32>
      %67 = vector.shape_cast %66 : vector<1x1x64xf32> to vector<1x64xf32>
      %68 = vector.shape_cast %65 : vector<1x64xf32> to vector<1x1x64xf32>
      tpu.vector_store %arg13[%c0_46, %c0_47, %c0_48], %68 {strides = array<i32>} : memref<1x1x64xf32, #tpu.memory_space<vmem>>, vector<1x1x64xf32>,
    } else {
    }
    return
  }
  func.func @transform_0(%arg0: i32, %arg1: i32) -> (i32, i32, i32) {
    %c0_i32 = arith.constant 0 : i32
    %c0_i32_0 = arith.constant 0 : i32
    return %arg0, %arg1, %c0_i32 : i32, i32, i32
  }
  func.func @transform_1(%arg0: i32, %arg1: i32) -> (i32, i32, i32) {
    %c0_i32 = arith.constant 0 : i32
    %c0_i32_0 = arith.constant 0 : i32
    %c0_i32_1 = arith.constant 0 : i32
    return %arg0, %c0_i32, %c0_i32_0 : i32, i32, i32
  }
  func.func @transform_2(%arg0: i32, %arg1: i32) -> (i32, i32, i32) {
    %c0_i32 = arith.constant 0 : i32
    %c0_i32_0 = arith.constant 0 : i32
    return %arg0, %arg1, %c0_i32 : i32, i32, i32
  }
  func.func @transform_3(%arg0: i32, %arg1: i32) -> (i32, i32) {
    %c0_i32 = arith.constant 0 : i32
    %c0_i32_0 = arith.constant 0 : i32
    %c0_i32_1 = arith.constant 0 : i32
    return %c0_i32, %c0_i32_0 : i32, i32
  }
  func.func @transform_4(%arg0: i32, %arg1: i32) -> (i32, i32) {
    %c0_i32 = arith.constant 0 : i32
    %c0_i32_0 = arith.constant 0 : i32
    %c0_i32_1 = arith.constant 0 : i32
    return %c0_i32, %c0_i32_0 : i32, i32
  }
  func.func @transform_5(%arg0: i32, %arg1: i32) -> (i32, i32) {
    %c0_i32 = arith.constant 0 : i32
    %c0_i32_0 = arith.constant 0 : i32
    %c0_i32_1 = arith.constant 0 : i32
    return %c0_i32, %c0_i32_0 : i32, i32
  }
  func.func @transform_6(%arg0: i32, %arg1: i32) -> (i32, i32) {
    %c0_i32 = arith.constant 0 : i32
    %c0_i32_0 = arith.constant 0 : i32
    %c0_i32_1 = arith.constant 0 : i32
    return %c0_i32, %c0_i32_0 : i32, i32
  }
  func.func @transform_7(%arg0: i32, %arg1: i32) -> (i32, i32) {
    %c0_i32 = arith.constant 0 : i32
    %c0_i32_0 = arith.constant 0 : i32
    %c0_i32_1 = arith.constant 0 : i32
    return %c0_i32, %c0_i32_0 : i32, i32
  }
  func.func @transform_8(%arg0: i32, %arg1: i32) -> (i32, i32) {
    %c0_i32 = arith.constant 0 : i32
    %c0_i32_0 = arith.constant 0 : i32
    %c0_i32_1 = arith.constant 0 : i32
    return %c0_i32, %c0_i32_0 : i32, i32
  }
  func.func @transform_9(%arg0: i32, %arg1: i32) -> (i32, i32) {
    %c0_i32 = arith.constant 0 : i32
    %c0_i32_0 = arith.constant 0 : i32
    %c0_i32_1 = arith.constant 0 : i32
    return %c0_i32, %c0_i32_0 : i32, i32
  }
  func.func @transform_10(%arg0: i32, %arg1: i32) -> (i32, i32, i32) {
    %c0_i32 = arith.constant 0 : i32
    %c0_i32_0 = arith.constant 0 : i32
    return %arg0, %arg1, %c0_i32 : i32, i32, i32
  }
  func.func @transform_11(%arg0: i32, %arg1: i32) -> (i32, i32, i32) {
    %c0_i32 = arith.constant 0 : i32
    %c0_i32_0 = arith.constant 0 : i32
    %c0_i32_1 = arith.constant 0 : i32
    return %arg0, %c0_i32, %c0_i32_0 : i32, i32, i32
  }
}

module attributes {stable_mosaic.version = 11 : i64} {
  func.func @_dec_stage_kernel(%arg0: i32, %arg1: i32, %arg2: memref<1x4x64xbf16, #tpu.memory_space<vmem>>, %arg3: memref<1x64x1xf32, #tpu.memory_space<vmem>>, %arg4: memref<1x8x64xbf16, #tpu.memory_space<vmem>>, %arg5: memref<64x64xbf16, #tpu.memory_space<vmem>>, %arg6: memref<1x64xf32, #tpu.memory_space<vmem>>, %arg7: memref<64x64xbf16, #tpu.memory_space<vmem>>, %arg8: memref<64x8xbf16, #tpu.memory_space<vmem>>, %arg9: memref<1x8xf32, #tpu.memory_space<vmem>>, %arg10: memref<8x32xbf16, #tpu.memory_space<vmem>>, %arg11: memref<1x32xf32, #tpu.memory_space<vmem>>, %arg12: memref<1x8x64xbf16, #tpu.memory_space<vmem>>, %arg13: memref<1x1x32xf32, #tpu.memory_space<vmem>>, %arg14: memref<1x64xf32, #tpu.memory_space<vmem>>) attributes {dimension_semantics = [#tpu.dimension_semantics<parallel>, #tpu.dimension_semantics<arbitrary>], iteration_bounds = array<i64: 2, 1>, scalar_prefetch = 0 : i64, scratch_operands = 1 : i64, tpu.core_type = #tpu.core_type<tc>, window_params = [{transform_indices = @transform_0, window_bounds = array<i64: 1, 4, 64>}, {transform_indices = @transform_1, window_bounds = array<i64: 1, 64, 1>}, {transform_indices = @transform_2, window_bounds = array<i64: 1, 8, 64>}, {pipeline_mode = #tpu.pipeline_mode<synchronous>, transform_indices = @transform_3, window_bounds = array<i64: 64, 64>}, {pipeline_mode = #tpu.pipeline_mode<synchronous>, transform_indices = @transform_4, window_bounds = array<i64: 1, 64>}, {pipeline_mode = #tpu.pipeline_mode<synchronous>, transform_indices = @transform_5, window_bounds = array<i64: 64, 64>}, {pipeline_mode = #tpu.pipeline_mode<synchronous>, transform_indices = @transform_6, window_bounds = array<i64: 64, 8>}, {pipeline_mode = #tpu.pipeline_mode<synchronous>, transform_indices = @transform_7, window_bounds = array<i64: 1, 8>}, {pipeline_mode = #tpu.pipeline_mode<synchronous>, transform_indices = @transform_8, window_bounds = array<i64: 8, 32>}, {pipeline_mode = #tpu.pipeline_mode<synchronous>, transform_indices = @transform_9, window_bounds = array<i64: 1, 32>}, {transform_indices = @transform_10, window_bounds = array<i64: 1, 8, 64>}, {transform_indices = @transform_11, window_bounds = array<i64: 1, 1, 32>}]} {
    %c0_i32 = arith.constant 0 : i32
    %0 = arith.cmpi eq, %arg1, %c0_i32 : i32
    %1 = arith.extui %0 : i1 to i32
    %c0_i32_0 = arith.constant 0 : i32
    %2 = arith.cmpi ne, %1, %c0_i32_0 : i32
    scf.if %2 {
      %cst_39 = arith.constant 0.000000e+00 : f32
      %71 = vector.broadcast %cst_39 : f32 to vector<1x64xf32>
      %c0_40 = arith.constant 0 : index
      %c0_41 = arith.constant 0 : index
      %72 = vector.load %arg14[%c0_40, %c0_41] : memref<1x64xf32, #tpu.memory_space<vmem>>, vector<1x64xf32>
      tpu.vector_store %arg14[%c0_40, %c0_41], %71 {strides = array<i32>} : memref<1x64xf32, #tpu.memory_space<vmem>>, vector<1x64xf32>,
    } else {
    }
    %c0 = arith.constant 0 : index
    %c0_1 = arith.constant 0 : index
    %3 = vector.load %arg5[%c0, %c0_1] : memref<64x64xbf16, #tpu.memory_space<vmem>>, vector<64x64xbf16>
    %4 = arith.extf %3 : vector<64x64xbf16> to vector<64x64xf32>
    %c0_2 = arith.constant 0 : index
    %c0_3 = arith.constant 0 : index
    %c0_4 = arith.constant 0 : index
    %5 = vector.load %arg3[%c0_2, %c0_3, %c0_4] : memref<1x64x1xf32, #tpu.memory_space<vmem>>, vector<1x64x1xf32>
    %6 = vector.shape_cast %5 : vector<1x64x1xf32> to vector<64x1xf32>
    %7 = vector.broadcast %6 : vector<64x1xf32> to vector<64x64xf32>
    %8 = arith.mulf %4, %7 : vector<64x64xf32>
    %9 = arith.truncf %8 : vector<64x64xf32> to vector<64x64xbf16>
    %c0_5 = arith.constant 0 : index
    %c0_6 = arith.constant 0 : index
    %c0_7 = arith.constant 0 : index
    %10 = vector.load %arg2[%c0_5, %c0_6, %c0_7] : memref<1x4x64xbf16, #tpu.memory_space<vmem>>, vector<1x4x64xbf16>
    %11 = vector.shape_cast %10 : vector<1x4x64xbf16> to vector<4x64xbf16>
    %cst = arith.constant dense<0.000000e+00> : vector<4x64xf32>
    %12 = tpu.matmul %11, %9, %cst {dimension_numbers = #tpu.dot_dimension_numbers<[1], [0], [0], [1], [0, 0, 1, 1], [], []>} : vector<4x64xbf16>, vector<64x64xbf16>, vector<4x64xf32> -> vector<4x64xf32>
    %c0_8 = arith.constant 0 : index
    %c0_9 = arith.constant 0 : index
    %13 = vector.load %arg6[%c0_8, %c0_9] : memref<1x64xf32, #tpu.memory_space<vmem>>, vector<1x64xf32>
    %14 = vector.broadcast %13 : vector<1x64xf32> to vector<4x64xf32>
    %15 = arith.addf %12, %14 : vector<4x64xf32>
    %c0_10 = arith.constant 0 : index
    %c0_11 = arith.constant 0 : index
    %c0_12 = arith.constant 0 : index
    %16 = vector.load %arg4[%c0_10, %c0_11, %c0_12] : memref<1x8x64xbf16, #tpu.memory_space<vmem>>, vector<1x8x64xbf16>
    %17 = vector.shape_cast %16 : vector<1x8x64xbf16> to vector<8x64xbf16>
    %c0_13 = arith.constant 0 : index
    %c0_14 = arith.constant 0 : index
    %18 = vector.load %arg7[%c0_13, %c0_14] : memref<64x64xbf16, #tpu.memory_space<vmem>>, vector<64x64xbf16>
    %cst_15 = arith.constant dense<0.000000e+00> : vector<8x64xf32>
    %19 = tpu.matmul %17, %18, %cst_15 {dimension_numbers = #tpu.dot_dimension_numbers<[1], [0], [0], [1], [0, 0, 1, 1], [], []>} : vector<8x64xbf16>, vector<64x64xbf16>, vector<8x64xf32> -> vector<8x64xf32>
    %c0_16 = arith.constant 0 : index
    %c0_17 = arith.constant 0 : index
    %20 = vector.load %arg14[%c0_16, %c0_17] : memref<1x64xf32, #tpu.memory_space<vmem>>, vector<1x64xf32>
    %21 = vector.extract_strided_slice %15 {offsets = [0, 0], sizes = [2, 64], strides = [1, 1]} : vector<4x64xf32> to vector<2x64xf32>
    %22 = vector.extract_strided_slice %19 {offsets = [0, 0], sizes = [2, 64], strides = [1, 1]} : vector<8x64xf32> to vector<2x64xf32>
    %23 = arith.addf %22, %21 : vector<2x64xf32>
    %cst_18 = arith.constant 0.000000e+00 : f32
    %24 = vector.broadcast %cst_18 : f32 to vector<2x64xf32>
    %25 = arith.maximumf %23, %24 : vector<2x64xf32>
    %26 = arith.truncf %25 : vector<2x64xf32> to vector<2x64xbf16>
    %c0_19 = arith.constant 0 : index
    %c0_20 = arith.constant 0 : index
    %c0_21 = arith.constant 0 : index
    %27 = vector.load %arg12[%c0_19, %c0_20, %c0_21] : memref<1x8x64xbf16, #tpu.memory_space<vmem>>, vector<1x2x64xbf16>
    %28 = vector.shape_cast %27 : vector<1x2x64xbf16> to vector<2x64xbf16>
    %29 = vector.shape_cast %26 : vector<2x64xbf16> to vector<1x2x64xbf16>
    tpu.vector_store %arg12[%c0_19, %c0_20, %c0_21], %29 {strides = array<i32>} : memref<1x8x64xbf16, #tpu.memory_space<vmem>>, vector<1x2x64xbf16>,
    %cst_22 = arith.constant dense<0.000000e+00> : vector<64xf32>
    %30 = vector.multi_reduction <add>, %25, %cst_22 [0] : vector<2x64xf32> to vector<64xf32>
    %31 = vector.shape_cast %30 : vector<64xf32> to vector<1x64xf32>
    %32 = arith.addf %20, %31 : vector<1x64xf32>
    %33 = vector.extract_strided_slice %19 {offsets = [2, 0], sizes = [2, 64], strides = [1, 1]} : vector<8x64xf32> to vector<2x64xf32>
    %34 = arith.addf %33, %21 : vector<2x64xf32>
    %cst_23 = arith.constant 0.000000e+00 : f32
    %35 = vector.broadcast %cst_23 : f32 to vector<2x64xf32>
    %36 = arith.maximumf %34, %35 : vector<2x64xf32>
    %37 = arith.truncf %36 : vector<2x64xf32> to vector<2x64xbf16>
    %c0_24 = arith.constant 0 : index
    %c2 = arith.constant 2 : index
    %c0_25 = arith.constant 0 : index
    %38 = vector.load %arg12[%c0_24, %c2, %c0_25] : memref<1x8x64xbf16, #tpu.memory_space<vmem>>, vector<1x2x64xbf16>
    %39 = vector.shape_cast %38 : vector<1x2x64xbf16> to vector<2x64xbf16>
    %40 = vector.shape_cast %37 : vector<2x64xbf16> to vector<1x2x64xbf16>
    tpu.vector_store %arg12[%c0_24, %c2, %c0_25], %40 {strides = array<i32>} : memref<1x8x64xbf16, #tpu.memory_space<vmem>>, vector<1x2x64xbf16>,
    %cst_26 = arith.constant dense<0.000000e+00> : vector<64xf32>
    %41 = vector.multi_reduction <add>, %36, %cst_26 [0] : vector<2x64xf32> to vector<64xf32>
    %42 = vector.shape_cast %41 : vector<64xf32> to vector<1x64xf32>
    %43 = arith.addf %32, %42 : vector<1x64xf32>
    %44 = vector.extract_strided_slice %15 {offsets = [2, 0], sizes = [2, 64], strides = [1, 1]} : vector<4x64xf32> to vector<2x64xf32>
    %45 = vector.extract_strided_slice %19 {offsets = [4, 0], sizes = [2, 64], strides = [1, 1]} : vector<8x64xf32> to vector<2x64xf32>
    %46 = arith.addf %45, %44 : vector<2x64xf32>
    %cst_27 = arith.constant 0.000000e+00 : f32
    %47 = vector.broadcast %cst_27 : f32 to vector<2x64xf32>
    %48 = arith.maximumf %46, %47 : vector<2x64xf32>
    %49 = arith.truncf %48 : vector<2x64xf32> to vector<2x64xbf16>
    %c0_28 = arith.constant 0 : index
    %c4 = arith.constant 4 : index
    %c0_29 = arith.constant 0 : index
    %50 = vector.load %arg12[%c0_28, %c4, %c0_29] : memref<1x8x64xbf16, #tpu.memory_space<vmem>>, vector<1x2x64xbf16>
    %51 = vector.shape_cast %50 : vector<1x2x64xbf16> to vector<2x64xbf16>
    %52 = vector.shape_cast %49 : vector<2x64xbf16> to vector<1x2x64xbf16>
    tpu.vector_store %arg12[%c0_28, %c4, %c0_29], %52 {strides = array<i32>} : memref<1x8x64xbf16, #tpu.memory_space<vmem>>, vector<1x2x64xbf16>,
    %cst_30 = arith.constant dense<0.000000e+00> : vector<64xf32>
    %53 = vector.multi_reduction <add>, %48, %cst_30 [0] : vector<2x64xf32> to vector<64xf32>
    %54 = vector.shape_cast %53 : vector<64xf32> to vector<1x64xf32>
    %55 = arith.addf %43, %54 : vector<1x64xf32>
    %56 = vector.extract_strided_slice %19 {offsets = [6, 0], sizes = [2, 64], strides = [1, 1]} : vector<8x64xf32> to vector<2x64xf32>
    %57 = arith.addf %56, %44 : vector<2x64xf32>
    %cst_31 = arith.constant 0.000000e+00 : f32
    %58 = vector.broadcast %cst_31 : f32 to vector<2x64xf32>
    %59 = arith.maximumf %57, %58 : vector<2x64xf32>
    %60 = arith.truncf %59 : vector<2x64xf32> to vector<2x64xbf16>
    %c0_32 = arith.constant 0 : index
    %c6 = arith.constant 6 : index
    %c0_33 = arith.constant 0 : index
    %61 = vector.load %arg12[%c0_32, %c6, %c0_33] : memref<1x8x64xbf16, #tpu.memory_space<vmem>>, vector<1x2x64xbf16>
    %62 = vector.shape_cast %61 : vector<1x2x64xbf16> to vector<2x64xbf16>
    %63 = vector.shape_cast %60 : vector<2x64xbf16> to vector<1x2x64xbf16>
    tpu.vector_store %arg12[%c0_32, %c6, %c0_33], %63 {strides = array<i32>} : memref<1x8x64xbf16, #tpu.memory_space<vmem>>, vector<1x2x64xbf16>,
    %cst_34 = arith.constant dense<0.000000e+00> : vector<64xf32>
    %64 = vector.multi_reduction <add>, %59, %cst_34 [0] : vector<2x64xf32> to vector<64xf32>
    %65 = vector.shape_cast %64 : vector<64xf32> to vector<1x64xf32>
    %66 = arith.addf %55, %65 : vector<1x64xf32>
    %c0_35 = arith.constant 0 : index
    %c0_36 = arith.constant 0 : index
    %67 = vector.load %arg14[%c0_35, %c0_36] : memref<1x64xf32, #tpu.memory_space<vmem>>, vector<1x64xf32>
    tpu.vector_store %arg14[%c0_35, %c0_36], %66 {strides = array<i32>} : memref<1x64xf32, #tpu.memory_space<vmem>>, vector<1x64xf32>,
    %c0_i32_37 = arith.constant 0 : i32
    %68 = arith.cmpi eq, %arg1, %c0_i32_37 : i32
    %69 = arith.extui %68 : i1 to i32
    %c0_i32_38 = arith.constant 0 : i32
    %70 = arith.cmpi ne, %69, %c0_i32_38 : i32
    scf.if %70 {
      %c0_39 = arith.constant 0 : index
      %c0_40 = arith.constant 0 : index
      %71 = vector.load %arg14[%c0_39, %c0_40] : memref<1x64xf32, #tpu.memory_space<vmem>>, vector<1x64xf32>
      %cst_41 = arith.constant 6.250000e-02 : f32
      %72 = vector.broadcast %cst_41 : f32 to vector<1x64xf32>
      %73 = arith.mulf %71, %72 : vector<1x64xf32>
      %74 = arith.truncf %73 : vector<1x64xf32> to vector<1x64xbf16>
      %c0_42 = arith.constant 0 : index
      %c0_43 = arith.constant 0 : index
      %75 = vector.load %arg8[%c0_42, %c0_43] : memref<64x8xbf16, #tpu.memory_space<vmem>>, vector<64x8xbf16>
      %cst_44 = arith.constant dense<0.000000e+00> : vector<1x8xf32>
      %76 = tpu.matmul %74, %75, %cst_44 {dimension_numbers = #tpu.dot_dimension_numbers<[1], [0], [0], [1], [0, 0, 1, 1], [], []>} : vector<1x64xbf16>, vector<64x8xbf16>, vector<1x8xf32> -> vector<1x8xf32>
      %c0_45 = arith.constant 0 : index
      %c0_46 = arith.constant 0 : index
      %77 = vector.load %arg9[%c0_45, %c0_46] : memref<1x8xf32, #tpu.memory_space<vmem>>, vector<1x8xf32>
      %78 = arith.addf %76, %77 : vector<1x8xf32>
      %cst_47 = arith.constant 0.000000e+00 : f32
      %79 = vector.broadcast %cst_47 : f32 to vector<1x8xf32>
      %80 = arith.maximumf %78, %79 : vector<1x8xf32>
      %81 = arith.truncf %80 : vector<1x8xf32> to vector<1x8xbf16>
      %c0_48 = arith.constant 0 : index
      %c0_49 = arith.constant 0 : index
      %82 = vector.load %arg10[%c0_48, %c0_49] : memref<8x32xbf16, #tpu.memory_space<vmem>>, vector<8x32xbf16>
      %cst_50 = arith.constant dense<0.000000e+00> : vector<1x32xf32>
      %83 = tpu.matmul %81, %82, %cst_50 {dimension_numbers = #tpu.dot_dimension_numbers<[1], [0], [0], [1], [0, 0, 1, 1], [], []>} : vector<1x8xbf16>, vector<8x32xbf16>, vector<1x32xf32> -> vector<1x32xf32>
      %c0_51 = arith.constant 0 : index
      %c0_52 = arith.constant 0 : index
      %84 = vector.load %arg11[%c0_51, %c0_52] : memref<1x32xf32, #tpu.memory_space<vmem>>, vector<1x32xf32>
      %85 = arith.addf %83, %84 : vector<1x32xf32>
      %86 = arith.negf %85 : vector<1x32xf32>
      %87 = math.exp %86 : vector<1x32xf32>
      %cst_53 = arith.constant 1.000000e+00 : f32
      %88 = vector.broadcast %cst_53 : f32 to vector<1x32xf32>
      %89 = arith.addf %88, %87 : vector<1x32xf32>
      %90 = arith.divf %88, %89 : vector<1x32xf32>
      %c0_54 = arith.constant 0 : index
      %c0_55 = arith.constant 0 : index
      %c0_56 = arith.constant 0 : index
      %91 = vector.load %arg13[%c0_54, %c0_55, %c0_56] : memref<1x1x32xf32, #tpu.memory_space<vmem>>, vector<1x1x32xf32>
      %92 = vector.shape_cast %91 : vector<1x1x32xf32> to vector<1x32xf32>
      %93 = vector.shape_cast %90 : vector<1x32xf32> to vector<1x1x32xf32>
      tpu.vector_store %arg13[%c0_54, %c0_55, %c0_56], %93 {strides = array<i32>} : memref<1x1x32xf32, #tpu.memory_space<vmem>>, vector<1x1x32xf32>,
    } else {
    }
    return
  }
  func.func @transform_0(%arg0: i32, %arg1: i32) -> (i32, i32, i32) {
    %c0_i32 = arith.constant 0 : i32
    %c0_i32_0 = arith.constant 0 : i32
    return %arg0, %arg1, %c0_i32 : i32, i32, i32
  }
  func.func @transform_1(%arg0: i32, %arg1: i32) -> (i32, i32, i32) {
    %c0_i32 = arith.constant 0 : i32
    %c0_i32_0 = arith.constant 0 : i32
    %c0_i32_1 = arith.constant 0 : i32
    return %arg0, %c0_i32, %c0_i32_0 : i32, i32, i32
  }
  func.func @transform_2(%arg0: i32, %arg1: i32) -> (i32, i32, i32) {
    %c0_i32 = arith.constant 0 : i32
    %c0_i32_0 = arith.constant 0 : i32
    return %arg0, %arg1, %c0_i32 : i32, i32, i32
  }
  func.func @transform_3(%arg0: i32, %arg1: i32) -> (i32, i32) {
    %c0_i32 = arith.constant 0 : i32
    %c0_i32_0 = arith.constant 0 : i32
    %c0_i32_1 = arith.constant 0 : i32
    return %c0_i32, %c0_i32_0 : i32, i32
  }
  func.func @transform_4(%arg0: i32, %arg1: i32) -> (i32, i32) {
    %c0_i32 = arith.constant 0 : i32
    %c0_i32_0 = arith.constant 0 : i32
    %c0_i32_1 = arith.constant 0 : i32
    return %c0_i32, %c0_i32_0 : i32, i32
  }
  func.func @transform_5(%arg0: i32, %arg1: i32) -> (i32, i32) {
    %c0_i32 = arith.constant 0 : i32
    %c0_i32_0 = arith.constant 0 : i32
    %c0_i32_1 = arith.constant 0 : i32
    return %c0_i32, %c0_i32_0 : i32, i32
  }
  func.func @transform_6(%arg0: i32, %arg1: i32) -> (i32, i32) {
    %c0_i32 = arith.constant 0 : i32
    %c0_i32_0 = arith.constant 0 : i32
    %c0_i32_1 = arith.constant 0 : i32
    return %c0_i32, %c0_i32_0 : i32, i32
  }
  func.func @transform_7(%arg0: i32, %arg1: i32) -> (i32, i32) {
    %c0_i32 = arith.constant 0 : i32
    %c0_i32_0 = arith.constant 0 : i32
    %c0_i32_1 = arith.constant 0 : i32
    return %c0_i32, %c0_i32_0 : i32, i32
  }
  func.func @transform_8(%arg0: i32, %arg1: i32) -> (i32, i32) {
    %c0_i32 = arith.constant 0 : i32
    %c0_i32_0 = arith.constant 0 : i32
    %c0_i32_1 = arith.constant 0 : i32
    return %c0_i32, %c0_i32_0 : i32, i32
  }
  func.func @transform_9(%arg0: i32, %arg1: i32) -> (i32, i32) {
    %c0_i32 = arith.constant 0 : i32
    %c0_i32_0 = arith.constant 0 : i32
    %c0_i32_1 = arith.constant 0 : i32
    return %c0_i32, %c0_i32_0 : i32, i32
  }
  func.func @transform_10(%arg0: i32, %arg1: i32) -> (i32, i32, i32) {
    %c0_i32 = arith.constant 0 : i32
    %c0_i32_0 = arith.constant 0 : i32
    return %arg0, %arg1, %c0_i32 : i32, i32, i32
  }
  func.func @transform_11(%arg0: i32, %arg1: i32) -> (i32, i32, i32) {
    %c0_i32 = arith.constant 0 : i32
    %c0_i32_0 = arith.constant 0 : i32
    %c0_i32_1 = arith.constant 0 : i32
    return %arg0, %c0_i32, %c0_i32_0 : i32, i32, i32
  }
}

module attributes {stable_mosaic.version = 11 : i64} {
  func.func @_dec_stage_kernel(%arg0: i32, %arg1: i32, %arg2: memref<1x16x32xbf16, #tpu.memory_space<vmem>>, %arg3: memref<1x32x1xf32, #tpu.memory_space<vmem>>, %arg4: memref<1x32x32xbf16, #tpu.memory_space<vmem>>, %arg5: memref<32x32xbf16, #tpu.memory_space<vmem>>, %arg6: memref<1x32xf32, #tpu.memory_space<vmem>>, %arg7: memref<32x32xbf16, #tpu.memory_space<vmem>>, %arg8: memref<32x4xbf16, #tpu.memory_space<vmem>>, %arg9: memref<1x4xf32, #tpu.memory_space<vmem>>, %arg10: memref<4x16xbf16, #tpu.memory_space<vmem>>, %arg11: memref<1x16xf32, #tpu.memory_space<vmem>>, %arg12: memref<1x32x32xbf16, #tpu.memory_space<vmem>>, %arg13: memref<1x1x16xf32, #tpu.memory_space<vmem>>, %arg14: memref<1x32xf32, #tpu.memory_space<vmem>>) attributes {dimension_semantics = [#tpu.dimension_semantics<parallel>, #tpu.dimension_semantics<arbitrary>], iteration_bounds = array<i64: 2, 1>, scalar_prefetch = 0 : i64, scratch_operands = 1 : i64, tpu.core_type = #tpu.core_type<tc>, window_params = [{transform_indices = @transform_0, window_bounds = array<i64: 1, 16, 32>}, {transform_indices = @transform_1, window_bounds = array<i64: 1, 32, 1>}, {transform_indices = @transform_2, window_bounds = array<i64: 1, 32, 32>}, {pipeline_mode = #tpu.pipeline_mode<synchronous>, transform_indices = @transform_3, window_bounds = array<i64: 32, 32>}, {pipeline_mode = #tpu.pipeline_mode<synchronous>, transform_indices = @transform_4, window_bounds = array<i64: 1, 32>}, {pipeline_mode = #tpu.pipeline_mode<synchronous>, transform_indices = @transform_5, window_bounds = array<i64: 32, 32>}, {pipeline_mode = #tpu.pipeline_mode<synchronous>, transform_indices = @transform_6, window_bounds = array<i64: 32, 4>}, {pipeline_mode = #tpu.pipeline_mode<synchronous>, transform_indices = @transform_7, window_bounds = array<i64: 1, 4>}, {pipeline_mode = #tpu.pipeline_mode<synchronous>, transform_indices = @transform_8, window_bounds = array<i64: 4, 16>}, {pipeline_mode = #tpu.pipeline_mode<synchronous>, transform_indices = @transform_9, window_bounds = array<i64: 1, 16>}, {transform_indices = @transform_10, window_bounds = array<i64: 1, 32, 32>}, {transform_indices = @transform_11, window_bounds = array<i64: 1, 1, 16>}]} {
    %c0_i32 = arith.constant 0 : i32
    %0 = arith.cmpi eq, %arg1, %c0_i32 : i32
    %1 = arith.extui %0 : i1 to i32
    %c0_i32_0 = arith.constant 0 : i32
    %2 = arith.cmpi ne, %1, %c0_i32_0 : i32
    scf.if %2 {
      %cst_55 = arith.constant 0.000000e+00 : f32
      %117 = vector.broadcast %cst_55 : f32 to vector<1x32xf32>
      %c0_56 = arith.constant 0 : index
      %c0_57 = arith.constant 0 : index
      %118 = vector.load %arg14[%c0_56, %c0_57] : memref<1x32xf32, #tpu.memory_space<vmem>>, vector<1x32xf32>
      tpu.vector_store %arg14[%c0_56, %c0_57], %117 {strides = array<i32>} : memref<1x32xf32, #tpu.memory_space<vmem>>, vector<1x32xf32>,
    } else {
    }
    %c0 = arith.constant 0 : index
    %c0_1 = arith.constant 0 : index
    %3 = vector.load %arg5[%c0, %c0_1] : memref<32x32xbf16, #tpu.memory_space<vmem>>, vector<32x32xbf16>
    %4 = arith.extf %3 : vector<32x32xbf16> to vector<32x32xf32>
    %c0_2 = arith.constant 0 : index
    %c0_3 = arith.constant 0 : index
    %c0_4 = arith.constant 0 : index
    %5 = vector.load %arg3[%c0_2, %c0_3, %c0_4] : memref<1x32x1xf32, #tpu.memory_space<vmem>>, vector<1x32x1xf32>
    %6 = vector.shape_cast %5 : vector<1x32x1xf32> to vector<32x1xf32>
    %7 = vector.broadcast %6 : vector<32x1xf32> to vector<32x32xf32>
    %8 = arith.mulf %4, %7 : vector<32x32xf32>
    %9 = arith.truncf %8 : vector<32x32xf32> to vector<32x32xbf16>
    %c0_5 = arith.constant 0 : index
    %c0_6 = arith.constant 0 : index
    %c0_7 = arith.constant 0 : index
    %10 = vector.load %arg2[%c0_5, %c0_6, %c0_7] : memref<1x16x32xbf16, #tpu.memory_space<vmem>>, vector<1x16x32xbf16>
    %11 = vector.shape_cast %10 : vector<1x16x32xbf16> to vector<16x32xbf16>
    %cst = arith.constant dense<0.000000e+00> : vector<16x32xf32>
    %12 = tpu.matmul %11, %9, %cst {dimension_numbers = #tpu.dot_dimension_numbers<[1], [0], [0], [1], [0, 0, 1, 1], [], []>} : vector<16x32xbf16>, vector<32x32xbf16>, vector<16x32xf32> -> vector<16x32xf32>
    %c0_8 = arith.constant 0 : index
    %c0_9 = arith.constant 0 : index
    %13 = vector.load %arg6[%c0_8, %c0_9] : memref<1x32xf32, #tpu.memory_space<vmem>>, vector<1x32xf32>
    %14 = vector.broadcast %13 : vector<1x32xf32> to vector<16x32xf32>
    %15 = arith.addf %12, %14 : vector<16x32xf32>
    %c0_10 = arith.constant 0 : index
    %c0_11 = arith.constant 0 : index
    %c0_12 = arith.constant 0 : index
    %16 = vector.load %arg4[%c0_10, %c0_11, %c0_12] : memref<1x32x32xbf16, #tpu.memory_space<vmem>>, vector<1x32x32xbf16>
    %17 = vector.shape_cast %16 : vector<1x32x32xbf16> to vector<32x32xbf16>
    %c0_13 = arith.constant 0 : index
    %c0_14 = arith.constant 0 : index
    %18 = vector.load %arg7[%c0_13, %c0_14] : memref<32x32xbf16, #tpu.memory_space<vmem>>, vector<32x32xbf16>
    %cst_15 = arith.constant dense<0.000000e+00> : vector<32x32xf32>
    %19 = tpu.matmul %17, %18, %cst_15 {dimension_numbers = #tpu.dot_dimension_numbers<[1], [0], [0], [1], [0, 0, 1, 1], [], []>} : vector<32x32xbf16>, vector<32x32xbf16>, vector<32x32xf32> -> vector<32x32xf32>
    %c0_16 = arith.constant 0 : index
    %c0_17 = arith.constant 0 : index
    %20 = vector.load %arg14[%c0_16, %c0_17] : memref<1x32xf32, #tpu.memory_space<vmem>>, vector<1x32xf32>
    %21 = vector.extract_strided_slice %15 {offsets = [0, 0], sizes = [4, 32], strides = [1, 1]} : vector<16x32xf32> to vector<4x32xf32>
    %22 = vector.extract_strided_slice %19 {offsets = [0, 0], sizes = [4, 32], strides = [1, 1]} : vector<32x32xf32> to vector<4x32xf32>
    %23 = arith.addf %22, %21 : vector<4x32xf32>
    %cst_18 = arith.constant 0.000000e+00 : f32
    %24 = vector.broadcast %cst_18 : f32 to vector<4x32xf32>
    %25 = arith.maximumf %23, %24 : vector<4x32xf32>
    %26 = arith.truncf %25 : vector<4x32xf32> to vector<4x32xbf16>
    %c0_19 = arith.constant 0 : index
    %c0_20 = arith.constant 0 : index
    %c0_21 = arith.constant 0 : index
    %27 = vector.load %arg12[%c0_19, %c0_20, %c0_21] : memref<1x32x32xbf16, #tpu.memory_space<vmem>>, vector<1x4x32xbf16>
    %28 = vector.shape_cast %27 : vector<1x4x32xbf16> to vector<4x32xbf16>
    %29 = vector.shape_cast %26 : vector<4x32xbf16> to vector<1x4x32xbf16>
    tpu.vector_store %arg12[%c0_19, %c0_20, %c0_21], %29 {strides = array<i32>} : memref<1x32x32xbf16, #tpu.memory_space<vmem>>, vector<1x4x32xbf16>,
    %cst_22 = arith.constant dense<0.000000e+00> : vector<32xf32>
    %30 = vector.multi_reduction <add>, %25, %cst_22 [0] : vector<4x32xf32> to vector<32xf32>
    %31 = vector.shape_cast %30 : vector<32xf32> to vector<1x32xf32>
    %32 = arith.addf %20, %31 : vector<1x32xf32>
    %33 = vector.extract_strided_slice %19 {offsets = [4, 0], sizes = [4, 32], strides = [1, 1]} : vector<32x32xf32> to vector<4x32xf32>
    %34 = arith.addf %33, %21 : vector<4x32xf32>
    %cst_23 = arith.constant 0.000000e+00 : f32
    %35 = vector.broadcast %cst_23 : f32 to vector<4x32xf32>
    %36 = arith.maximumf %34, %35 : vector<4x32xf32>
    %37 = arith.truncf %36 : vector<4x32xf32> to vector<4x32xbf16>
    %c0_24 = arith.constant 0 : index
    %c4 = arith.constant 4 : index
    %c0_25 = arith.constant 0 : index
    %38 = vector.load %arg12[%c0_24, %c4, %c0_25] : memref<1x32x32xbf16, #tpu.memory_space<vmem>>, vector<1x4x32xbf16>
    %39 = vector.shape_cast %38 : vector<1x4x32xbf16> to vector<4x32xbf16>
    %40 = vector.shape_cast %37 : vector<4x32xbf16> to vector<1x4x32xbf16>
    tpu.vector_store %arg12[%c0_24, %c4, %c0_25], %40 {strides = array<i32>} : memref<1x32x32xbf16, #tpu.memory_space<vmem>>, vector<1x4x32xbf16>,
    %cst_26 = arith.constant dense<0.000000e+00> : vector<32xf32>
    %41 = vector.multi_reduction <add>, %36, %cst_26 [0] : vector<4x32xf32> to vector<32xf32>
    %42 = vector.shape_cast %41 : vector<32xf32> to vector<1x32xf32>
    %43 = arith.addf %32, %42 : vector<1x32xf32>
    %44 = vector.extract_strided_slice %15 {offsets = [4, 0], sizes = [4, 32], strides = [1, 1]} : vector<16x32xf32> to vector<4x32xf32>
    %45 = vector.extract_strided_slice %19 {offsets = [8, 0], sizes = [4, 32], strides = [1, 1]} : vector<32x32xf32> to vector<4x32xf32>
    %46 = arith.addf %45, %44 : vector<4x32xf32>
    %cst_27 = arith.constant 0.000000e+00 : f32
    %47 = vector.broadcast %cst_27 : f32 to vector<4x32xf32>
    %48 = arith.maximumf %46, %47 : vector<4x32xf32>
    %49 = arith.truncf %48 : vector<4x32xf32> to vector<4x32xbf16>
    %c0_28 = arith.constant 0 : index
    %c8 = arith.constant 8 : index
    %c0_29 = arith.constant 0 : index
    %50 = vector.load %arg12[%c0_28, %c8, %c0_29] : memref<1x32x32xbf16, #tpu.memory_space<vmem>>, vector<1x4x32xbf16>
    %51 = vector.shape_cast %50 : vector<1x4x32xbf16> to vector<4x32xbf16>
    %52 = vector.shape_cast %49 : vector<4x32xbf16> to vector<1x4x32xbf16>
    tpu.vector_store %arg12[%c0_28, %c8, %c0_29], %52 {strides = array<i32>} : memref<1x32x32xbf16, #tpu.memory_space<vmem>>, vector<1x4x32xbf16>,
    %cst_30 = arith.constant dense<0.000000e+00> : vector<32xf32>
    %53 = vector.multi_reduction <add>, %48, %cst_30 [0] : vector<4x32xf32> to vector<32xf32>
    %54 = vector.shape_cast %53 : vector<32xf32> to vector<1x32xf32>
    %55 = arith.addf %43, %54 : vector<1x32xf32>
    %56 = vector.extract_strided_slice %19 {offsets = [12, 0], sizes = [4, 32], strides = [1, 1]} : vector<32x32xf32> to vector<4x32xf32>
    %57 = arith.addf %56, %44 : vector<4x32xf32>
    %cst_31 = arith.constant 0.000000e+00 : f32
    %58 = vector.broadcast %cst_31 : f32 to vector<4x32xf32>
    %59 = arith.maximumf %57, %58 : vector<4x32xf32>
    %60 = arith.truncf %59 : vector<4x32xf32> to vector<4x32xbf16>
    %c0_32 = arith.constant 0 : index
    %c12 = arith.constant 12 : index
    %c0_33 = arith.constant 0 : index
    %61 = vector.load %arg12[%c0_32, %c12, %c0_33] : memref<1x32x32xbf16, #tpu.memory_space<vmem>>, vector<1x4x32xbf16>
    %62 = vector.shape_cast %61 : vector<1x4x32xbf16> to vector<4x32xbf16>
    %63 = vector.shape_cast %60 : vector<4x32xbf16> to vector<1x4x32xbf16>
    tpu.vector_store %arg12[%c0_32, %c12, %c0_33], %63 {strides = array<i32>} : memref<1x32x32xbf16, #tpu.memory_space<vmem>>, vector<1x4x32xbf16>,
    %cst_34 = arith.constant dense<0.000000e+00> : vector<32xf32>
    %64 = vector.multi_reduction <add>, %59, %cst_34 [0] : vector<4x32xf32> to vector<32xf32>
    %65 = vector.shape_cast %64 : vector<32xf32> to vector<1x32xf32>
    %66 = arith.addf %55, %65 : vector<1x32xf32>
    %67 = vector.extract_strided_slice %15 {offsets = [8, 0], sizes = [4, 32], strides = [1, 1]} : vector<16x32xf32> to vector<4x32xf32>
    %68 = vector.extract_strided_slice %19 {offsets = [16, 0], sizes = [4, 32], strides = [1, 1]} : vector<32x32xf32> to vector<4x32xf32>
    %69 = arith.addf %68, %67 : vector<4x32xf32>
    %cst_35 = arith.constant 0.000000e+00 : f32
    %70 = vector.broadcast %cst_35 : f32 to vector<4x32xf32>
    %71 = arith.maximumf %69, %70 : vector<4x32xf32>
    %72 = arith.truncf %71 : vector<4x32xf32> to vector<4x32xbf16>
    %c0_36 = arith.constant 0 : index
    %c16 = arith.constant 16 : index
    %c0_37 = arith.constant 0 : index
    %73 = vector.load %arg12[%c0_36, %c16, %c0_37] : memref<1x32x32xbf16, #tpu.memory_space<vmem>>, vector<1x4x32xbf16>
    %74 = vector.shape_cast %73 : vector<1x4x32xbf16> to vector<4x32xbf16>
    %75 = vector.shape_cast %72 : vector<4x32xbf16> to vector<1x4x32xbf16>
    tpu.vector_store %arg12[%c0_36, %c16, %c0_37], %75 {strides = array<i32>} : memref<1x32x32xbf16, #tpu.memory_space<vmem>>, vector<1x4x32xbf16>,
    %cst_38 = arith.constant dense<0.000000e+00> : vector<32xf32>
    %76 = vector.multi_reduction <add>, %71, %cst_38 [0] : vector<4x32xf32> to vector<32xf32>
    %77 = vector.shape_cast %76 : vector<32xf32> to vector<1x32xf32>
    %78 = arith.addf %66, %77 : vector<1x32xf32>
    %79 = vector.extract_strided_slice %19 {offsets = [20, 0], sizes = [4, 32], strides = [1, 1]} : vector<32x32xf32> to vector<4x32xf32>
    %80 = arith.addf %79, %67 : vector<4x32xf32>
    %cst_39 = arith.constant 0.000000e+00 : f32
    %81 = vector.broadcast %cst_39 : f32 to vector<4x32xf32>
    %82 = arith.maximumf %80, %81 : vector<4x32xf32>
    %83 = arith.truncf %82 : vector<4x32xf32> to vector<4x32xbf16>
    %c0_40 = arith.constant 0 : index
    %c20 = arith.constant 20 : index
    %c0_41 = arith.constant 0 : index
    %84 = vector.load %arg12[%c0_40, %c20, %c0_41] : memref<1x32x32xbf16, #tpu.memory_space<vmem>>, vector<1x4x32xbf16>
    %85 = vector.shape_cast %84 : vector<1x4x32xbf16> to vector<4x32xbf16>
    %86 = vector.shape_cast %83 : vector<4x32xbf16> to vector<1x4x32xbf16>
    tpu.vector_store %arg12[%c0_40, %c20, %c0_41], %86 {strides = array<i32>} : memref<1x32x32xbf16, #tpu.memory_space<vmem>>, vector<1x4x32xbf16>,
    %cst_42 = arith.constant dense<0.000000e+00> : vector<32xf32>
    %87 = vector.multi_reduction <add>, %82, %cst_42 [0] : vector<4x32xf32> to vector<32xf32>
    %88 = vector.shape_cast %87 : vector<32xf32> to vector<1x32xf32>
    %89 = arith.addf %78, %88 : vector<1x32xf32>
    %90 = vector.extract_strided_slice %15 {offsets = [12, 0], sizes = [4, 32], strides = [1, 1]} : vector<16x32xf32> to vector<4x32xf32>
    %91 = vector.extract_strided_slice %19 {offsets = [24, 0], sizes = [4, 32], strides = [1, 1]} : vector<32x32xf32> to vector<4x32xf32>
    %92 = arith.addf %91, %90 : vector<4x32xf32>
    %cst_43 = arith.constant 0.000000e+00 : f32
    %93 = vector.broadcast %cst_43 : f32 to vector<4x32xf32>
    %94 = arith.maximumf %92, %93 : vector<4x32xf32>
    %95 = arith.truncf %94 : vector<4x32xf32> to vector<4x32xbf16>
    %c0_44 = arith.constant 0 : index
    %c24 = arith.constant 24 : index
    %c0_45 = arith.constant 0 : index
    %96 = vector.load %arg12[%c0_44, %c24, %c0_45] : memref<1x32x32xbf16, #tpu.memory_space<vmem>>, vector<1x4x32xbf16>
    %97 = vector.shape_cast %96 : vector<1x4x32xbf16> to vector<4x32xbf16>
    %98 = vector.shape_cast %95 : vector<4x32xbf16> to vector<1x4x32xbf16>
    tpu.vector_store %arg12[%c0_44, %c24, %c0_45], %98 {strides = array<i32>} : memref<1x32x32xbf16, #tpu.memory_space<vmem>>, vector<1x4x32xbf16>,
    %cst_46 = arith.constant dense<0.000000e+00> : vector<32xf32>
    %99 = vector.multi_reduction <add>, %94, %cst_46 [0] : vector<4x32xf32> to vector<32xf32>
    %100 = vector.shape_cast %99 : vector<32xf32> to vector<1x32xf32>
    %101 = arith.addf %89, %100 : vector<1x32xf32>
    %102 = vector.extract_strided_slice %19 {offsets = [28, 0], sizes = [4, 32], strides = [1, 1]} : vector<32x32xf32> to vector<4x32xf32>
    %103 = arith.addf %102, %90 : vector<4x32xf32>
    %cst_47 = arith.constant 0.000000e+00 : f32
    %104 = vector.broadcast %cst_47 : f32 to vector<4x32xf32>
    %105 = arith.maximumf %103, %104 : vector<4x32xf32>
    %106 = arith.truncf %105 : vector<4x32xf32> to vector<4x32xbf16>
    %c0_48 = arith.constant 0 : index
    %c28 = arith.constant 28 : index
    %c0_49 = arith.constant 0 : index
    %107 = vector.load %arg12[%c0_48, %c28, %c0_49] : memref<1x32x32xbf16, #tpu.memory_space<vmem>>, vector<1x4x32xbf16>
    %108 = vector.shape_cast %107 : vector<1x4x32xbf16> to vector<4x32xbf16>
    %109 = vector.shape_cast %106 : vector<4x32xbf16> to vector<1x4x32xbf16>
    tpu.vector_store %arg12[%c0_48, %c28, %c0_49], %109 {strides = array<i32>} : memref<1x32x32xbf16, #tpu.memory_space<vmem>>, vector<1x4x32xbf16>,
    %cst_50 = arith.constant dense<0.000000e+00> : vector<32xf32>
    %110 = vector.multi_reduction <add>, %105, %cst_50 [0] : vector<4x32xf32> to vector<32xf32>
    %111 = vector.shape_cast %110 : vector<32xf32> to vector<1x32xf32>
    %112 = arith.addf %101, %111 : vector<1x32xf32>
    %c0_51 = arith.constant 0 : index
    %c0_52 = arith.constant 0 : index
    %113 = vector.load %arg14[%c0_51, %c0_52] : memref<1x32xf32, #tpu.memory_space<vmem>>, vector<1x32xf32>
    tpu.vector_store %arg14[%c0_51, %c0_52], %112 {strides = array<i32>} : memref<1x32xf32, #tpu.memory_space<vmem>>, vector<1x32xf32>,
    %c0_i32_53 = arith.constant 0 : i32
    %114 = arith.cmpi eq, %arg1, %c0_i32_53 : i32
    %115 = arith.extui %114 : i1 to i32
    %c0_i32_54 = arith.constant 0 : i32
    %116 = arith.cmpi ne, %115, %c0_i32_54 : i32
    scf.if %116 {
      %c0_55 = arith.constant 0 : index
      %c0_56 = arith.constant 0 : index
      %117 = vector.load %arg14[%c0_55, %c0_56] : memref<1x32xf32, #tpu.memory_space<vmem>>, vector<1x32xf32>
      %cst_57 = arith.constant 1.562500e-02 : f32
      %118 = vector.broadcast %cst_57 : f32 to vector<1x32xf32>
      %119 = arith.mulf %117, %118 : vector<1x32xf32>
      %120 = arith.truncf %119 : vector<1x32xf32> to vector<1x32xbf16>
      %c0_58 = arith.constant 0 : index
      %c0_59 = arith.constant 0 : index
      %121 = vector.load %arg8[%c0_58, %c0_59] : memref<32x4xbf16, #tpu.memory_space<vmem>>, vector<32x4xbf16>
      %cst_60 = arith.constant dense<0.000000e+00> : vector<1x4xf32>
      %122 = tpu.matmul %120, %121, %cst_60 {dimension_numbers = #tpu.dot_dimension_numbers<[1], [0], [0], [1], [0, 0, 1, 1], [], []>} : vector<1x32xbf16>, vector<32x4xbf16>, vector<1x4xf32> -> vector<1x4xf32>
      %c0_61 = arith.constant 0 : index
      %c0_62 = arith.constant 0 : index
      %123 = vector.load %arg9[%c0_61, %c0_62] : memref<1x4xf32, #tpu.memory_space<vmem>>, vector<1x4xf32>
      %124 = arith.addf %122, %123 : vector<1x4xf32>
      %cst_63 = arith.constant 0.000000e+00 : f32
      %125 = vector.broadcast %cst_63 : f32 to vector<1x4xf32>
      %126 = arith.maximumf %124, %125 : vector<1x4xf32>
      %127 = arith.truncf %126 : vector<1x4xf32> to vector<1x4xbf16>
      %c0_64 = arith.constant 0 : index
      %c0_65 = arith.constant 0 : index
      %128 = vector.load %arg10[%c0_64, %c0_65] : memref<4x16xbf16, #tpu.memory_space<vmem>>, vector<4x16xbf16>
      %cst_66 = arith.constant dense<0.000000e+00> : vector<1x16xf32>
      %129 = tpu.matmul %127, %128, %cst_66 {dimension_numbers = #tpu.dot_dimension_numbers<[1], [0], [0], [1], [0, 0, 1, 1], [], []>} : vector<1x4xbf16>, vector<4x16xbf16>, vector<1x16xf32> -> vector<1x16xf32>
      %c0_67 = arith.constant 0 : index
      %c0_68 = arith.constant 0 : index
      %130 = vector.load %arg11[%c0_67, %c0_68] : memref<1x16xf32, #tpu.memory_space<vmem>>, vector<1x16xf32>
      %131 = arith.addf %129, %130 : vector<1x16xf32>
      %132 = arith.negf %131 : vector<1x16xf32>
      %133 = math.exp %132 : vector<1x16xf32>
      %cst_69 = arith.constant 1.000000e+00 : f32
      %134 = vector.broadcast %cst_69 : f32 to vector<1x16xf32>
      %135 = arith.addf %134, %133 : vector<1x16xf32>
      %136 = arith.divf %134, %135 : vector<1x16xf32>
      %c0_70 = arith.constant 0 : index
      %c0_71 = arith.constant 0 : index
      %c0_72 = arith.constant 0 : index
      %137 = vector.load %arg13[%c0_70, %c0_71, %c0_72] : memref<1x1x16xf32, #tpu.memory_space<vmem>>, vector<1x1x16xf32>
      %138 = vector.shape_cast %137 : vector<1x1x16xf32> to vector<1x16xf32>
      %139 = vector.shape_cast %136 : vector<1x16xf32> to vector<1x1x16xf32>
      tpu.vector_store %arg13[%c0_70, %c0_71, %c0_72], %139 {strides = array<i32>} : memref<1x1x16xf32, #tpu.memory_space<vmem>>, vector<1x1x16xf32>,
    } else {
    }
    return
  }
  func.func @transform_0(%arg0: i32, %arg1: i32) -> (i32, i32, i32) {
    %c0_i32 = arith.constant 0 : i32
    %c0_i32_0 = arith.constant 0 : i32
    return %arg0, %arg1, %c0_i32 : i32, i32, i32
  }
  func.func @transform_1(%arg0: i32, %arg1: i32) -> (i32, i32, i32) {
    %c0_i32 = arith.constant 0 : i32
    %c0_i32_0 = arith.constant 0 : i32
    %c0_i32_1 = arith.constant 0 : i32
    return %arg0, %c0_i32, %c0_i32_0 : i32, i32, i32
  }
  func.func @transform_2(%arg0: i32, %arg1: i32) -> (i32, i32, i32) {
    %c0_i32 = arith.constant 0 : i32
    %c0_i32_0 = arith.constant 0 : i32
    return %arg0, %arg1, %c0_i32 : i32, i32, i32
  }
  func.func @transform_3(%arg0: i32, %arg1: i32) -> (i32, i32) {
    %c0_i32 = arith.constant 0 : i32
    %c0_i32_0 = arith.constant 0 : i32
    %c0_i32_1 = arith.constant 0 : i32
    return %c0_i32, %c0_i32_0 : i32, i32
  }
  func.func @transform_4(%arg0: i32, %arg1: i32) -> (i32, i32) {
    %c0_i32 = arith.constant 0 : i32
    %c0_i32_0 = arith.constant 0 : i32
    %c0_i32_1 = arith.constant 0 : i32
    return %c0_i32, %c0_i32_0 : i32, i32
  }
  func.func @transform_5(%arg0: i32, %arg1: i32) -> (i32, i32) {
    %c0_i32 = arith.constant 0 : i32
    %c0_i32_0 = arith.constant 0 : i32
    %c0_i32_1 = arith.constant 0 : i32
    return %c0_i32, %c0_i32_0 : i32, i32
  }
  func.func @transform_6(%arg0: i32, %arg1: i32) -> (i32, i32) {
    %c0_i32 = arith.constant 0 : i32
    %c0_i32_0 = arith.constant 0 : i32
    %c0_i32_1 = arith.constant 0 : i32
    return %c0_i32, %c0_i32_0 : i32, i32
  }
  func.func @transform_7(%arg0: i32, %arg1: i32) -> (i32, i32) {
    %c0_i32 = arith.constant 0 : i32
    %c0_i32_0 = arith.constant 0 : i32
    %c0_i32_1 = arith.constant 0 : i32
    return %c0_i32, %c0_i32_0 : i32, i32
  }
  func.func @transform_8(%arg0: i32, %arg1: i32) -> (i32, i32) {
    %c0_i32 = arith.constant 0 : i32
    %c0_i32_0 = arith.constant 0 : i32
    %c0_i32_1 = arith.constant 0 : i32
    return %c0_i32, %c0_i32_0 : i32, i32
  }
  func.func @transform_9(%arg0: i32, %arg1: i32) -> (i32, i32) {
    %c0_i32 = arith.constant 0 : i32
    %c0_i32_0 = arith.constant 0 : i32
    %c0_i32_1 = arith.constant 0 : i32
    return %c0_i32, %c0_i32_0 : i32, i32
  }
  func.func @transform_10(%arg0: i32, %arg1: i32) -> (i32, i32, i32) {
    %c0_i32 = arith.constant 0 : i32
    %c0_i32_0 = arith.constant 0 : i32
    return %arg0, %arg1, %c0_i32 : i32, i32, i32
  }
  func.func @transform_11(%arg0: i32, %arg1: i32) -> (i32, i32, i32) {
    %c0_i32 = arith.constant 0 : i32
    %c0_i32_0 = arith.constant 0 : i32
    %c0_i32_1 = arith.constant 0 : i32
    return %arg0, %c0_i32, %c0_i32_0 : i32, i32, i32
  }
}

module attributes {stable_mosaic.version = 11 : i64} {
  func.func @_head_kernel(%arg0: i32, %arg1: i32, %arg2: memref<1x64x16xbf16, #tpu.memory_space<vmem>>, %arg3: memref<1x16x1xf32, #tpu.memory_space<vmem>>, %arg4: memref<16x128xbf16, #tpu.memory_space<vmem>>, %arg5: memref<1x128xf32, #tpu.memory_space<vmem>>, %arg6: memref<1x64x128xf32, #tpu.memory_space<vmem>>) attributes {dimension_semantics = [#tpu.dimension_semantics<parallel>, #tpu.dimension_semantics<parallel>], iteration_bounds = array<i64: 2, 1>, scalar_prefetch = 0 : i64, scratch_operands = 0 : i64, tpu.core_type = #tpu.core_type<tc>, window_params = [{transform_indices = @transform_0, window_bounds = array<i64: 1, 64, 16>}, {transform_indices = @transform_1, window_bounds = array<i64: 1, 16, 1>}, {pipeline_mode = #tpu.pipeline_mode<synchronous>, transform_indices = @transform_2, window_bounds = array<i64: 16, 128>}, {pipeline_mode = #tpu.pipeline_mode<synchronous>, transform_indices = @transform_3, window_bounds = array<i64: 1, 128>}, {transform_indices = @transform_4, window_bounds = array<i64: 1, 64, 128>}]} {
    %c0 = arith.constant 0 : index
    %c0_0 = arith.constant 0 : index
    %0 = vector.load %arg4[%c0, %c0_0] : memref<16x128xbf16, #tpu.memory_space<vmem>>, vector<16x128xbf16>
    %1 = arith.extf %0 : vector<16x128xbf16> to vector<16x128xf32>
    %c0_1 = arith.constant 0 : index
    %c0_2 = arith.constant 0 : index
    %c0_3 = arith.constant 0 : index
    %2 = vector.load %arg3[%c0_1, %c0_2, %c0_3] : memref<1x16x1xf32, #tpu.memory_space<vmem>>, vector<1x16x1xf32>
    %3 = vector.shape_cast %2 : vector<1x16x1xf32> to vector<16x1xf32>
    %4 = vector.broadcast %3 : vector<16x1xf32> to vector<16x128xf32>
    %5 = arith.mulf %1, %4 : vector<16x128xf32>
    %6 = arith.truncf %5 : vector<16x128xf32> to vector<16x128xbf16>
    %c0_4 = arith.constant 0 : index
    %c0_5 = arith.constant 0 : index
    %c0_6 = arith.constant 0 : index
    %7 = vector.load %arg2[%c0_4, %c0_5, %c0_6] : memref<1x64x16xbf16, #tpu.memory_space<vmem>>, vector<1x64x16xbf16>
    %8 = vector.shape_cast %7 : vector<1x64x16xbf16> to vector<64x16xbf16>
    %cst = arith.constant dense<0.000000e+00> : vector<64x128xf32>
    %9 = tpu.matmul %8, %6, %cst {dimension_numbers = #tpu.dot_dimension_numbers<[1], [0], [0], [1], [0, 0, 1, 1], [], []>} : vector<64x16xbf16>, vector<16x128xbf16>, vector<64x128xf32> -> vector<64x128xf32>
    %c0_7 = arith.constant 0 : index
    %c0_8 = arith.constant 0 : index
    %10 = vector.load %arg5[%c0_7, %c0_8] : memref<1x128xf32, #tpu.memory_space<vmem>>, vector<1x128xf32>
    %11 = vector.broadcast %10 : vector<1x128xf32> to vector<64x128xf32>
    %12 = arith.addf %9, %11 : vector<64x128xf32>
    %c0_9 = arith.constant 0 : index
    %c0_10 = arith.constant 0 : index
    %c0_11 = arith.constant 0 : index
    %13 = vector.load %arg6[%c0_9, %c0_10, %c0_11] : memref<1x64x128xf32, #tpu.memory_space<vmem>>, vector<1x64x128xf32>
    %14 = vector.shape_cast %13 : vector<1x64x128xf32> to vector<64x128xf32>
    %15 = vector.shape_cast %12 : vector<64x128xf32> to vector<1x64x128xf32>
    tpu.vector_store %arg6[%c0_9, %c0_10, %c0_11], %15 {strides = array<i32>} : memref<1x64x128xf32, #tpu.memory_space<vmem>>, vector<1x64x128xf32>,
    return
  }
  func.func @transform_0(%arg0: i32, %arg1: i32) -> (i32, i32, i32) {
    %c0_i32 = arith.constant 0 : i32
    %c0_i32_0 = arith.constant 0 : i32
    return %arg0, %arg1, %c0_i32 : i32, i32, i32
  }
  func.func @transform_1(%arg0: i32, %arg1: i32) -> (i32, i32, i32) {
    %c0_i32 = arith.constant 0 : i32
    %c0_i32_0 = arith.constant 0 : i32
    %c0_i32_1 = arith.constant 0 : i32
    return %arg0, %c0_i32, %c0_i32_0 : i32, i32, i32
  }
  func.func @transform_2(%arg0: i32, %arg1: i32) -> (i32, i32) {
    %c0_i32 = arith.constant 0 : i32
    %c0_i32_0 = arith.constant 0 : i32
    %c0_i32_1 = arith.constant 0 : i32
    return %c0_i32, %c0_i32_0 : i32, i32
  }
  func.func @transform_3(%arg0: i32, %arg1: i32) -> (i32, i32) {
    %c0_i32 = arith.constant 0 : i32
    %c0_i32_0 = arith.constant 0 : i32
    %c0_i32_1 = arith.constant 0 : i32
    return %c0_i32, %c0_i32_0 : i32, i32
  }
  func.func @transform_4(%arg0: i32, %arg1: i32) -> (i32, i32, i32) {
    %c0_i32 = arith.constant 0 : i32
    %c0_i32_0 = arith.constant 0 : i32
    return %arg0, %arg1, %c0_i32 : i32, i32, i32
  }
}

</mosaic_0001>

<bundles_post_ra>
// kernel: mcavm_unet_forward.8
= control target key start
LH: loop header
LB: loop body
LE: loop exit
PB: predicated region body
PF: predicated region fallthrough
CT: control target
= control target key end

     0   :  { %s972_s18 = smov 0   ;;  %s974_s19 = smov 0   ;;  %s1157_s0 = inlined_call_operand.vmem [shape: bf16[2,64,48], index: 0, kind: input, shape index: {}]   ;;  %s1158_s1 = inlined_call_operand.vmem [shape: bf16[48,16], index: 1, kind: input, shape index: {}]   ;;  %s1159_s2 = inlined_call_operand.vmem [shape: f32[1,16], index: 2, kind: input, shape index: {}]   ;;  %s1160_s3 = inlined_call_operand.vmem [shape: bf16[16,16], index: 3, kind: input, shape index: {}]   ;;  %s1161_s4 = inlined_call_operand.vmem [shape: f32[1,16], index: 4, kind: input, shape index: {}]   ;;  %s1162_s5 = inlined_call_operand.vmem [shape: bf16[2,64,16], index: 5, kind: output, shape index: {}]  }
   0x1   :  { %s976_s20 = smov 0  }
   0x2 LB: > { %s27_s21 = sadd.s32 1, %s936_s19  ;;  %p775_p0 = scmp.ge.s32.totalorder %s940_s20, 1  ;;  %s940_s20 = sphi %s976_s20, %s15_s20   ;;  %s936_s19 = sphi %s974_s19, %s1164_s19   ;;  %s932_s18 = sphi %s972_s18, %s1163_s18  }
   0x3   : > { %p29_p1 = scmp.ge.s32.totalorder %s27_s21, 2  ;;  %p208_p2 = scmp.lt.s32.totalorder %s940_s20, 3 }
   0x5   : > { %s1166_s21 = smov (%p29_p1, %s27_s21), 0  ;;  %p209_p3 = pnand %p775_p0, %p208_p2 }
   0x6   : > { %p245_p4 = scmp.lt.s32.totalorder (!%p209_p3), %s932_s18, 1 }
   0x7   : > { %212 = sbr.rel (%p209_p3) target bundleno = 501 (0x1f5), region = 40 }
   0xc   : > { %v878_v0 = vld [vmem:[%s1158_s1 + $0x10] sm:$0xff]   ;;  %v879_v1 = vld [vmem:[%s1158_s1 + $0x8] sm:$0xff]   ;;  %s1168_s18 = smov (!%p245_p4, %s932_s18), 1  ;;  %v880_v2 = vld [vmem:[%s1158_s1] sm:$0xff]   ;;  %vm324_vm0 = vcmask 392192   ;;  %vm493_vm1 = vcmask 130048  }
   0xd   : > { %830 = vmatprep.subr.bf16.mxu0 %v878_v0  ;;  %s808_s28 = sshll.u32 %s1168_s18, 5  ;;  %v885_v7 = vld [vmem:[%s1160_s3] sm:$0xff]   ;;  %vm675_vm2 = vcmask 125952  }
   0xe   : > { %831 = vmatpush3.bf16.msra.mxu0 %v878_v0  ;;  %s252_s6 = scalar_lea.vmem %s1157_s0, %s808_s28  ;;  %844 = vmatprep.subr.bf16.mxu1 %v885_v7  ;;  %v780_v8 = vld [vmem:[%s1159_s2] ss:$0 sm:$0xff]  ;;  %s1123_s15 = scalar_lea.vmem %s1162_s5, %s808_s28 }
   0xf   : > { %832 = vmatprep.subr.bf16.mxu0 %v879_v1  ;;  %v881_v3 = vld [vmem:[%s252_s6] sm:$0xff]   ;;  %v882_v4 = vld [vmem:[%s252_s6 + $0x8] sm:$0xff]   ;;  %v883_v5 = vld [vmem:[%s252_s6 + $0x10] sm:$0xff]   ;;  %845 = vmatpush3.bf16.msra.mxu1 %v885_v7 }
  0x10   : > { %836 = vmatprep.mubr.msk.bf16.mxu0 %vm324_vm0, %v881_v3  ;;  %v884_v6 = vld [vmem:[%s252_s6 + $0x18] sm:$0xff]  }
  0x12   : > { %833 = vmatpush3.bf16.msra.mxu0 %v879_v1 }
  0x13   : > { %834 = vmatprep.subr.bf16.mxu0 %v880_v2 }
  0x16   : > { %835 = vmatpush3.bf16.msra.mxu0 %v880_v2 }
  0x19   : > { %837 = vmatmul.mubr.msk.bf16.vlgmr.msra.gmra.mxu0 %vm324_vm0, %v882_v4 }
  0x1a   : > { %840 = vmatprep.mubr.msk.bf16.mxu0 %vm324_vm0, %v883_v5 }
  0x21   : > { %841 = vmatmul.mubr.msk.bf16.gmra.mxu0 %vm324_vm0, %v884_v6 }
  0xd9   : > { %v838_v9 = vpop.f32.mrf.mxu0 }
  0xda   : > { %v1013_v10 = vadd.f32 %v838_v9, %v780_v8 }
  0xdb   : > { %v371_v11 = vpop.f32.mrf.mxu0 }
  0xdc   : > { %v404_v12 = vmul.f32 %v1013_v10, %v1013_v10  ;;  %v1017_v13 = vadd.f32 %v780_v8, %v371_v11 }
  0xdd   : > { %v839_v14 = vpop.f32.mrf.mxu0 }
  0xde   : > { %v412_v15 = vmul.f32 %v404_v12, %v1013_v10  ;;  %v402_v16 = vmul.f32 %v1017_v13, %v1017_v13  ;;  %v1022_v17 = vadd.f32 %v839_v14, %v780_v8 }
  0xdf   : > { %v374_v18 = vpop.f32.mrf.mxu0 }
  0xe0   : > { %v420_v19 = vmul.f32 0.044715, %v412_v15  ;;  %v410_v20 = vmul.f32 %v402_v16, %v1017_v13  ;;  %v405_v21 = vmul.f32 %v1022_v17, %v1022_v17  ;;  %v1027_v22 = vadd.f32 %v780_v8, %v374_v18 }
  0xe1   : > { %v842_v23 = vpop.f32.mrf.mxu0 }
  0xe2   : > { %v428_v24 = vadd.f32 %v420_v19, %v1013_v10  ;;  %v418_v25 = vmul.f32 0.044715, %v410_v20  ;;  %v413_v26 = vmul.f32 %v405_v21, %v1022_v17  ;;  %v403_v27 = vmul.f32 %v1027_v22, %v1027_v22 }
  0xe3   : > { %v1033_v28 = vadd.f32 %v842_v23, %v780_v8  ;;  %v387_v29 = vpop.f32.mrf.mxu0 }
  0xe4   : > { %v436_v30 = vmul.f32 0.7978846, %v428_v24  ;;  %v426_v31 = vadd.f32 %v418_v25, %v1017_v13  ;;  %v421_v32 = vmul.f32 0.044715, %v413_v26  ;;  %v411_v33 = vmul.f32 %v403_v27, %v1027_v22 }
  0xe5   : > { %v408_v34 = vmul.f32 %v1033_v28, %v1033_v28  ;;  %v1039_v35 = vadd.f32 %v780_v8, %v387_v29  ;;  %v843_v36 = vpop.f32.mrf.mxu0 }
  0xe6   : > { %v434_v37 = vmul.f32 0.7978846, %v426_v31  ;;  %v429_v38 = vadd.f32 %v421_v32, %v1022_v17  ;;  %v419_v39 = vmul.f32 0.044715, %v411_v33  ;;  %886 = vtanh.f32 %v436_v30 }
  0xe7   : > { %v416_v40 = vmul.f32 %v408_v34, %v1033_v28  ;;  %v406_v41 = vmul.f32 %v1039_v35, %v1039_v35  ;;  %v1045_v42 = vadd.f32 %v843_v36, %v780_v8  ;;  %v390_v43 = vpop.f32.mrf.mxu0 }
  0xe8   : > { %v437_v44 = vmul.f32 0.7978846, %v429_v38  ;;  %v427_v45 = vadd.f32 %v419_v39, %v1027_v22  ;;  %v391_v46 = vadd.f32 %v780_v8, %v390_v43  ;;  %888 = vtanh.f32 %v434_v37  ;;  %v792_v39 = vld [vmem:[%s1161_s4] ss:$0 sm:$0xff] }
  0xe9   : > { %v424_v47 = vmul.f32 0.044715, %v416_v40  ;;  %v414_v48 = vmul.f32 %v406_v41, %v1039_v35  ;;  %v409_v49 = vmul.f32 %v1045_v42, %v1045_v42 }
  0xea   : > { %890 = vtanh.f32 %v437_v44  ;;  %v435_v50 = vmul.f32 0.7978846, %v427_v45  ;;  %v407_v51 = vmul.f32 %v391_v46, %v391_v46 }
  0xeb   : > { %v432_v52 = vadd.f32 %v424_v47, %v1033_v28  ;;  %v422_v53 = vmul.f32 0.044715, %v414_v48  ;;  %v417_v54 = vmul.f32 %v409_v49, %v1045_v42 }
  0xec   : > { %v415_v55 = vmul.f32 %v407_v51, %v391_v46  ;;  %892 = vtanh.f32 %v435_v50 }
  0xed   : > { %v440_v56 = vmul.f32 0.7978846, %v432_v52  ;;  %v430_v57 = vadd.f32 %v422_v53, %v1039_v35  ;;  %v425_v58 = vmul.f32 0.044715, %v417_v54 }
  0xee   : > { %v423_v59 = vmul.f32 0.044715, %v415_v55 }
  0xef   : > { %894 = vtanh.f32 %v440_v56  ;;  %v438_v60 = vmul.f32 0.7978846, %v430_v57  ;;  %v433_v61 = vadd.f32 %v425_v58, %v1045_v42 }
  0xf0   : > { %v431_v62 = vadd.f32 %v423_v59, %v391_v46 }
  0xf1   : > { %896 = vtanh.f32 %v438_v60  ;;  %v441_v63 = vmul.f32 0.7978846, %v433_v61 }
  0xf2   : > { %v439_v0 = vmul.f32 0.7978846, %v431_v62 }
  0xf3   : > { %898 = vtanh.f32 %v441_v63  ;;  %v887_v1 = vpop.eup %886 }
  0xf4   : > { %900 = vtanh.f32 %v439_v0  ;;  %v452_v5 = vadd.f32 1.0, %v887_v1 }
  0xf5   : > { %v889_v2 = vpop.eup %888 }
  0xf6   : > { %v450_v3 = vadd.f32 1.0, %v889_v2  ;;  %v460_v12 = vmul.f32 0.5, %v452_v5 }
  0xf7   : > { %v891_v4 = vpop.eup %890 }
  0xf8   : > { %v453_v6 = vadd.f32 1.0, %v891_v4  ;;  %v458_v11 = vmul.f32 0.5, %v450_v3  ;;  %v468_v21 = vmul.f32 %v460_v12, %v1013_v10 }
  0xf9   : > { %v893_v7 = vpop.eup %892 }
  0xfa   : > { %v461_v8 = vmul.f32 0.5, %v453_v6  ;;  %v451_v9 = vadd.f32 1.0, %v893_v7  ;;  %v466_v19 = vmul.f32 %v458_v11, %v1017_v13 }
  0xfc   : > { %v895_v14 = vpop.eup %894  ;;  %v459_v15 = vmul.f32 0.5, %v451_v9  ;;  %v469_v16 = vmul.f32 %v461_v8, %v1022_v17 }
  0xfd   : > { %v456_v23 = vadd.f32 1.0, %v895_v14 }
  0xfe   : > { %v897_v18 = vpop.eup %896  ;;  %v467_v20 = vmul.f32 %v459_v15, %v1027_v22  ;;  %v475_v30 = vpack.c.bf16 %v469_v16, %v468_v21 }
  0xff   : > { %v454_v24 = vadd.f32 1.0, %v897_v18  ;;  %v464_v17 = vmul.f32 0.5, %v456_v23 }
 0x100   : > { %v899_v25 = vpop.eup %898  ;;  %v474_v26 = vpack.c.bf16 %v467_v20, %v466_v19 }
 0x101   : > { %v901_v27 = vpop.eup %900  ;;  %v457_v29 = vadd.f32 1.0, %v899_v25  ;;  %v462_v31 = vmul.f32 0.5, %v454_v24  ;;  %v472_v36 = vmul.f32 %v464_v17, %v1033_v28 }
 0x102   : > { %v455_v32 = vadd.f32 1.0, %v901_v27  ;;  %846 = vmatprep.mubr.msk.bf16.mxu1 %vm493_vm1, %v474_v26 }
 0x103   : > { %v465_v33 = vmul.f32 0.5, %v457_v29  ;;  %847 = vmatmul.mubr.msk.bf16.vlgmr.msra.gmra.mxu1 %vm493_vm1, %v475_v30  ;;  %v470_v10 = vmul.f32 %v462_v31, %v1039_v35 }
 0x104   : > { %v463_v13 = vmul.f32 0.5, %v455_v32 }
 0x105   : > { %v473_v22 = vmul.f32 %v465_v33, %v1045_v42 }
 0x106   : > { %v471_v34 = vmul.f32 %v463_v13, %v391_v46 }
 0x107   : > { %v477_v38 = vpack.c.bf16 %v473_v22, %v472_v36 }
 0x108   : > { %v476_v37 = vpack.c.bf16 %v471_v34, %v470_v10 }
 0x10a   : > { %850 = vmatprep.mubr.msk.bf16.mxu1 %vm493_vm1, %v476_v37 }
 0x10b   : > { %851 = vmatmul.mubr.msk.bf16.gmra.mxu1 %vm493_vm1, %v477_v38 }
 0x1c3   : > { %v848_v40 = vpop.f32.mrf.mxu1 }
 0x1c4   : > { %v1069_v41 = vadd.f32 %v848_v40, %v792_v39 }
 0x1c5   : > { %v540_v43 = vpop.f32.mrf.mxu1 }
 0x1c6   : > { %v573_v35 = vmul.f32 %v1069_v41, %v1069_v41  ;;  %v1073_v42 = vadd.f32 %v792_v39, %v540_v43 }
 0x1c7   : > { %v849_v28 = vpop.f32.mrf.mxu1 }
 0x1c8   : > { %v581_v44 = vmul.f32 %v573_v35, %v1069_v41  ;;  %v571_v45 = vmul.f32 %v1073_v42, %v1073_v42  ;;  %v1078_v46 = vadd.f32 %v849_v28, %v792_v39 }
 0x1c9   : > { %v543_v47 = vpop.f32.mrf.mxu1 }
 0x1ca   : > { %v589_v48 = vmul.f32 0.044715, %v581_v44  ;;  %v579_v49 = vmul.f32 %v571_v45, %v1073_v42  ;;  %v574_v50 = vmul.f32 %v1078_v46, %v1078_v46  ;;  %v1083_v51 = vadd.f32 %v792_v39, %v543_v47 }
 0x1cb   : > { %v852_v52 = vpop.f32.mrf.mxu1 }
 0x1cc   : > { %v597_v53 = vadd.f32 %v589_v48, %v1069_v41  ;;  %v587_v54 = vmul.f32 0.044715, %v579_v49  ;;  %v582_v55 = vmul.f32 %v574_v50, %v1078_v46  ;;  %v572_v56 = vmul.f32 %v1083_v51, %v1083_v51 }
 0x1cd   : > { %v1089_v57 = vadd.f32 %v852_v52, %v792_v39  ;;  %v556_v58 = vpop.f32.mrf.mxu1 }
 0x1ce   : > { %v605_v59 = vmul.f32 0.7978846, %v597_v53  ;;  %v595_v60 = vadd.f32 %v587_v54, %v1073_v42  ;;  %v590_v61 = vmul.f32 0.044715, %v582_v55  ;;  %v580_v62 = vmul.f32 %v572_v56, %v1083_v51 }
 0x1cf   : > { %v577_v63 = vmul.f32 %v1089_v57, %v1089_v57  ;;  %v1095_v0 = vadd.f32 %v792_v39, %v556_v58  ;;  %v853_v1 = vpop.f32.mrf.mxu1 }
 0x1d0   : > { %902 = vtanh.f32 %v605_v59  ;;  %v603_v2 = vmul.f32 0.7978846, %v595_v60  ;;  %v598_v3 = vadd.f32 %v590_v61, %v1078_v46  ;;  %v588_v4 = vmul.f32 0.044715, %v580_v62 }
 0x1d1   : > { %v585_v5 = vmul.f32 %v577_v63, %v1089_v57  ;;  %v575_v6 = vmul.f32 %v1095_v0, %v1095_v0  ;;  %v1101_v7 = vadd.f32 %v853_v1, %v792_v39  ;;  %v559_v8 = vpop.f32.mrf.mxu1 }
 0x1d2   : > { %904 = vtanh.f32 %v603_v2  ;;  %v606_v9 = vmul.f32 0.7978846, %v598_v3  ;;  %v596_v11 = vadd.f32 %v588_v4, %v1083_v51  ;;  %v1104_v12 = vadd.f32 %v792_v39, %v559_v8 }
 0x1d3   : > { %v593_v14 = vmul.f32 0.044715, %v585_v5  ;;  %v583_v15 = vmul.f32 %v575_v6, %v1095_v0  ;;  %v578_v16 = vmul.f32 %v1101_v7, %v1101_v7 }
 0x1d4   : > { %906 = vtanh.f32 %v606_v9  ;;  %v604_v18 = vmul.f32 0.7978846, %v596_v11  ;;  %v576_v19 = vmul.f32 %v1104_v12, %v1104_v12 }
 0x1d5   : > { %v601_v20 = vadd.f32 %v593_v14, %v1089_v57  ;;  %v591_v21 = vmul.f32 0.044715, %v583_v15  ;;  %v586_v23 = vmul.f32 %v578_v16, %v1101_v7 }
 0x1d6   : > { %908 = vtanh.f32 %v604_v18  ;;  %v584_v24 = vmul.f32 %v576_v19, %v1104_v12 }
 0x1d7   : > { %v609_v25 = vmul.f32 0.7978846, %v601_v20  ;;  %v599_v26 = vadd.f32 %v591_v21, %v1095_v0  ;;  %v594_v27 = vmul.f32 0.044715, %v586_v23 }
 0x1d8   : > { %v592_v29 = vmul.f32 0.044715, %v584_v24 }
 0x1d9   : > { %910 = vtanh.f32 %v609_v25  ;;  %v607_v30 = vmul.f32 0.7978846, %v599_v26  ;;  %v602_v31 = vadd.f32 %v594_v27, %v1101_v7 }
 0x1da   : > { %v600_v32 = vadd.f32 %v592_v29, %v1104_v12 }
 0x1db   : > { %912 = vtanh.f32 %v607_v30  ;;  %v610_v17 = vmul.f32 0.7978846, %v602_v31 }
 0x1dc   : > { %v608_v33 = vmul.f32 0.7978846, %v600_v32 }
 0x1dd   : > { %v903_v13 = vpop.eup %902  ;;  %914 = vtanh.f32 %v610_v17 }
 0x1de   : > { %v621_v22 = vadd.f32 1.0, %v903_v13  ;;  %916 = vtanh.f32 %v608_v33 }
 0x1df   : > { %v905_v10 = vpop.eup %904 }
 0x1e0   : > { %v629_v34 = vmul.f32 0.5, %v621_v22  ;;  %v619_v36 = vadd.f32 1.0, %v905_v10 }
 0x1e1   : > { %v907_v37 = vpop.eup %906 }
 0x1e2   : > { %v637_v38 = vmul.f32 %v629_v34, %v1069_v41  ;;  %v627_v39 = vmul.f32 0.5, %v619_v36  ;;  %v622_v40 = vadd.f32 1.0, %v907_v37 }
 0x1e3   : > { %v909_v43 = vpop.eup %908 }
 0x1e4   : > { %v812_v35 = vpack.c.bf16 %v637_v38, %v637_v38  ;;  %v635_v28 = vmul.f32 %v627_v39, %v1073_v42  ;;  %v630_v44 = vmul.f32 0.5, %v622_v40  ;;  %v620_v45 = vadd.f32 1.0, %v909_v43 }
 0x1e6   : > { %v911_v47 = vpop.eup %910  ;;  %678 = vst.msk [vmem:[%s1123_s15 + $0x8] sm:$0xf] %vm675_vm2, %v812_v35  ;;  %v810_v41 = vpack.c.bf16 %v635_v28, %v635_v28  ;;  %v638_v48 = vmul.f32 %v630_v44, %v1078_v46  ;;  %v628_v49 = vmul.f32 0.5, %v620_v45 }
 0x1e7   : > { %v625_v50 = vadd.f32 1.0, %v911_v47 }
 0x1e8   : > { %v913_v52 = vpop.eup %912  ;;  %676 = vst.msk [vmem:[%s1123_s15] sm:$0xf] %vm675_vm2, %v810_v41  ;;  %v813_v53 = vpack.c.bf16 %v638_v48, %v638_v48  ;;  %v636_v54 = vmul.f32 %v628_v49, %v1083_v51 }
 0x1e9   : > { %v633_v42 = vmul.f32 0.5, %v625_v50  ;;  %v623_v55 = vadd.f32 1.0, %v913_v52 }
 0x1ea   : > { %v915_v56 = vpop.eup %914  ;;  %679 = vst.msk [vmem:[%s1123_s15 + $0xc] sm:$0xf] %vm675_vm2, %v813_v53  ;;  %v811_v58 = vpack.c.bf16 %v636_v54, %v636_v54 }
 0x1eb   : > { %v917_v59 = vpop.eup %916  ;;  %v641_v46 = vmul.f32 %v633_v42, %v1089_v57  ;;  %v631_v60 = vmul.f32 0.5, %v623_v55  ;;  %v626_v61 = vadd.f32 1.0, %v915_v56 }
 0x1ec   : > { %677 = vst.msk [vmem:[%s1123_s15 + $0x4] sm:$0xf] %vm675_vm2, %v811_v58  ;;  %v624_v62 = vadd.f32 1.0, %v917_v59 }
 0x1ed   : > { %v816_v63 = vpack.c.bf16 %v641_v46, %v641_v46  ;;  %v639_v51 = vmul.f32 %v631_v60, %v1095_v0  ;;  %v634_v1 = vmul.f32 0.5, %v626_v61 }
 0x1ee   : > { %v632_v2 = vmul.f32 0.5, %v624_v62 }
 0x1ef   : > { %682 = vst.msk [vmem:[%s1123_s15 + $0x18] sm:$0xf] %vm675_vm2, %v816_v63  ;;  %v814_v3 = vpack.c.bf16 %v639_v51, %v639_v51  ;;  %v642_v4 = vmul.f32 %v634_v1, %v1101_v7 }
 0x1f0   : > { %v640_v5 = vmul.f32 %v632_v2, %v1104_v12 }
 0x1f1   : > { %680 = vst.msk [vmem:[%s1123_s15 + $0x10] sm:$0xf] %vm675_vm2, %v814_v3  ;;  %v817_v57 = vpack.c.bf16 %v642_v4, %v642_v4 }
 0x1f2   : > { %v815_v6 = vpack.c.bf16 %v640_v5, %v640_v5 }
 0x1f3   : > { %683 = vst.msk [vmem:[%s1123_s15 + $0x1c] sm:$0xf] %vm675_vm2, %v817_v57 }
 0x1f4   : > { %681 = vst.msk [vmem:[%s1123_s15 + $0x14] sm:$0xf] %vm675_vm2, %v815_v6 }
 0x1f5 PF: > { %s15_s20 = sadd.s32 1, %s940_s20   ;;  %s1163_s18 = smov %s936_s19 }
 0x1f6   : > { %p12_p5 = scmp.ge.s32.totalorder %s15_s20, 4   ;;  %s1164_s19 = smov %s1166_s21 }
 0x1f8   :  { %14 = sbr.rel (!%p12_p5) target bundleno = 2 (0x2), region = 70 }

// kernel: mcavm_unet_forward.9
= control target key start
LH: loop header
LB: loop body
LE: loop exit
PB: predicated region body
PF: predicated region fallthrough
CT: control target
= control target key end

     0   :  { %s690_s18 = smov 0   ;;  %s692_s19 = smov 0   ;;  %s754_s0 = inlined_call_operand.vmem [shape: bf16[2,16,64], index: 0, kind: input, shape index: {}]   ;;  %s755_s1 = inlined_call_operand.vmem [shape: bf16[64,32], index: 1, kind: input, shape index: {}]   ;;  %s756_s2 = inlined_call_operand.vmem [shape: f32[1,32], index: 2, kind: input, shape index: {}]   ;;  %s757_s3 = inlined_call_operand.vmem [shape: bf16[32,32], index: 3, kind: input, shape index: {}]   ;;  %s758_s4 = inlined_call_operand.vmem [shape: f32[1,32], index: 4, kind: input, shape index: {}]   ;;  %s759_s5 = inlined_call_operand.vmem [shape: bf16[2,16,32], index: 5, kind: output, shape index: {}]  }
   0x1   :  { %s694_s20 = smov 0  }
   0x2 LB: > { %s27_s21 = sadd.s32 1, %s652_s19  ;;  %p545_p0 = scmp.ge.s32.totalorder %s656_s20, 1  ;;  %s656_s20 = sphi %s694_s20, %s15_s20   ;;  %s652_s19 = sphi %s692_s19, %s761_s19   ;;  %s648_s18 = sphi %s690_s18, %s760_s18  }
   0x3   : > { %p29_p1 = scmp.ge.s32.totalorder %s27_s21, 2  ;;  %p208_p2 = scmp.lt.s32.totalorder %s656_s20, 3 }
   0x5   : > { %s763_s21 = smov (%p29_p1, %s27_s21), 0  ;;  %p209_p3 = pnand %p545_p0, %p208_p2 }
   0x6   : > { %p245_p4 = scmp.lt.s32.totalorder (!%p209_p3), %s648_s18, 1 }
   0x7   : > { %212 = sbr.rel (%p209_p3) target bundleno = 462 (0x1ce), region = 40 }
   0xc   : > { %v623_v0 = vld [vmem:[%s755_s1 + $0x18] sm:$0xff]   ;;  %v658_v1 = vmov 0.0   ;;  %v624_v2 = vld [vmem:[%s755_s1 + $0x10] sm:$0xff]   ;;  %vm659_vm0 = vmmov 0   ;;  %s765_s18 = smov (!%p245_p4, %s648_s18), 1  ;;  %v625_v3 = vld [vmem:[%s755_s1 + $0x8] sm:$0xff]  }
   0xd   : > { %577 = vmatprep.subr.bf16.mxu0 %v658_v1  ;;  %589 = vmatprep.subr.bf16.mxu1 %v658_v1  ;;  %s565_s28 = sshll.u32 %s765_s18, 3  ;;  %v626_v4 = vld [vmem:[%s755_s1] sm:$0xff]   ;;  %vm311_vm1 = vcmask 523264   ;;  %v628_v6 = vld [vmem:[%s757_s3 + $0x8] sm:$0xff]   ;;  %vm380_vm2 = vcmask 261120   ;;  %vm451_vm3 = vcmask 257024  }
   0xe   : > { %578 = vmatpush3.bf16.msra.mxu0 %v623_v0  ;;  %585 = vmatprep.mubr.msk.bf16.mxu0 %vm659_vm0, %v658_v1  ;;  %s252_s6 = scalar_lea.vmem %s754_s0, %s565_s28  ;;  %v629_v7 = vld [vmem:[%s757_s3] sm:$0xff]   ;;  %s262_s23 = scalar_lea.vmem %s759_s5, %s565_s28 }
   0xf   : > { %579 = vmatprep.subr.bf16.mxu0 %v658_v1  ;;  %593 = vmatprep.mubr.msk.bf16.mxu1 %vm659_vm0, %v658_v1  ;;  %v627_v5 = vld [vmem:[%s252_s6] sm:$0xff]  }
  0x10   : > { %590 = vmatpush3.bf16.msra.mxu1 %v628_v6  ;;  %v550_v9 = vld [vmem:[%s756_s2] ss:$0 sm:$0xff] }
  0x11   : > { %591 = vmatprep.subr.bf16.mxu1 %v658_v1  ;;  %v557_v16 = vld [vmem:[%s758_s4] ss:$0 sm:$0xff] }
  0x12   : > { %580 = vmatpush3.bf16.msra.mxu0 %v624_v2 }
  0x13   : > { %581 = vmatprep.subr.bf16.mxu0 %v658_v1 }
  0x14   : > { %592 = vmatpush3.bf16.msra.mxu1 %v629_v7 }
  0x16   : > { %582 = vmatpush3.bf16.msra.mxu0 %v625_v3 }
  0x17   : > { %583 = vmatprep.subr.bf16.mxu0 %v658_v1 }
  0x1a   : > { %584 = vmatpush3.bf16.msra.mxu0 %v626_v4 }
  0x1d   : > { %586 = vmatmul.mubr.msk.bf16.vlgmr.msra.gmra.mxu0 %vm311_vm1, %v627_v5 }
  0xdd   : > { %v349_v8 = vpop.f32.mrf.mxu0 }
  0xde   : > { %v350_v12 = vadd.f32 %v550_v9, %v349_v8 }
  0xdf   : > { %v587_v10 = vpop.f32.mrf.mxu0 }
  0xe1   : > { %v352_v11 = vpop.f32.mrf.mxu0 }
  0xe2   : > { %v353_v13 = vadd.f32 %v550_v9, %v352_v11 }
  0xe3   : > { %v588_v14 = vpop.f32.mrf.mxu0 }
  0xe4   : > { %v356_v15 = vpack.c.bf16 %v353_v13, %v350_v12 }
  0xe6   : > { %594 = vmatmul.mubr.msk.bf16.vlgmr.msra.gmra.mxu1 %vm380_vm2, %v356_v15 }
 0x1a6   : > { %v418_v17 = vpop.f32.mrf.mxu1 }
 0x1a7   : > { %v419_v18 = vadd.f32 %v557_v16, %v418_v17 }
 0x1a8   : > { %v595_v19 = vpop.f32.mrf.mxu1 }
 0x1a9   : > { %v425_v20 = vmul.f32 %v419_v18, %v419_v18 }
 0x1aa   : > { %v421_v21 = vpop.f32.mrf.mxu1 }
 0x1ab   : > { %v427_v22 = vmul.f32 %v425_v20, %v419_v18  ;;  %v422_v23 = vadd.f32 %v557_v16, %v421_v21 }
 0x1ac   : > { %v596_v24 = vpop.f32.mrf.mxu1 }
 0x1ad   : > { %v429_v25 = vmul.f32 0.044715, %v427_v22  ;;  %v426_v26 = vmul.f32 %v422_v23, %v422_v23 }
 0x1af   : > { %v431_v27 = vadd.f32 %v429_v25, %v419_v18  ;;  %v428_v28 = vmul.f32 %v426_v26, %v422_v23 }
 0x1b1   : > { %v433_v29 = vmul.f32 0.7978846, %v431_v27  ;;  %v430_v30 = vmul.f32 0.044715, %v428_v28 }
 0x1b3   : > { %630 = vtanh.f32 %v433_v29  ;;  %v432_v31 = vadd.f32 %v430_v30, %v422_v23 }
 0x1b5   : > { %v434_v32 = vmul.f32 0.7978846, %v432_v31 }
 0x1b7   : > { %632 = vtanh.f32 %v434_v32 }
 0x1c0   : > { %v631_v33 = vpop.eup %630 }
 0x1c1   : > { %v437_v34 = vadd.f32 1.0, %v631_v33 }
 0x1c3   : > { %v439_v35 = vmul.f32 0.5, %v437_v34 }
 0x1c4   : > { %v633_v36 = vpop.eup %632 }
 0x1c5   : > { %v441_v37 = vmul.f32 %v439_v35, %v419_v18  ;;  %v438_v38 = vadd.f32 1.0, %v633_v36 }
 0x1c7   : > { %v567_v39 = vpack.c.bf16 %v441_v37, %v441_v37  ;;  %v440_v40 = vmul.f32 0.5, %v438_v38 }
 0x1c9   : > { %452 = vst.msk [vmem:[%s262_s23] sm:$0xf] %vm451_vm3, %v567_v39  ;;  %v442_v41 = vmul.f32 %v440_v40, %v422_v23 }
 0x1cb   : > { %v568_v42 = vpack.c.bf16 %v442_v41, %v442_v41 }
 0x1cd   : > { %453 = vst.msk [vmem:[%s262_s23 + $0x4] sm:$0xf] %vm451_vm3, %v568_v42 }
 0x1ce PF: > { %s15_s20 = sadd.s32 1, %s656_s20   ;;  %s760_s18 = smov %s652_s19 }
 0x1cf   : > { %p12_p5 = scmp.ge.s32.totalorder %s15_s20, 4   ;;  %s761_s19 = smov %s763_s21 }
 0x1d1   :  { %14 = sbr.rel (!%p12_p5) target bundleno = 2 (0x2), region = 70 }

// kernel: mcavm_unet_forward.10
= control target key start
LH: loop header
LB: loop body
LE: loop exit
PB: predicated region body
PF: predicated region fallthrough
CT: control target
= control target key end

     0   :  { %s700_s18 = smov 0   ;;  %s702_s19 = smov 0   ;;  %s786_s0 = inlined_call_operand.vmem [shape: bf16[2,4,128], index: 0, kind: input, shape index: {}]   ;;  %s787_s1 = inlined_call_operand.vmem [shape: bf16[128,64], index: 1, kind: input, shape index: {}]   ;;  %s788_s2 = inlined_call_operand.vmem [shape: f32[1,64], index: 2, kind: input, shape index: {}]   ;;  %s789_s3 = inlined_call_operand.vmem [shape: bf16[64,64], index: 3, kind: input, shape index: {}]   ;;  %s790_s4 = inlined_call_operand.vmem [shape: f32[1,64], index: 4, kind: input, shape index: {}]   ;;  %s791_s5 = inlined_call_operand.vmem [shape: bf16[2,4,64], index: 5, kind: output, shape index: {}]  }
   0x1   :  { %s704_s20 = smov 0  }
   0x2 LB: > { %s27_s21 = sadd.s32 1, %s662_s19  ;;  %p538_p0 = scmp.ge.s32.totalorder %s666_s20, 1  ;;  %s666_s20 = sphi %s704_s20, %s15_s20   ;;  %s662_s19 = sphi %s702_s19, %s793_s19   ;;  %s658_s18 = sphi %s700_s18, %s792_s18  }
   0x3   : > { %p29_p1 = scmp.ge.s32.totalorder %s27_s21, 2  ;;  %p205_p2 = scmp.lt.s32.totalorder %s666_s20, 3 }
   0x5   : > { %s795_s21 = smov (%p29_p1, %s27_s21), 0  ;;  %p206_p3 = pnand %p538_p0, %p205_p2 }
   0x6   : > { %p237_p4 = scmp.lt.s32.totalorder (!%p206_p3), %s658_s18, 1 }
   0x7   : > { %209 = sbr.rel (%p206_p3) target bundleno = 470 (0x1d6), region = 40 }
   0xc   : > { %v630_v0 = vld [vmem:[%s787_s1 + $0x38] sm:$0xff]   ;;  %v668_v1 = vmov 0.0   ;;  %v631_v2 = vld [vmem:[%s787_s1 + $0x30] sm:$0xff]   ;;  %vm669_vm0 = vmmov 0   ;;  %v632_v3 = vld [vmem:[%s787_s1 + $0x28] sm:$0xff]   ;;  %s797_s18 = smov (!%p237_p4, %s658_s18), 1 }
   0xd   : > { %572 = vmatprep.subr.bf16.mxu0 %v668_v1  ;;  %592 = vmatprep.subr.bf16.mxu1 %v668_v1  ;;  %v638_v4 = vld [vmem:[%s789_s3 + $0x18] sm:$0xff]   ;;  %v633_v5 = vld [vmem:[%s787_s1 + $0x20] sm:$0xff]   ;;  %v639_v6 = vld [vmem:[%s789_s3 + $0x10] sm:$0xff]   ;;  %s539_s17 = sshll.u32 %s797_s18, 1  ;;  %vm404_vm1 = vcmask 523264   ;;  %vm458_vm2 = vcmask 517120  }
   0xe   : > { %573 = vmatpush3.bf16.msra.mxu0 %v630_v0  ;;  %588 = vmatprep.mubr.msk.bf16.mxu0 %vm669_vm0, %v668_v1  ;;  %v634_v7 = vld [vmem:[%s787_s1 + $0x18] sm:$0xff]   ;;  %v640_v8 = vld [vmem:[%s789_s3 + $0x8] sm:$0xff]   ;;  %v635_v9 = vld [vmem:[%s787_s1 + $0x10] sm:$0xff]   ;;  %s243_s26 = scalar_lea.vmem %s786_s0, %s539_s17  ;;  %s250_s10 = scalar_lea.vmem %s791_s5, %s539_s17 }
   0xf   : > { %574 = vmatprep.subr.bf16.mxu0 %v668_v1  ;;  %600 = vmatprep.mubr.msk.bf16.mxu1 %vm669_vm0, %v668_v1  ;;  %v636_v10 = vld [vmem:[%s787_s1 + $0x8] sm:$0xff]   ;;  %v637_v11 = vld [vmem:[%s787_s1] sm:$0xff]  }
  0x10   : > { %593 = vmatpush3.bf16.msra.mxu1 %v638_v4  ;;  %v252_v12 = vld [vmem:[%s243_s26] sm:$0x3] }
  0x11   : > { %594 = vmatprep.subr.bf16.mxu1 %v668_v1  ;;  %v641_v13 = vld [vmem:[%s789_s3] sm:$0xff]  }
  0x12   : > { %575 = vmatpush3.bf16.msra.mxu0 %v631_v2  ;;  %v541_v14 = vld [vmem:[%s788_s2] ss:$0 sm:$0xff] }
  0x13   : > { %576 = vmatprep.subr.bf16.mxu0 %v668_v1  ;;  %v550_v21 = vld [vmem:[%s790_s4] ss:$0 sm:$0xff] }
  0x14   : > { %595 = vmatpush3.bf16.msra.mxu1 %v639_v6 }
  0x15   : > { %596 = vmatprep.subr.bf16.mxu1 %v668_v1 }
  0x16   : > { %577 = vmatpush3.bf16.msra.mxu0 %v632_v3 }
  0x17   : > { %578 = vmatprep.subr.bf16.mxu0 %v668_v1 }
  0x18   : > { %597 = vmatpush3.bf16.msra.mxu1 %v640_v8 }
  0x19   : > { %598 = vmatprep.subr.bf16.mxu1 %v668_v1 }
  0x1a   : > { %579 = vmatpush3.bf16.msra.mxu0 %v633_v5 }
  0x1b   : > { %580 = vmatprep.subr.bf16.mxu0 %v668_v1 }
  0x1c   : > { %599 = vmatpush3.bf16.msra.mxu1 %v641_v13 }
  0x1e   : > { %581 = vmatpush3.bf16.msra.mxu0 %v634_v7 }
  0x1f   : > { %582 = vmatprep.subr.bf16.mxu0 %v668_v1 }
  0x22   : > { %583 = vmatpush3.bf16.msra.mxu0 %v635_v9 }
  0x23   : > { %584 = vmatprep.subr.bf16.mxu0 %v668_v1 }
  0x26   : > { %585 = vmatpush3.bf16.msra.mxu0 %v636_v10 }
  0x27   : > { %586 = vmatprep.subr.bf16.mxu0 %v668_v1 }
  0x2a   : > { %587 = vmatpush3.bf16.msra.mxu0 %v637_v11 }
  0x2d   : > { %589 = vmatmul.mubr.bf16.vlgmr.msra.gmra.mxu0 %v252_v12 }
  0xed   : > { %v358_v15 = vpop.f32.mrf.mxu0 }
  0xee   : > { %v359_v16 = vadd.f32 %v541_v14, %v358_v15 }
  0xef   : > { %v590_v17 = vpop.f32.mrf.mxu0 }
  0xf0   : > { %v364_v18 = vpack.c.bf16 %v359_v16, %v359_v16 }
  0xf1   : > { %v361_v19 = vpop.f32.mrf.mxu0 }
  0xf2   : > { %601 = vmatmul.mubr.msk.bf16.vlgmr.msra.gmra.mxu1 %vm404_vm1, %v364_v18 }
  0xf3   : > { %v591_v20 = vpop.f32.mrf.mxu0 }
 0x1b2   : > { %v442_v22 = vpop.f32.mrf.mxu1 }
 0x1b3   : > { %v443_v23 = vadd.f32 %v550_v21, %v442_v22 }
 0x1b4   : > { %v602_v24 = vpop.f32.mrf.mxu1 }
 0x1b5   : > { %v448_v25 = vmul.f32 %v443_v23, %v443_v23 }
 0x1b6   : > { %v445_v26 = vpop.f32.mrf.mxu1 }
 0x1b7   : > { %v449_v27 = vmul.f32 %v448_v25, %v443_v23 }
 0x1b8   : > { %v603_v28 = vpop.f32.mrf.mxu1 }
 0x1b9   : > { %v450_v29 = vmul.f32 0.044715, %v449_v27 }
 0x1bb   : > { %v451_v30 = vadd.f32 %v450_v29, %v443_v23 }
 0x1bd   : > { %v452_v31 = vmul.f32 0.7978846, %v451_v30 }
 0x1bf   : > { %642 = vtanh.f32 %v452_v31 }
 0x1cc   : > { %v643_v32 = vpop.eup %642 }
 0x1cd   : > { %v454_v33 = vadd.f32 1.0, %v643_v32 }
 0x1cf   : > { %v455_v34 = vmul.f32 0.5, %v454_v33 }
 0x1d1   : > { %v456_v35 = vmul.f32 %v455_v34, %v443_v23 }
 0x1d3   : > { %v457_v36 = vpack.c.bf16 %v456_v35, %v456_v35 }
 0x1d5   : > { %459 = vst.msk [vmem:[%s250_s10] sm:$0x3] %vm458_vm2, %v457_v36 }
 0x1d6 PF: > { %s15_s20 = sadd.s32 1, %s666_s20   ;;  %s792_s18 = smov %s662_s19 }
 0x1d7   : > { %p12_p5 = scmp.ge.s32.totalorder %s15_s20, 4   ;;  %s793_s19 = smov %s795_s21 }
 0x1d9   :  { %14 = sbr.rel (!%p12_p5) target bundleno = 2 (0x2), region = 70 }

// kernel: mcavm_unet_forward.11
= control target key start
LH: loop header
LB: loop body
LE: loop exit
PB: predicated region body
PF: predicated region fallthrough
CT: control target
= control target key end

     0   :  { %s835_s18 = smov 0   ;;  %s837_s19 = smov 0   ;;  %s959_s0 = inlined_call_operand.vmem [shape: bf16[2,1,256], index: 0, kind: input, shape index: {}]   ;;  %s960_s1 = inlined_call_operand.vmem [shape: bf16[256,128], index: 1, kind: input, shape index: {}]   ;;  %s961_s2 = inlined_call_operand.vmem [shape: f32[1,128], index: 2, kind: input, shape index: {}]   ;;  %s962_s3 = inlined_call_operand.vmem [shape: bf16[128,128], index: 3, kind: input, shape index: {}]   ;;  %s963_s4 = inlined_call_operand.vmem [shape: f32[1,128], index: 4, kind: input, shape index: {}]   ;;  %s964_s5 = inlined_call_operand.vmem [shape: bf16[2,1,128], index: 5, kind: output, shape index: {}]  }
   0x1   :  { %s839_s20 = smov 0  }
   0x2 LB: > { %s27_s21 = sadd.s32 1, %s796_s19  ;;  %p645_p0 = scmp.ge.s32.totalorder %s800_s20, 1  ;;  %s800_s20 = sphi %s839_s20, %s15_s20   ;;  %s796_s19 = sphi %s837_s19, %s966_s19   ;;  %s792_s18 = sphi %s835_s18, %s965_s18  }
   0x3   : > { %p29_p1 = scmp.ge.s32.totalorder %s27_s21, 2  ;;  %p206_p2 = scmp.lt.s32.totalorder %s800_s20, 3 }
   0x5   : > { %s968_s21 = smov (%p29_p1, %s27_s21), 0  ;;  %p207_p3 = pnand %p645_p0, %p206_p2 }
   0x6   : > { %p238_p4 = scmp.lt.s32.totalorder (!%p207_p3), %s792_s18, 1 }
   0x7   : > { %210 = sbr.rel (%p207_p3) target bundleno = 475 (0x1db), region = 40 }
   0xc   : > { %v752_v0 = vld [vmem:[%s960_s1 + $0x78] sm:$0xff]   ;;  %v754_v2 = vld [vmem:[%s960_s1 + $0x70] sm:$0xff]   ;;  %v802_v3 = vmov 0.0   ;;  %v756_v5 = vld [vmem:[%s960_s1 + $0x68] sm:$0xff]   ;;  %s970_s18 = smov (!%p238_p4, %s792_s18), 1  ;;  %v299_v10 = vlaneseq  ;;  %vm804_vm0 = vmmov 0  }
   0xd   : > { %v753_v1 = vld [vmem:[%s960_s1 + $0x38] sm:$0xff]   ;;  %674 = vmatprep.subr.bf16.mxu0 %v752_v0  ;;  %705 = vmatprep.subr.bf16.mxu1 %v802_v3  ;;  %v755_v4 = vld [vmem:[%s960_s1 + $0x30] sm:$0xff]   ;;  %v757_v6 = vld [vmem:[%s960_s1 + $0x28] sm:$0xff]   ;;  %s646_s11 = sshll.u32 %s970_s18, 1  ;;  %v803_v15 = vmov 1966171168   ;;  %s251_s13 = scalar_lea.vmem %s964_s5, %s970_s18 }
   0xe   : > { %675 = vmatpush3.bf16.msra.mxu0 %v753_v1  ;;  %v758_v7 = vld [vmem:[%s960_s1 + $0x60] sm:$0xff]   ;;  %v760_v9 = vld [vmem:[%s960_s1 + $0x58] sm:$0xff]   ;;  %s245_s22 = scalar_lea.vmem %s959_s0, %s646_s11  ;;  %v762_v12 = vld [vmem:[%s960_s1 + $0x50] sm:$0xff]   ;;  %v297_v16 = vunpack.c.l.s4 %v803_v15  ;;  %v300_v17 = vshrl.u32 %v299_v10, 7  ;;  %721 = vmatprep.mubr.msk.bf16.mxu1 %vm804_vm0, %v802_v3  ;;  %vm564_vm1 = vcmask 1040384  }
   0xf   : > { %676 = vmatprep.subr.bf16.mxu0 %v754_v2  ;;  %v759_v8 = vld [vmem:[%s960_s1 + $0x20] sm:$0xff]   ;;  %v761_v11 = vld [vmem:[%s960_s1 + $0x18] sm:$0xff]   ;;  %v763_v14 = vld [vmem:[%s960_s1 + $0x10] sm:$0xff]   ;;  %vm565_vm2 = vsmask.f32 256 }
  0x10   : > { %v647_v13 = vld.sshfl [vmem:[%s245_s22] sm:$0x11 pattern:$0x75316420]  ;;  %v768_v18 = vld [vmem:[%s962_s3 + $0x38] sm:$0xff]   ;;  %v764_v19 = vld [vmem:[%s960_s1 + $0x48] sm:$0xff]   ;;  %v298_v21 = vunpack.c.0.s8 %v297_v16 }
  0x11   : > { %v295_v20 = vcombine.high %v647_v13, %v647_v13  ;;  %706 = vmatpush3.bf16.msra.mxu1 %v768_v18  ;;  %v769_v22 = vld [vmem:[%s962_s3 + $0x30] sm:$0xff]   ;;  %v765_v24 = vld [vmem:[%s960_s1 + $0x8] sm:$0xff]   ;;  %v766_v25 = vld [vmem:[%s960_s1 + $0x40] sm:$0xff]  }
  0x12   : > { %677 = vmatpush3.bf16.msra.mxu0 %v755_v4  ;;  %v301_v23 = vsub.s32 %v298_v21, %v300_v17  ;;  %707 = vmatprep.subr.bf16.mxu1 %v802_v3  ;;  %v770_v27 = vld [vmem:[%s962_s3 + $0x28] sm:$0xff]   ;;  %v767_v28 = vld [vmem:[%s960_s1] sm:$0xff]   ;;  %v772_v31 = vld [vmem:[%s962_s3 + $0x18] sm:$0xff]  }
  0x13   : > { %678 = vmatprep.subr.bf16.mxu0 %v756_v5  ;;  %v771_v29 = vld [vmem:[%s962_s3 + $0x20] sm:$0xff]   ;;  %v773_v32 = vld [vmem:[%s962_s3 + $0x10] sm:$0xff]   ;;  %v774_v33 = vld [vmem:[%s962_s3 + $0x8] sm:$0xff]  }
  0x14   : > { %v309_v26 = vrot.slane %v295_v20, %v301_v23  ;;  %v302_v30 = vrot.slane %v647_v13, %v301_v23  ;;  %v775_v34 = vld [vmem:[%s962_s3] sm:$0xff]   ;;  %vm566_vm3 = vmand %vm564_vm1, %vm565_vm2 }
  0x15   : > { %708 = vmatpush3.bf16.msra.mxu1 %v769_v22  ;;  %v286_v36 = vld [vmem:[%s961_s2] sm:$0x1] }
  0x16   : > { %679 = vmatpush3.bf16.msra.mxu0 %v757_v6  ;;  %440 = vmatprep.mubr.bf16.mxu0 %v309_v26  ;;  %v465_v43 = vld [vmem:[%s963_s4] sm:$0x1] }
  0x17   : > { %680 = vmatprep.subr.bf16.mxu0 %v758_v7  ;;  %709 = vmatprep.subr.bf16.mxu1 %v802_v3  ;;  %v567_v58 = vld [vmem:[%s251_s13] sm:$0x1] }
  0x19   : > { %710 = vmatpush3.bf16.msra.mxu1 %v770_v27 }
  0x1a   : > { %681 = vmatpush3.bf16.msra.mxu0 %v759_v8  ;;  %711 = vmatprep.subr.bf16.mxu1 %v802_v3 }
  0x1b   : > { %682 = vmatprep.subr.bf16.mxu0 %v760_v9 }
  0x1d   : > { %712 = vmatpush3.bf16.msra.mxu1 %v771_v29 }
  0x1e   : > { %683 = vmatpush3.bf16.msra.mxu0 %v761_v11  ;;  %713 = vmatprep.subr.bf16.mxu1 %v802_v3 }
  0x1f   : > { %684 = vmatprep.subr.bf16.mxu0 %v762_v12 }
  0x21   : > { %714 = vmatpush3.bf16.msra.mxu1 %v772_v31 }
  0x22   : > { %685 = vmatpush3.bf16.msra.mxu0 %v763_v14  ;;  %715 = vmatprep.subr.bf16.mxu1 %v802_v3 }
  0x23   : > { %686 = vmatprep.subr.bf16.mxu0 %v764_v19 }
  0x25   : > { %716 = vmatpush3.bf16.msra.mxu1 %v773_v32 }
  0x26   : > { %687 = vmatpush3.bf16.msra.mxu0 %v765_v24  ;;  %717 = vmatprep.subr.bf16.mxu1 %v802_v3 }
  0x27   : > { %688 = vmatprep.subr.bf16.mxu0 %v766_v25 }
  0x29   : > { %718 = vmatpush3.bf16.msra.mxu1 %v774_v33 }
  0x2a   : > { %689 = vmatpush3.bf16.msra.mxu0 %v767_v28  ;;  %719 = vmatprep.subr.bf16.mxu1 %v802_v3 }
  0x2d   : > { %441 = vmatmul.mubr.bf16.vlgmr.msra.gmra.mxu0 %v302_v30  ;;  %720 = vmatpush3.bf16.msra.mxu1 %v775_v34 }
  0xed   : > { %v690_v35 = vpop.f32.mrf.mxu0 }
  0xef   : > { %v691_v37 = vpop.f32.mrf.mxu0 }
  0xf0   : > { %v692_v38 = vadd.f32 %v691_v37, %v690_v35 }
  0xf1   : > { %v693_v39 = vpop.f32.mrf.mxu0 }
  0xf2   : > { %v443_v40 = vadd.f32 %v692_v38, %v286_v36 }
  0xf3   : > { %v694_v41 = vpop.f32.mrf.mxu0 }
  0xf4   : > { %v448_v42 = vpack.c.bf16 %v443_v40, %v443_v40 }
  0xf6   : > { %722 = vmatmul.mubr.bf16.vlgmr.msra.gmra.mxu1 %v448_v42 }
 0x1b6   : > { %v548_v44 = vpop.f32.mrf.mxu1 }
 0x1b7   : > { %v549_v45 = vadd.f32 %v548_v44, %v465_v43 }
 0x1b8   : > { %v723_v46 = vpop.f32.mrf.mxu1 }
 0x1b9   : > { %v554_v47 = vmul.f32 %v549_v45, %v549_v45 }
 0x1ba   : > { %v551_v48 = vpop.f32.mrf.mxu1 }
 0x1bb   : > { %v555_v49 = vmul.f32 %v554_v47, %v549_v45 }
 0x1bc   : > { %v724_v50 = vpop.f32.mrf.mxu1 }
 0x1bd   : > { %v556_v51 = vmul.f32 0.044715, %v555_v49 }
 0x1bf   : > { %v557_v52 = vadd.f32 %v556_v51, %v549_v45 }
 0x1c1   : > { %v558_v53 = vmul.f32 0.7978846, %v557_v52 }
 0x1c3   : > { %776 = vtanh.f32 %v558_v53 }
 0x1d0   : > { %v777_v54 = vpop.eup %776 }
 0x1d1   : > { %v560_v55 = vadd.f32 1.0, %v777_v54 }
 0x1d3   : > { %v561_v56 = vmul.f32 0.5, %v560_v55 }
 0x1d5   : > { %v562_v57 = vmul.f32 %v561_v56, %v549_v45 }
 0x1d7   : > { %v563_v59 = vpack.c.bf16 %v562_v57, %v562_v57 }
 0x1d9   : > { %v568_v60 = vsel %vm566_vm3, %v563_v59, %v567_v58 }
 0x1da   : > { %569 = vst [vmem:[%s251_s13] sm:$0x1] %v568_v60 }
 0x1db PF: > { %s15_s20 = sadd.s32 1, %s800_s20   ;;  %s965_s18 = smov %s796_s19 }
 0x1dc   : > { %p12_p5 = scmp.ge.s32.totalorder %s15_s20, 4   ;;  %s966_s19 = smov %s968_s21 }
 0x1de   :  { %14 = sbr.rel (!%p12_p5) target bundleno = 2 (0x2), region = 70 }

// kernel: mcavm_unet_forward.12
= control target key start
LH: loop header
LB: loop body
LE: loop exit
PB: predicated region body
PF: predicated region fallthrough
CT: control target
= control target key end

     0   :  { %s1400_s17 = smov 0   ;;  %s1402_s18 = smov 0   ;;  %s1587_s0 = inlined_call_operand.vmem [shape: bf16[2,1,128], index: 0, kind: input, shape index: {}]   ;;  %s1588_s1 = inlined_call_operand.vmem [shape: f32[2,128,1], index: 1, kind: input, shape index: {}]   ;;  %s1589_s2 = inlined_call_operand.vmem [shape: bf16[2,2,128], index: 2, kind: input, shape index: {}]   ;;  %s1590_s3 = inlined_call_operand.vmem [shape: bf16[128,128], index: 3, kind: input, shape index: {}]   ;;  %s1591_s4 = inlined_call_operand.vmem [shape: f32[1,128], index: 4, kind: input, shape index: {}]   ;;  %s1592_s5 = inlined_call_operand.vmem [shape: bf16[128,128], index: 5, kind: input, shape index: {}]   ;;  %s1593_s6 = inlined_call_operand.vmem [shape: bf16[128,16], index: 6, kind: input, shape index: {}]   ;;  %s1594_s7 = inlined_call_operand.vmem [shape: f32[1,16], index: 7, kind: input, shape index: {}]   ;;  %s1595_s8 = inlined_call_operand.vmem [shape: bf16[16,64], index: 8, kind: input, shape index: {}]   ;;  %s1596_s9 = inlined_call_operand.vmem [shape: f32[1,64], index: 9, kind: input, shape index: {}]   ;;  %s1597_s10 = inlined_call_operand.vmem [shape: bf16[2,2,128], index: 10, kind: output, shape index: {0}]   ;;  %s1598_s11 = inlined_call_operand.vmem [shape: f32[2,1,64], index: 11, kind: output, shape index: {1}]  }
   0x1   :  { %s1404_s19 = smov 0  }
   0x2 LB: > { %s34_s20 = sadd.s32 1, %s1330_s18  ;;  %p1102_p0 = scmp.ge.s32.totalorder %s1334_s19, 1  ;;  %s1334_s19 = sphi %s1404_s19, %s22_s19   ;;  %s1330_s18 = sphi %s1402_s18, %s1600_s18   ;;  %s1326_s17 = sphi %s1400_s17, %s1599_s17  }
   0x3   : > { %p36_p1 = scmp.ge.s32.totalorder %s34_s20, 2  ;;  %p380_p2 = scmp.lt.s32.totalorder %s1334_s19, 3 }
   0x5   : > { %s1602_s20 = smov (%p36_p1, %s34_s20), 0  ;;  %p381_p3 = pnand %p1102_p0, %p380_p2 }
   0x6   : > { %p436_p4 = scmp.lt.s32.totalorder (!%p381_p3), %s1326_s17, 1 }
   0x7   : > { %384 = sbr.rel (%p381_p3) target bundleno = 827 (0x33b), region = 60 }
   0xc   : > { %v1336_v0 = vmov 0   ;;  %s1604_s17 = smov (!%p436_p4, %s1326_s17), 1  ;;  %v1337_v5 = vmov 0.0   ;;  %v1291_v7 = vld [vmem:[%s1592_s5 + $0x38] sm:$0xff]   ;;  %v1292_v9 = vld [vmem:[%s1592_s5 + $0x30] sm:$0xff]   ;;  %v1293_v12 = vld [vmem:[%s1592_s5 + $0x28] sm:$0xff]  }
   0xd   : > { %1290 = vset.pattern.permute.xlu1 %v1336_v0  ;;  %1289 = vset.pattern.permute.xlu0 %v1336_v0  ;;  %s1126_s21 = sshll.u32 %s1604_s17, 7  ;;  %467 = vst [vmem:[#allocation2] sm:$0x1] %v1337_v5  ;;  %v1294_v15 = vld [vmem:[%s1592_s5 + $0x20] sm:$0xff]   ;;  %v1295_v18 = vld [vmem:[%s1592_s5 + $0x18] sm:$0xff]   ;;  %v1296_v21 = vld [vmem:[%s1592_s5 + $0x10] sm:$0xff]   ;;  %s441_s13 = scalar_lea.vmem %s1587_s0, %s1604_s17 }
   0xe   : > { %s1424_s24 = scalar_lea.vmem %s1588_s1, %s1126_s21  ;;  %1215 = vmatprep.subr.bf16.mxu1 %v1337_v5  ;;  %1195 = vmatprep.subr.bf16.mxu0 %v1337_v5  ;;  %v1297_v24 = vld [vmem:[%s1592_s5 + $0x8] sm:$0xff]   ;;  %v1298_v25 = vld [vmem:[%s1592_s5] sm:$0xff]   ;;  %vm1338_vm0 = vmmov 0   ;;  %v1165_v27 = vld [vmem:[%s1590_s3 + $0x38] sm:$0xff]   ;;  %s458_s26 = scalar_lea.vmem %s1597_s10, %s1604_s17  ;;  %vm771_vm1 = vcmask 1040384   ;;  %vm932_vm6 = vcmask 130048  }
   0xf   : > { %v514_v1 = vld [vmem:[%s1424_s24 + $0x70] sm:$0xff]  ;;  %v512_v2 = vld [vmem:[%s1424_s24 + $0x60] sm:$0xff]  ;;  %v515_v3 = vld [vmem:[%s1424_s24 + $0x78] sm:$0xff]  ;;  %1216 = vmatpush3.bf16.msra.mxu1 %v1291_v7  ;;  %1231 = vmatprep.mubr.msk.bf16.mxu1 %vm1338_vm0, %v1337_v5  ;;  %v1157_v31 = vunpack.c.l.bf16 %v1165_v27  ;;  %v1158_v32 = vunpack.c.h.bf16 %v1165_v27  ;;  %vm772_vm2 = vsmask.f32 256  ;;  %vm982_vm7 = vcmask 516096  }
  0x10   : > { %588 = vperm.xlu0 %1289, %v514_v1   ;;  %578 = vperm.xlu1 %1290, %v512_v2   ;;  %v513_v4 = vld [vmem:[%s1424_s24 + $0x68] sm:$0xff]  ;;  %v511_v6 = vld [vmem:[%s1424_s24 + $0x58] sm:$0xff]  ;;  %v510_v8 = vld [vmem:[%s1424_s24 + $0x50] sm:$0xff]  ;;  %vm785_vm4 = vsmask.f32 7938 }
  0x11   : > { %v509_v10 = vld [vmem:[%s1424_s24 + $0x48] sm:$0xff]  ;;  %1217 = vmatprep.subr.bf16.mxu1 %v1337_v5  ;;  %v508_v11 = vld [vmem:[%s1424_s24 + $0x40] sm:$0xff]  ;;  %v507_v13 = vld [vmem:[%s1424_s24 + $0x38] sm:$0xff]  ;;  %1211 = vmatprep.mubr.msk.bf16.mxu0 %vm1338_vm0, %v1337_v5 }
  0x12   : > { %v506_v14 = vld [vmem:[%s1424_s24 + $0x30] sm:$0xff]  ;;  %v505_v16 = vld [vmem:[%s1424_s24 + $0x28] sm:$0xff]  ;;  %v504_v17 = vld [vmem:[%s1424_s24 + $0x20] sm:$0xff] }
  0x13   : > { %1218 = vmatpush3.bf16.msra.mxu1 %v1292_v9  ;;  %v503_v19 = vld [vmem:[%s1424_s24 + $0x18] sm:$0xff]  ;;  %v502_v20 = vld [vmem:[%s1424_s24 + $0x10] sm:$0xff]  ;;  %v501_v22 = vld [vmem:[%s1424_s24 + $0x8] sm:$0xff] }
  0x14   : > { %593 = vperm.xlu0 %1289, %v515_v3   ;;  %583 = vperm.xlu1 %1290, %v513_v4   ;;  %v500_v23 = vld [vmem:[%s1424_s24] sm:$0xff]  ;;  %s452_s24 = scalar_lea.vmem %s1589_s2, %s1604_s17  ;;  %v1164_v29 = vld [vmem:[%s1590_s3 + $0x30] sm:$0xff]   ;;  %v1163_v35 = vld [vmem:[%s1590_s3 + $0x28] sm:$0xff]  }
  0x15   : > { %1219 = vmatprep.subr.bf16.mxu1 %v1337_v5  ;;  %v662_v26 = vld [vmem:[%s452_s24] sm:$0x1]  ;;  %v1153_v33 = vunpack.c.l.bf16 %v1164_v29  ;;  %v1154_v34 = vunpack.c.h.bf16 %v1164_v29  ;;  %v1150_v40 = vunpack.c.h.bf16 %v1163_v35  ;;  %v1149_v43 = vunpack.c.l.bf16 %v1163_v35  ;;  %v1161_v53 = vld [vmem:[%s1590_s3 + $0x18] sm:$0xff]   ;;  %v1160_v61 = vld [vmem:[%s1590_s3 + $0x10] sm:$0xff]  }
  0x16   : > { %v1162_v45 = vld [vmem:[%s1590_s3 + $0x20] sm:$0xff]   ;;  %v1142_v56 = vunpack.c.h.bf16 %v1161_v53  ;;  %v1141_v60 = vunpack.c.l.bf16 %v1161_v53  ;;  %v1138_v0 = vunpack.c.h.bf16 %v1160_v61  ;;  %v1137_v4 = vunpack.c.l.bf16 %v1160_v61  ;;  %v1299_v29 = vld [vmem:[%s1593_s6 + $0x38] sm:$0xff]   ;;  %vm773_vm3 = vmand %vm771_vm1, %vm772_vm2 }
  0x17   : > { %1220 = vmatpush3.bf16.msra.mxu1 %v1293_v12  ;;  %v1146_v48 = vunpack.c.h.bf16 %v1162_v45  ;;  %v1145_v52 = vunpack.c.l.bf16 %v1162_v45  ;;  %v621_v45 = vld [vmem:[%s1591_s4] sm:$0x1]  ;;  %vm786_vm5 = vmand %vm771_vm1, %vm785_vm4 }
  0x18   : > { %573 = vperm.xlu1 %1290, %v511_v6   ;;  %568 = vperm.xlu0 %1289, %v510_v8   ;;  %v1159_v6 = vld [vmem:[%s1590_s3 + $0x8] sm:$0xff]  }
  0x19   : > { %1221 = vmatprep.subr.bf16.mxu1 %v1337_v5  ;;  %v1134_v9 = vunpack.c.h.bf16 %v1159_v6 }
  0x1b   : > { %1222 = vmatpush3.bf16.msra.mxu1 %v1294_v15 }
  0x1c   : > { %563 = vperm.xlu1 %1290, %v509_v10   ;;  %558 = vperm.xlu0 %1289, %v508_v11  }
  0x1d   : > { %1223 = vmatprep.subr.bf16.mxu1 %v1337_v5 }
  0x1f   : > { %1224 = vmatpush3.bf16.msra.mxu1 %v1295_v18 }
  0x20   : > { %553 = vperm.xlu1 %1290, %v507_v13   ;;  %548 = vperm.xlu0 %1289, %v506_v14   ;;  %v1133_v13 = vunpack.c.l.bf16 %v1159_v6  ;;  %v1128_v14 = vld [vmem:[%s1590_s3] sm:$0xff]  }
  0x21   : > { %1225 = vmatprep.subr.bf16.mxu1 %v1337_v5 }
  0x23   : > { %1226 = vmatpush3.bf16.msra.mxu1 %v1296_v21  ;;  %v1129_v21 = vunpack.c.l.bf16 %v1128_v14 }
  0x24   : > { %543 = vperm.xlu1 %1290, %v505_v16   ;;  %538 = vperm.xlu0 %1289, %v504_v17   ;;  %v1130_v17 = vunpack.c.h.bf16 %v1128_v14 }
  0x25   : > { %1227 = vmatprep.subr.bf16.mxu1 %v1337_v5 }
  0x27   : > { %1228 = vmatpush3.bf16.msra.mxu1 %v1297_v24 }
  0x28   : > { %533 = vperm.xlu1 %1290, %v503_v19   ;;  %528 = vperm.xlu0 %1289, %v502_v20  }
  0x29   : > { %1229 = vmatprep.subr.bf16.mxu1 %v1337_v5 }
  0x2b   : > { %1230 = vmatpush3.bf16.msra.mxu1 %v1298_v25 }
  0x2c   : > { %523 = vperm.xlu1 %1290, %v501_v22   ;;  %518 = vperm.xlu0 %1289, %v500_v23  }
  0x2d   : > { %1255 = vmatprep.subr.bf16.mxu1 %v1337_v5 }
  0x2e   : > { %1232 = vmatmul.mubr.bf16.vlgmr.msra.gmra.mxu1 %v662_v26 }
  0x2f   : > { %1257 = vmatprep.mubr.msk.bf16.mxu1 %vm1338_vm0, %v1337_v5 }
  0x8b   : > { %v589_v28 = vpop.permute.xlu0 %588  ;;  %v579_v30 = vpop.permute.xlu1 %578 }
  0x8c   : > { %v610_v38 = vmul.f32 %v1157_v31, %v589_v28  ;;  %v608_v41 = vmul.f32 %v1153_v33, %v579_v30  ;;  %v620_v28 = vld [vmem:[%s441_s13] sm:$0x1]  ;;  %v1300_v30 = vld [vmem:[%s1593_s6 + $0x30] sm:$0xff]   ;;  %v1301_v33 = vld [vmem:[%s1593_s6 + $0x28] sm:$0xff]   ;;  %s461_s13 = scalar_lea.vmem %s1598_s11, %s1604_s17 }
  0x8f   : > { %v594_v36 = vpop.permute.xlu0 %593  ;;  %v584_v37 = vpop.permute.xlu1 %583 }
  0x90   : > { %v611_v39 = vmul.f32 %v1158_v32, %v594_v36  ;;  %v609_v42 = vmul.f32 %v1154_v34, %v584_v37  ;;  %v1302_v36 = vld [vmem:[%s1593_s6 + $0x20] sm:$0xff]   ;;  %v1303_v37 = vld [vmem:[%s1593_s6 + $0x18] sm:$0xff]  }
  0x92   : > { %v619_v44 = vpack.c.bf16 %v611_v39, %v610_v38  ;;  %v618_v49 = vpack.c.bf16 %v609_v42, %v608_v41  ;;  %v1304_v38 = vld [vmem:[%s1593_s6 + $0x10] sm:$0xff]   ;;  %v1305_v39 = vld [vmem:[%s1593_s6 + $0x8] sm:$0xff]   ;;  %v1307_v41 = vld [vmem:[%s1595_s8] sm:$0xff]   ;;  %v1339_v42 = vmov 1966171168  }
  0x93   : > { %v574_v46 = vpop.permute.xlu1 %573  ;;  %v569_v47 = vpop.permute.xlu0 %568  ;;  %1256 = vmatpush3.bf16.msra.mxu1 %v1307_v41 }
  0x94   : > { %1196 = vmatpush3.bf16.msra.mxu0 %v619_v44  ;;  %v607_v50 = vmul.f32 %v1150_v40, %v574_v46  ;;  %v606_v51 = vmul.f32 %v1149_v43, %v569_v47  ;;  %v1306_v40 = vld [vmem:[%s1593_s6] sm:$0xff]   ;;  %v793_v43 = vunpack.c.l.s4 %v1339_v42  ;;  %v795_v44 = vlaneseq }
  0x95   : > { %1197 = vmatprep.subr.bf16.mxu0 %v1337_v5 }
  0x96   : > { %v617_v57 = vpack.c.bf16 %v607_v50, %v606_v51 }
  0x97   : > { %v564_v54 = vpop.permute.xlu1 %563  ;;  %v559_v55 = vpop.permute.xlu0 %558 }
  0x98   : > { %1198 = vmatpush3.bf16.msra.mxu0 %v618_v49  ;;  %v605_v58 = vmul.f32 %v1146_v48, %v564_v54  ;;  %v604_v59 = vmul.f32 %v1145_v52, %v559_v55  ;;  %v794_v48 = vunpack.c.0.s8 %v793_v43  ;;  %v796_v49 = vshrl.u32 %v795_v44, 7 }
  0x99   : > { %1199 = vmatprep.subr.bf16.mxu0 %v1337_v5 }
  0x9a   : > { %v616_v1 = vpack.c.bf16 %v605_v58, %v604_v59  ;;  %v797_v55 = vsub.s32 %v794_v48, %v796_v49 }
  0x9b   : > { %v554_v62 = vpop.permute.xlu1 %553  ;;  %v549_v63 = vpop.permute.xlu0 %548 }
  0x9c   : > { %1200 = vmatpush3.bf16.msra.mxu0 %v617_v57  ;;  %v603_v2 = vmul.f32 %v1142_v56, %v554_v62  ;;  %v602_v3 = vmul.f32 %v1141_v60, %v549_v63  ;;  %v774_v56 = vld [vmem:[%s458_s26] sm:$0x1] }
  0x9d   : > { %1201 = vmatprep.subr.bf16.mxu0 %v1337_v5  ;;  %v767_v62 = vld [vmem:[#allocation2] sm:$0x1] }
  0x9e   : > { %v615_v10 = vpack.c.bf16 %v603_v2, %v602_v3 }
  0x9f   : > { %v544_v7 = vpop.permute.xlu1 %543  ;;  %v539_v8 = vpop.permute.xlu0 %538 }
  0xa0   : > { %1202 = vmatpush3.bf16.msra.mxu0 %v616_v1  ;;  %v601_v11 = vmul.f32 %v1138_v0, %v544_v7  ;;  %v600_v12 = vmul.f32 %v1137_v4, %v539_v8 }
  0xa1   : > { %1203 = vmatprep.subr.bf16.mxu0 %v1337_v5 }
  0xa2   : > { %v614_v18 = vpack.c.bf16 %v601_v11, %v600_v12 }
  0xa3   : > { %v534_v15 = vpop.permute.xlu1 %533  ;;  %v529_v16 = vpop.permute.xlu0 %528 }
  0xa4   : > { %1204 = vmatpush3.bf16.msra.mxu0 %v615_v10  ;;  %v599_v19 = vmul.f32 %v1134_v9, %v534_v15  ;;  %v598_v20 = vmul.f32 %v1133_v13, %v529_v16  ;;  %v832_v10 = vld [vmem:[%s1594_s7] sm:$0x1] }
  0xa5   : > { %1205 = vmatprep.subr.bf16.mxu0 %v1337_v5 }
  0xa6   : > { %v613_v24 = vpack.c.bf16 %v599_v19, %v598_v20 }
  0xa7   : > { %v524_v22 = vpop.permute.xlu1 %523  ;;  %v519_v23 = vpop.permute.xlu0 %518 }
  0xa8   : > { %1206 = vmatpush3.bf16.msra.mxu0 %v614_v18  ;;  %v597_v25 = vmul.f32 %v1130_v17, %v524_v22  ;;  %v596_v26 = vmul.f32 %v1129_v21, %v519_v23  ;;  %v925_v18 = vld [vmem:[%s1596_s9] sm:$0x1] }
  0xa9   : > { %1207 = vmatprep.subr.bf16.mxu0 %v1337_v5 }
  0xaa   : > { %v612_v27 = vpack.c.bf16 %v597_v25, %v596_v26 }
  0xac   : > { %1208 = vmatpush3.bf16.msra.mxu0 %v613_v24 }
  0xad   : > { %1209 = vmatprep.subr.bf16.mxu0 %v1337_v5 }
  0xb0   : > { %1210 = vmatpush3.bf16.msra.mxu0 %v612_v27 }
  0xb1   : > { %1235 = vmatprep.subr.bf16.mxu0 %v1337_v5 }
  0xb3   : > { %1212 = vmatmul.mubr.bf16.vlgmr.msra.gmra.mxu0 %v620_v28 }
  0xb4   : > { %1236 = vmatpush3.bf16.msra.mxu0 %v1299_v29  ;;  %1251 = vmatprep.mubr.msk.bf16.mxu0 %vm1338_vm0, %v1337_v5 }
  0xb5   : > { %1237 = vmatprep.subr.bf16.mxu0 %v1337_v5 }
  0xb8   : > { %1238 = vmatpush3.bf16.msra.mxu0 %v1300_v30 }
  0xb9   : > { %1239 = vmatprep.subr.bf16.mxu0 %v1337_v5 }
  0xbc   : > { %1240 = vmatpush3.bf16.msra.mxu0 %v1301_v33 }
  0xbd   : > { %1241 = vmatprep.subr.bf16.mxu0 %v1337_v5 }
  0xc0   : > { %1242 = vmatpush3.bf16.msra.mxu0 %v1302_v36 }
  0xc1   : > { %1243 = vmatprep.subr.bf16.mxu0 %v1337_v5 }
  0xc4   : > { %1244 = vmatpush3.bf16.msra.mxu0 %v1303_v37 }
  0xc5   : > { %1245 = vmatprep.subr.bf16.mxu0 %v1337_v5 }
  0xc8   : > { %1246 = vmatpush3.bf16.msra.mxu0 %v1304_v38 }
  0xc9   : > { %1247 = vmatprep.subr.bf16.mxu0 %v1337_v5 }
  0xcc   : > { %1248 = vmatpush3.bf16.msra.mxu0 %v1305_v39 }
  0xcd   : > { %1249 = vmatprep.subr.bf16.mxu0 %v1337_v5 }
  0xd0   : > { %1250 = vmatpush3.bf16.msra.mxu0 %v1306_v40 }
  0xee   : > { %v761_v31 = vpop.f32.mrf.mxu1 }
  0xf0   : > { %v1233_v32 = vpop.f32.mrf.mxu1 }
  0xf2   : > { %v764_v34 = vpop.f32.mrf.mxu1 }
  0xf4   : > { %v1234_v35 = vpop.f32.mrf.mxu1 }
 0x173   : > { %v656_v46 = vpop.f32.mrf.mxu0 }
 0x174   : > { %v657_v47 = vadd.f32 %v656_v46, %v621_v45 }
 0x175   : > { %v1213_v50 = vpop.f32.mrf.mxu0 }
 0x176   : > { %v768_v5 = vadd.f32 %v761_v31, %v657_v47  ;;  %v780_v51 = vrot.slane %v657_v47, 7 }
 0x177   : > { %v659_v52 = vpop.f32.mrf.mxu0 }
 0x178   : > { %v769_v53 = vmax.f32 %v768_v5, 0.0  ;;  %v782_v54 = vadd.f32 %v780_v51, %v761_v31 }
 0x179   : > { %v1214_v57 = vpop.f32.mrf.mxu0 }
 0x17a   : > { %v770_v58 = vpack.c.bf16 %v769_v53, %v769_v53  ;;  %v783_v59 = vmax.f32 %v782_v54, 0.0  ;;  %v778_v0 = vadd.f32 %v769_v53, %v767_v62 }
 0x17c   : > { %v775_v60 = vsel %vm773_vm3, %v770_v58, %v774_v56  ;;  %v798_v61 = vrot.slane %v783_v59, %v797_v55  ;;  %v784_v3 = vpack.c.bf16 %v783_v59, %v783_v59 }
 0x17d   : > { %776 = vst [vmem:[%s458_s26] sm:$0x1] %v775_v60 }
 0x17e   : > { %v799_v63 = vcombine.high %v798_v61, %v798_v61 }
 0x180   : > { %v806_v1 = vrot.slane %v799_v63, %v797_v55 }
 0x182   : > { %v808_v2 = vadd.f32 %v806_v1, %v778_v0 }
 0x184   : > { %v787_v4 = vld [vmem:[%s458_s26] sm:$0x1]  ;;  %809 = vst [vmem:[#allocation2] sm:$0x1] %v808_v2 }
 0x185   : > { %v788_v6 = vsel %vm786_vm5, %v784_v3, %v787_v4 }
 0x186   : > { %789 = vst [vmem:[%s458_s26] sm:$0x1] %v788_v6 }
 0x18b   : > { %v813_v7 = vld [vmem:[#allocation2] sm:$0x1] }
 0x18c   : > { %v814_v8 = vmul.f32 0.25, %v813_v7 }
 0x18e   : > { %v815_v9 = vpack.c.bf16 %v814_v8, %v814_v8 }
 0x190   : > { %1252 = vmatmul.mubr.bf16.vlgmr.msra.gmra.mxu0 %v815_v9 }
 0x250   : > { %v915_v11 = vpop.f32.mrf.mxu0 }
 0x251   : > { %v916_v12 = vadd.f32 %v915_v11, %v832_v10 }
 0x252   : > { %v1253_v13 = vpop.f32.mrf.mxu0 }
 0x253   : > { %v921_v14 = vmax.f32 %v916_v12, 0.0 }
 0x254   : > { %v918_v15 = vpop.f32.mrf.mxu0 }
 0x255   : > { %v922_v16 = vpack.c.bf16 %v921_v14, %v921_v14 }
 0x256   : > { %v1254_v17 = vpop.f32.mrf.mxu0 }
 0x257   : > { %1258 = vmatmul.mubr.msk.bf16.vlgmr.msra.gmra.mxu1 %vm932_vm6, %v922_v16 }
 0x317   : > { %v970_v19 = vpop.f32.mrf.mxu1 }
 0x318   : > { %v971_v20 = vadd.f32 %v970_v19, %v925_v18 }
 0x319   : > { %v1259_v21 = vpop.f32.mrf.mxu1 }
 0x31a   : > { %v1123_v22 = vmul.f32 -1.442695, %v971_v20 }
 0x31b   : > { %v973_v23 = vpop.f32.mrf.mxu1 }
 0x31c   : > { %1308 = vpow2.f32 %v1123_v22 }
 0x31d   : > { %v1260_v24 = vpop.f32.mrf.mxu1 }
 0x329   : > { %v1309_v25 = vpop.eup %1308 }
 0x32a   : > { %v979_v26 = vadd.f32 1.0, %v1309_v25 }
 0x32c   : > { %1310 = vrcp.f32 %v979_v26 }
 0x339   : > { %v1311_v27 = vpop.eup %1310 }
 0x33a   : > { %983 = vst.msk [vmem:[%s461_s13] sm:$0x1] %vm982_vm7, %v1311_v27 }
 0x33b PF: > { %s22_s19 = sadd.s32 1, %s1334_s19   ;;  %s1599_s17 = smov %s1330_s18 }
 0x33c   : > { %p19_p5 = scmp.ge.s32.totalorder %s22_s19, 4   ;;  %s1600_s18 = smov %s1602_s20 }
 0x33e   :  { %21 = sbr.rel (!%p19_p5) target bundleno = 2 (0x2), region = 116 }

// kernel: mcavm_unet_forward.13
= control target key start
LH: loop header
LB: loop body
LE: loop exit
PB: predicated region body
PF: predicated region fallthrough
CT: control target
= control target key end

     0   :  { %s1247_s17 = smov 0   ;;  %s1249_s18 = smov 0   ;;  %s1379_s0 = inlined_call_operand.vmem [shape: bf16[2,4,64], index: 0, kind: input, shape index: {}]   ;;  %s1380_s1 = inlined_call_operand.vmem [shape: f32[2,64,1], index: 1, kind: input, shape index: {}]   ;;  %s1381_s2 = inlined_call_operand.vmem [shape: bf16[2,8,64], index: 2, kind: input, shape index: {}]   ;;  %s1382_s3 = inlined_call_operand.vmem [shape: bf16[64,64], index: 3, kind: input, shape index: {}]   ;;  %s1383_s4 = inlined_call_operand.vmem [shape: f32[1,64], index: 4, kind: input, shape index: {}]   ;;  %s1384_s5 = inlined_call_operand.vmem [shape: bf16[64,64], index: 5, kind: input, shape index: {}]   ;;  %s1385_s6 = inlined_call_operand.vmem [shape: bf16[64,8], index: 6, kind: input, shape index: {}]   ;;  %s1386_s7 = inlined_call_operand.vmem [shape: f32[1,8], index: 7, kind: input, shape index: {}]   ;;  %s1387_s8 = inlined_call_operand.vmem [shape: bf16[8,32], index: 8, kind: input, shape index: {}]   ;;  %s1388_s9 = inlined_call_operand.vmem [shape: f32[1,32], index: 9, kind: input, shape index: {}]   ;;  %s1389_s10 = inlined_call_operand.vmem [shape: bf16[2,8,64], index: 10, kind: output, shape index: {0}]   ;;  %s1390_s11 = inlined_call_operand.vmem [shape: f32[2,1,32], index: 11, kind: output, shape index: {1}]  }
   0x1   :  { %s1251_s19 = smov 0  }
   0x2 LB: > { %s34_s20 = sadd.s32 1, %s1178_s18  ;;  %p1018_p0 = scmp.ge.s32.totalorder %s1182_s19, 1  ;;  %s1182_s19 = sphi %s1251_s19, %s22_s19   ;;  %s1178_s18 = sphi %s1249_s18, %s1392_s18   ;;  %s1174_s17 = sphi %s1247_s17, %s1391_s17  }
   0x3   : > { %p36_p1 = scmp.ge.s32.totalorder %s34_s20, 2  ;;  %p382_p2 = scmp.lt.s32.totalorder %s1182_s19, 3 }
   0x5   : > { %s1394_s20 = smov (%p36_p1, %s34_s20), 0  ;;  %p383_p3 = pnand %p1018_p0, %p382_p2 }
   0x6   : > { %p441_p4 = scmp.lt.s32.totalorder (!%p383_p3), %s1174_s17, 1 }
   0x7   : > { %386 = sbr.rel (%p383_p3) target bundleno = 824 (0x338), region = 60 }
   0xc   : > { %v1184_v0 = vmov 0   ;;  %s1396_s17 = smov (!%p441_p4, %s1174_s17), 1  ;;  %v1185_v5 = vmov 0.0   ;;  %v1148_v6 = vld [vmem:[%s1384_s5 + $0x18] sm:$0xff]   ;;  %v1149_v7 = vld [vmem:[%s1384_s5 + $0x10] sm:$0xff]   ;;  %v1150_v10 = vld [vmem:[%s1384_s5 + $0x8] sm:$0xff]  }
   0xd   : > { %1147 = vset.pattern.permute.xlu1 %v1184_v0  ;;  %1146 = vset.pattern.permute.xlu0 %v1184_v0  ;;  %s1040_s21 = sshll.u32 %s1396_s17, 6  ;;  %v1151_v13 = vld [vmem:[%s1384_s5] sm:$0xff]   ;;  %s1022_s14 = sshll.u32 %s1396_s17, 2  ;;  %vm1186_vm0 = vmmov 0   ;;  %vm561_vm1 = vcmask 523264   ;;  %vm475_vm2 = vcmask 516096  }
   0xe   : > { %s452_s24 = scalar_lea.vmem %s1380_s1, %s1040_s21  ;;  %1089 = vmatprep.subr.bf16.mxu1 %v1185_v5  ;;  %1077 = vmatprep.subr.bf16.mxu0 %v1185_v5  ;;  %s459_s21 = scalar_lea.vmem %s1381_s2, %s1022_s14  ;;  %476 = vst.msk [vmem:[#allocation2] sm:$0x1] %vm475_vm2, %v1185_v5  ;;  %v1059_v15 = vld [vmem:[%s1382_s3 + $0x18] sm:$0xff]   ;;  %v1058_v17 = vld [vmem:[%s1382_s3 + $0x10] sm:$0xff]   ;;  %v1057_v23 = vld [vmem:[%s1382_s3 + $0x8] sm:$0xff]   ;;  %vm836_vm3 = vcmask 1043456  }
   0xf   : > { %v499_v1 = vld [vmem:[%s452_s24 + $0x30] sm:$0xff]  ;;  %v497_v2 = vld [vmem:[%s452_s24 + $0x20] sm:$0xff]  ;;  %v500_v3 = vld [vmem:[%s452_s24 + $0x38] sm:$0xff]  ;;  %1090 = vmatpush3.bf16.msra.mxu1 %v1148_v6  ;;  %1097 = vmatprep.mubr.msk.bf16.mxu1 %vm1186_vm0, %v1185_v5  ;;  %v1055_v19 = vunpack.c.l.bf16 %v1059_v15  ;;  %v1056_v20 = vunpack.c.h.bf16 %v1059_v15  ;;  %v1051_v21 = vunpack.c.l.bf16 %v1058_v17  ;;  %v1052_v22 = vunpack.c.h.bf16 %v1058_v17  ;;  %s1019_s30 = sshll.u32 %s1396_s17, 1  ;;  %s466_s16 = scalar_lea.vmem %s1389_s10, %s1022_s14 }
  0x10   : > { %533 = vperm.xlu0 %1146, %v499_v1   ;;  %523 = vperm.xlu1 %1147, %v497_v2   ;;  %v498_v4 = vld [vmem:[%s452_s24 + $0x28] sm:$0xff]  ;;  %v496_v8 = vld [vmem:[%s452_s24 + $0x18] sm:$0xff]  ;;  %v495_v9 = vld [vmem:[%s452_s24 + $0x10] sm:$0xff]  ;;  %v1048_v28 = vunpack.c.h.bf16 %v1057_v23  ;;  %v1047_v31 = vunpack.c.l.bf16 %v1057_v23  ;;  %s447_s15 = scalar_lea.vmem %s1379_s0, %s1019_s30  ;;  %vm687_vm4 = vcmask 517120   ;;  %vm702_vm5 = vcmask 517121   ;;  %s469_s26 = scalar_lea.vmem %s1390_s11, %s1396_s17 }
  0x11   : > { %1091 = vmatprep.subr.bf16.mxu1 %v1185_v5  ;;  %v494_v11 = vld [vmem:[%s452_s24 + $0x8] sm:$0xff]  ;;  %v493_v12 = vld [vmem:[%s452_s24] sm:$0xff]  ;;  %1085 = vmatprep.mubr.msk.bf16.mxu0 %vm1186_vm0, %v1185_v5  ;;  %v1152_v52 = vld [vmem:[%s1385_s6 + $0x18] sm:$0xff]   ;;  %vm715_vm6 = vcmask 518146   ;;  %vm732_vm7 = vcmask 519171   ;;  %vm832_vm8 = vcmask 64512  }
  0x12   : > { %v605_v14 = vld [vmem:[%s459_s21] sm:$0xf]  ;;  %v1153_v53 = vld [vmem:[%s1385_s6 + $0x10] sm:$0xff]   ;;  %v1154_v54 = vld [vmem:[%s1385_s6 + $0x8] sm:$0xff]   ;;  %vm886_vm9 = vcmask 253952  }
  0x13   : > { %1092 = vmatpush3.bf16.msra.mxu1 %v1149_v7  ;;  %v1042_v33 = vld [vmem:[%s1382_s3] sm:$0xff]  }
  0x14   : > { %538 = vperm.xlu0 %1146, %v500_v3   ;;  %528 = vperm.xlu1 %1147, %v498_v4   ;;  %v1044_v36 = vunpack.c.h.bf16 %v1042_v33  ;;  %v1043_v40 = vunpack.c.l.bf16 %v1042_v33  ;;  %v553_v47 = vld [vmem:[%s447_s15] sm:$0x3] }
  0x15   : > { %1093 = vmatprep.subr.bf16.mxu1 %v1185_v5  ;;  %v1155_v55 = vld [vmem:[%s1385_s6] sm:$0xff]  }
  0x16   : > { %v830_v56 = vld [vmem:[%s1387_s8] sm:$0xf] }
  0x17   : > { %1094 = vmatpush3.bf16.msra.mxu1 %v1150_v10  ;;  %v838_v57 = vsel %vm836_vm3, %v830_v56, 0  ;;  %v1024_v58 = vld [vmem:[%s1383_s4] ss:$0 sm:$0xff] }
  0x18   : > { %518 = vperm.xlu1 %1147, %v496_v8   ;;  %513 = vperm.xlu0 %1146, %v495_v9  }
  0x19   : > { %1095 = vmatprep.subr.bf16.mxu1 %v1185_v5 }
  0x1b   : > { %1096 = vmatpush3.bf16.msra.mxu1 %v1151_v13 }
  0x1c   : > { %508 = vperm.xlu1 %1147, %v494_v11   ;;  %503 = vperm.xlu0 %1146, %v493_v12  }
  0x1d   : > { %1113 = vmatprep.subr.bf16.mxu1 %v1185_v5 }
  0x1e   : > { %1098 = vmatmul.mubr.msk.bf16.vlgmr.msra.gmra.mxu1 %vm561_vm1, %v605_v14 }
  0x1f   : > { %1115 = vmatprep.mubr.msk.bf16.mxu1 %vm1186_vm0, %v1185_v5  ;;  %1114 = vmatpush3.bf16.msra.mxu1 %v838_v57 }
  0x8b   : > { %v534_v16 = vpop.permute.xlu0 %533  ;;  %v524_v18 = vpop.permute.xlu1 %523 }
  0x8c   : > { %v547_v26 = vmul.f32 %v1055_v19, %v534_v16  ;;  %v545_v29 = vmul.f32 %v1051_v21, %v524_v18 }
  0x8f   : > { %v539_v24 = vpop.permute.xlu0 %538  ;;  %v529_v25 = vpop.permute.xlu1 %528 }
  0x90   : > { %v548_v27 = vmul.f32 %v1056_v20, %v539_v24  ;;  %v546_v30 = vmul.f32 %v1052_v22, %v529_v25 }
  0x92   : > { %v552_v32 = vpack.c.bf16 %v548_v27, %v547_v26  ;;  %v551_v37 = vpack.c.bf16 %v546_v30, %v545_v29 }
  0x93   : > { %v519_v34 = vpop.permute.xlu1 %518  ;;  %v514_v35 = vpop.permute.xlu0 %513 }
  0x94   : > { %1078 = vmatpush3.bf16.msra.mxu0 %v552_v32  ;;  %v544_v38 = vmul.f32 %v1048_v28, %v519_v34  ;;  %v543_v39 = vmul.f32 %v1047_v31, %v514_v35  ;;  %v681_v35 = vld [vmem:[#allocation2] sm:$0x1] }
  0x95   : > { %1079 = vmatprep.subr.bf16.mxu0 %v1185_v5 }
  0x96   : > { %v550_v43 = vpack.c.bf16 %v544_v38, %v543_v39 }
  0x97   : > { %v509_v41 = vpop.permute.xlu1 %508  ;;  %v504_v42 = vpop.permute.xlu0 %503 }
  0x98   : > { %1080 = vmatpush3.bf16.msra.mxu0 %v551_v37  ;;  %v542_v44 = vmul.f32 %v1044_v36, %v509_v41  ;;  %v541_v45 = vmul.f32 %v1043_v40, %v504_v42 }
  0x99   : > { %1081 = vmatprep.subr.bf16.mxu0 %v1185_v5 }
  0x9a   : > { %v549_v46 = vpack.c.bf16 %v542_v44, %v541_v45 }
  0x9c   : > { %1082 = vmatpush3.bf16.msra.mxu0 %v550_v43 }
  0x9d   : > { %1083 = vmatprep.subr.bf16.mxu0 %v1185_v5 }
  0xa0   : > { %1084 = vmatpush3.bf16.msra.mxu0 %v549_v46 }
  0xa1   : > { %1101 = vmatprep.subr.bf16.mxu0 %v1185_v5 }
  0xa3   : > { %1086 = vmatmul.mubr.msk.bf16.vlgmr.msra.gmra.mxu0 %vm561_vm1, %v553_v47 }
  0xa4   : > { %1109 = vmatprep.mubr.msk.bf16.mxu0 %vm1186_vm0, %v1185_v5  ;;  %1102 = vmatpush3.bf16.msra.mxu0 %v1152_v52 }
  0xa5   : > { %1103 = vmatprep.subr.bf16.mxu0 %v1185_v5 }
  0xa8   : > { %1104 = vmatpush3.bf16.msra.mxu0 %v1153_v53 }
  0xa9   : > { %1105 = vmatprep.subr.bf16.mxu0 %v1185_v5 }
  0xac   : > { %1106 = vmatpush3.bf16.msra.mxu0 %v1154_v54 }
  0xad   : > { %1107 = vmatprep.subr.bf16.mxu0 %v1185_v5 }
  0xb0   : > { %1108 = vmatpush3.bf16.msra.mxu0 %v1155_v55 }
  0xde   : > { %v675_v48 = vpop.f32.mrf.mxu1 }
  0xe0   : > { %v1099_v49 = vpop.f32.mrf.mxu1 }
  0xe2   : > { %v678_v50 = vpop.f32.mrf.mxu1 }
  0xe3   : > { %v760_v50 = vld [vmem:[%s1386_s7] sm:$0x1] }
  0xe4   : > { %v1100_v51 = vpop.f32.mrf.mxu1 }
 0x163   : > { %v599_v59 = vpop.f32.mrf.mxu0 }
 0x164   : > { %v600_v60 = vadd.f32 %v1024_v58, %v599_v59  ;;  %v831_v58 = vld [vmem:[%s1388_s9] sm:$0x1] }
 0x165   : > { %v1087_v61 = vpop.f32.mrf.mxu0 }
 0x166   : > { %v682_v62 = vadd.f32 %v675_v48, %v600_v60  ;;  %v697_v63 = vrot.slane %v600_v60, 6  ;;  %v727_v0 = vrot.slane %v600_v60, 4 }
 0x167   : > { %v602_v1 = vpop.f32.mrf.mxu0 }
 0x168   : > { %v683_v2 = vmax.f32 %v682_v62, 0.0  ;;  %v699_v3 = vadd.f32 %v697_v63, %v675_v48  ;;  %v729_v4 = vadd.f32 %v727_v0, %v675_v48 }
 0x169   : > { %v1088_v5 = vpop.f32.mrf.mxu0 }
 0x16a   : > { %v684_v6 = vpack.c.bf16 %v683_v2, %v683_v2  ;;  %v688_v7 = vsel %vm687_vm4, %v683_v2, 0.0  ;;  %v700_v8 = vmax.f32 %v699_v3, 0.0  ;;  %v730_v9 = vmax.f32 %v729_v4, 0.0 }
 0x16b   : > { %v689_v10 = vrot.slane %v688_v7, 4 }
 0x16c   : > { %686 = vst.msk [vmem:[%s466_s16] sm:$0x1] %vm475_vm2, %v684_v6  ;;  %v701_v11 = vpack.c.bf16 %v700_v8, %v700_v8  ;;  %v705_v12 = vrot.slane %v700_v8, 2  ;;  %v717_v13 = vrot.slane %v700_v8, 4  ;;  %v731_v14 = vpack.c.bf16 %v730_v9, %v730_v9 }
 0x16d   : > { %v690_v15 = vadd.f32 %v689_v10, %v688_v7  ;;  %v735_v16 = vrot.slane %v730_v9, 6 }
 0x16e   : > { %703 = vst.msk [vmem:[%s466_s16] sm:$0x2] %vm702_vm5, %v701_v11  ;;  %v707_v17 = vsel %vm687_vm4, %v705_v12, 0.0  ;;  %v719_v18 = vsel %vm687_vm4, %v717_v13, 0.0 }
 0x16f   : > { %716 = vst.msk [vmem:[%s466_s16] sm:$0x4] %vm715_vm6, %v701_v11  ;;  %v691_v19 = vrot.slane %v690_v15, 2  ;;  %v708_v20 = vrot.slane %v707_v17, 4  ;;  %v720_v21 = vrot.slane %v719_v18, 4  ;;  %v737_v22 = vsel %vm687_vm4, %v735_v16, 0.0 }
 0x170   : > { %733 = vst.msk [vmem:[%s466_s16] sm:$0x8] %vm732_vm7, %v731_v14  ;;  %v738_v23 = vrot.slane %v737_v22, 4 }
 0x171   : > { %v692_v24 = vadd.f32 %v691_v19, %v690_v15  ;;  %v709_v25 = vadd.f32 %v708_v20, %v707_v17  ;;  %v721_v26 = vadd.f32 %v720_v21, %v719_v18 }
 0x172   : > { %v739_v27 = vadd.f32 %v738_v23, %v737_v22 }
 0x173   : > { %v693_v28 = vrot.slane %v692_v24, 1  ;;  %v710_v29 = vrot.slane %v709_v25, 2  ;;  %v722_v30 = vrot.slane %v721_v26, 2 }
 0x174   : > { %v740_v31 = vrot.slane %v739_v27, 2 }
 0x175   : > { %v694_v32 = vadd.f32 %v693_v28, %v692_v24  ;;  %v711_v33 = vadd.f32 %v710_v29, %v709_v25  ;;  %v723_v34 = vadd.f32 %v722_v30, %v721_v26 }
 0x176   : > { %v741_v36 = vadd.f32 %v740_v31, %v739_v27 }
 0x177   : > { %v712_v37 = vrot.slane %v711_v33, 1  ;;  %v724_v38 = vrot.slane %v723_v34, 1  ;;  %v695_v39 = vadd.f32 %v694_v32, %v681_v35 }
 0x178   : > { %v742_v41 = vrot.slane %v741_v36, 1 }
 0x179   : > { %v713_v40 = vadd.f32 %v712_v37, %v711_v33  ;;  %v725_v43 = vadd.f32 %v724_v38, %v723_v34 }
 0x17a   : > { %v743_v45 = vadd.f32 %v742_v41, %v741_v36 }
 0x17b   : > { %v714_v42 = vadd.f32 %v713_v40, %v695_v39 }
 0x17d   : > { %v726_v44 = vadd.f32 %v725_v43, %v714_v42 }
 0x17f   : > { %v744_v46 = vadd.f32 %v743_v45, %v726_v44 }
 0x181   : > { %745 = vst.msk [vmem:[#allocation2] sm:$0x1] %vm475_vm2, %v744_v46 }
 0x188   : > { %v749_v47 = vld [vmem:[#allocation2] sm:$0x1] }
 0x189   : > { %v750_v48 = vmul.f32 0.0625, %v749_v47 }
 0x18b   : > { %v751_v49 = vpack.c.bf16 %v750_v48, %v750_v48 }
 0x18d   : > { %1110 = vmatmul.mubr.msk.bf16.vlgmr.msra.gmra.mxu0 %vm561_vm1, %v751_v49 }
 0x24d   : > { %v822_v51 = vpop.f32.mrf.mxu0 }
 0x24e   : > { %v823_v52 = vadd.f32 %v822_v51, %v760_v50 }
 0x24f   : > { %v1111_v53 = vpop.f32.mrf.mxu0 }
 0x250   : > { %v828_v54 = vmax.f32 %v823_v52, 0.0 }
 0x251   : > { %v825_v55 = vpop.f32.mrf.mxu0 }
 0x252   : > { %v829_v56 = vpack.c.bf16 %v828_v54, %v828_v54 }
 0x253   : > { %v1112_v57 = vpop.f32.mrf.mxu0 }
 0x254   : > { %1116 = vmatmul.mubr.msk.bf16.vlgmr.msra.gmra.mxu1 %vm832_vm8, %v829_v56 }
 0x314   : > { %v874_v59 = vpop.f32.mrf.mxu1 }
 0x315   : > { %v875_v60 = vadd.f32 %v874_v59, %v831_v58 }
 0x316   : > { %v1117_v61 = vpop.f32.mrf.mxu1 }
 0x317   : > { %v1037_v62 = vmul.f32 -1.442695, %v875_v60 }
 0x318   : > { %v877_v63 = vpop.f32.mrf.mxu1 }
 0x319   : > { %1156 = vpow2.f32 %v1037_v62 }
 0x31a   : > { %v1118_v0 = vpop.f32.mrf.mxu1 }
 0x326   : > { %v1157_v1 = vpop.eup %1156 }
 0x327   : > { %v883_v2 = vadd.f32 1.0, %v1157_v1 }
 0x329   : > { %1158 = vrcp.f32 %v883_v2 }
 0x336   : > { %v1159_v3 = vpop.eup %1158 }
 0x337   : > { %887 = vst.msk [vmem:[%s469_s26] sm:$0x1] %vm886_vm9, %v1159_v3 }
 0x338 PF: > { %s22_s19 = sadd.s32 1, %s1182_s19   ;;  %s1391_s17 = smov %s1178_s18 }
 0x339   : > { %p19_p5 = scmp.ge.s32.totalorder %s22_s19, 4   ;;  %s1392_s18 = smov %s1394_s20 }
 0x33b   :  { %21 = sbr.rel (!%p19_p5) target bundleno = 2 (0x2), region = 116 }

// kernel: mcavm_unet_forward.15
= control target key start
LH: loop header
LB: loop body
LE: loop exit
PB: predicated region body
PF: predicated region fallthrough
CT: control target
= control target key end

     0   :  { %s623_s15 = smov 0   ;;  %s625_s16 = smov 0   ;;  %s674_s0 = inlined_call_operand.vmem [shape: bf16[2,64,16], index: 0, kind: input, shape index: {}]   ;;  %s675_s1 = inlined_call_operand.vmem [shape: f32[2,16,1], index: 1, kind: input, shape index: {}]   ;;  %s676_s2 = inlined_call_operand.vmem [shape: bf16[16,128], index: 2, kind: input, shape index: {}]   ;;  %s677_s3 = inlined_call_operand.vmem [shape: f32[1,128], index: 3, kind: input, shape index: {}]   ;;  %s678_s4 = inlined_call_operand.vmem [shape: f32[2,64,128], index: 4, kind: output, shape index: {}]  }
   0x1   :  { %s627_s17 = smov 0  }
   0x2 LB: > { %s26_s18 = sadd.s32 1, %s591_s16  ;;  %p501_p0 = scmp.ge.s32.totalorder %s595_s17, 1  ;;  %s595_s17 = sphi %s627_s17, %s14_s17   ;;  %s591_s16 = sphi %s625_s16, %s680_s16   ;;  %s587_s15 = sphi %s623_s15, %s679_s15  }
   0x3   : > { %p28_p1 = scmp.ge.s32.totalorder %s26_s18, 2  ;;  %p193_p2 = scmp.lt.s32.totalorder %s595_s17, 3 }
   0x5   : > { %s682_s18 = smov (%p28_p1, %s26_s18), 0  ;;  %p194_p3 = pnand %p501_p0, %p193_p2 }
   0x6   : > { %p233_p4 = scmp.lt.s32.totalorder (!%p194_p3), %s587_s15, 1 }
   0x7   : > { %197 = sbr.rel (%p194_p3) target bundleno = 354 (0x162), region = 36 }
   0xc   : > { %v597_v0 = vmov 0   ;;  %s684_s15 = smov (!%p233_p4, %s587_s15), 1  ;;  %vm312_vm0 = vcmask 130048   ;;  %v523_v5 = vld [vmem:[%s676_s2] sm:$0xff]  }
   0xd   : > { %568 = vset.pattern.permute.xlu0 %v597_v0  ;;  %s520_s19 = sshll.u32 %s684_s15, 4  ;;  %s519_s23 = sshll.u32 %s684_s15, 5  ;;  %v524_v7 = vunpack.c.l.bf16 %v523_v5  ;;  %v525_v8 = vunpack.c.h.bf16 %v523_v5  ;;  %v508_v15 = vld [vmem:[%s677_s3] ss:$0 sm:$0xff] }
   0xe   : > { %s246_s22 = scalar_lea.vmem %s675_s1, %s520_s19  ;;  %s240_s26 = scalar_lea.vmem %s674_s0, %s519_s23 }
   0xf   : > { %v262_v1 = vld [vmem:[%s246_s22] sm:$0xff]  ;;  %v263_v2 = vld [vmem:[%s246_s22 + $0x8] sm:$0xff]  ;;  %v570_v4 = vld [vmem:[%s240_s26 + $0x10] sm:$0xff]   ;;  %s521_s29 = sshll.u32 %s684_s15, 6 }
  0x10   : > { %266 = vperm.xlu0 %568, %v262_v1   ;;  %v569_v3 = vld [vmem:[%s240_s26] sm:$0xff]   ;;  %537 = vmatprep.mubr.msk.bf16.mxu1 %vm312_vm0, %v570_v4  ;;  %v571_v13 = vld [vmem:[%s240_s26 + $0x8] sm:$0xff]   ;;  %v572_v14 = vld [vmem:[%s240_s26 + $0x18] sm:$0xff]   ;;  %s255_s8 = scalar_lea.vmem %s678_s4, %s521_s29 }
  0x11   : > { %533 = vmatprep.mubr.msk.bf16.mxu0 %vm312_vm0, %v569_v3 }
  0x14   : > { %271 = vperm.xlu0 %568, %v263_v2  }
  0x8b   : > { %v267_v6 = vpop.permute.xlu0 %266 }
  0x8c   : > { %v274_v10 = vmul.f32 %v524_v7, %v267_v6 }
  0x8f   : > { %v272_v9 = vpop.permute.xlu0 %271 }
  0x90   : > { %v275_v11 = vmul.f32 %v525_v8, %v272_v9 }
  0x92   : > { %v276_v12 = vpack.c.bf16 %v275_v11, %v274_v10 }
  0x94   : > { %531 = vmatprep.subr.bf16.mxu0 %v276_v12  ;;  %541 = vmatprep.subr.bf16.mxu1 %v276_v12 }
  0x95   : > { %532 = vmatpush3.bf16.msra.mxu0 %v276_v12  ;;  %542 = vmatpush3.bf16.msra.mxu1 %v276_v12 }
  0x98   : > { %534 = vmatmul.mubr.msk.bf16.vlgmr.msra.gmra.mxu0 %vm312_vm0, %v571_v13  ;;  %538 = vmatmul.mubr.msk.bf16.vlgmr.msra.gmra.mxu1 %vm312_vm0, %v572_v14 }
 0x158   : > { %v535_v16 = vpop.f32.mrf.mxu0  ;;  %v539_v17 = vpop.f32.mrf.mxu1 }
 0x159   : > { %v368_v18 = vadd.f32 %v535_v16, %v508_v15  ;;  %v384_v19 = vadd.f32 %v539_v17, %v508_v15 }
 0x15a   : > { %v359_v20 = vpop.f32.mrf.mxu0  ;;  %v375_v21 = vpop.f32.mrf.mxu1 }
 0x15b   : > { %392 = vst [vmem:[%s255_s8 + $0x10] sm:$0xff] %v368_v18  ;;  %396 = vst [vmem:[%s255_s8 + $0x30] sm:$0xff] %v384_v19  ;;  %v360_v22 = vadd.f32 %v508_v15, %v359_v20  ;;  %v376_v23 = vadd.f32 %v508_v15, %v375_v21 }
 0x15c   : > { %v536_v24 = vpop.f32.mrf.mxu0  ;;  %v540_v25 = vpop.f32.mrf.mxu1 }
 0x15d   : > { %390 = vst [vmem:[%s255_s8] sm:$0xff] %v360_v22  ;;  %394 = vst [vmem:[%s255_s8 + $0x20] sm:$0xff] %v376_v23  ;;  %v371_v26 = vadd.f32 %v536_v24, %v508_v15  ;;  %v387_v27 = vadd.f32 %v540_v25, %v508_v15 }
 0x15e   : > { %v362_v28 = vpop.f32.mrf.mxu0  ;;  %v378_v29 = vpop.f32.mrf.mxu1 }
 0x15f   : > { %393 = vst [vmem:[%s255_s8 + $0x18] sm:$0xff] %v371_v26  ;;  %397 = vst [vmem:[%s255_s8 + $0x38] sm:$0xff] %v387_v27  ;;  %v363_v30 = vadd.f32 %v508_v15, %v362_v28  ;;  %v379_v31 = vadd.f32 %v508_v15, %v378_v29 }
 0x161   : > { %391 = vst [vmem:[%s255_s8 + $0x8] sm:$0xff] %v363_v30  ;;  %395 = vst [vmem:[%s255_s8 + $0x28] sm:$0xff] %v379_v31 }
 0x162 PF: > { %s14_s17 = sadd.s32 1, %s595_s17   ;;  %s679_s15 = smov %s591_s16 }
 0x163   : > { %p11_p5 = scmp.ge.s32.totalorder %s14_s17, 4   ;;  %s680_s16 = smov %s682_s18 }
 0x165   :  { %13 = sbr.rel (!%p11_p5) target bundleno = 2 (0x2), region = 69 }

// kernel: mcavm_unet_forward.14
= control target key start
LH: loop header
LB: loop body
LE: loop exit
PB: predicated region body
PF: predicated region fallthrough
CT: control target
= control target key end

     0   :  { %s1279_s17 = smov 0   ;;  %s1281_s18 = smov 0   ;;  %s1396_s0 = inlined_call_operand.vmem [shape: bf16[2,16,32], index: 0, kind: input, shape index: {}]   ;;  %s1397_s1 = inlined_call_operand.vmem [shape: f32[2,32,1], index: 1, kind: input, shape index: {}]   ;;  %s1398_s2 = inlined_call_operand.vmem [shape: bf16[2,32,32], index: 2, kind: input, shape index: {}]   ;;  %s1399_s3 = inlined_call_operand.vmem [shape: bf16[32,32], index: 3, kind: input, shape index: {}]   ;;  %s1400_s4 = inlined_call_operand.vmem [shape: f32[1,32], index: 4, kind: input, shape index: {}]   ;;  %s1401_s5 = inlined_call_operand.vmem [shape: bf16[32,32], index: 5, kind: input, shape index: {}]   ;;  %s1402_s6 = inlined_call_operand.vmem [shape: bf16[32,4], index: 6, kind: input, shape index: {}]   ;;  %s1403_s7 = inlined_call_operand.vmem [shape: f32[1,4], index: 7, kind: input, shape index: {}]   ;;  %s1404_s8 = inlined_call_operand.vmem [shape: bf16[4,16], index: 8, kind: input, shape index: {}]   ;;  %s1405_s9 = inlined_call_operand.vmem [shape: f32[1,16], index: 9, kind: input, shape index: {}]   ;;  %s1406_s10 = inlined_call_operand.vmem [shape: bf16[2,32,32], index: 10, kind: output, shape index: {0}]   ;;  %s1407_s11 = inlined_call_operand.vmem [shape: f32[2,1,16], index: 11, kind: output, shape index: {1}]  }
   0x1   :  { %s1283_s19 = smov 0  }
   0x2 LB: > { %s34_s20 = sadd.s32 1, %s1210_s18  ;;  %p1072_p0 = scmp.ge.s32.totalorder %s1214_s19, 1  ;;  %s1214_s19 = sphi %s1283_s19, %s22_s19   ;;  %s1210_s18 = sphi %s1281_s18, %s1409_s18   ;;  %s1206_s17 = sphi %s1279_s17, %s1408_s17  }
   0x3   : > { %p36_p1 = scmp.ge.s32.totalorder %s34_s20, 2  ;;  %p388_p2 = scmp.lt.s32.totalorder %s1214_s19, 3 }
   0x5   : > { %s1411_s20 = smov (%p36_p1, %s34_s20), 0  ;;  %p389_p3 = pnand %p1072_p0, %p388_p2 }
   0x6   : > { %p454_p4 = scmp.lt.s32.totalorder (!%p389_p3), %s1206_s17, 1 }
   0x7   : > { %392 = sbr.rel (%p389_p3) target bundleno = 824 (0x338), region = 60 }
   0xc   : > { %v1216_v0 = vmov 0   ;;  %s1413_s17 = smov (!%p454_p4, %s1206_s17), 1  ;;  %v1181_v1 = vld [vmem:[%s1401_s5 + $0x8] sm:$0xff]   ;;  %v1182_v6 = vld [vmem:[%s1401_s5] sm:$0xff]   ;;  %vm496_vm0 = vcmask 253952   ;;  %v1217_v7 = vmov 0.0  }
   0xd   : > { %1180 = vset.pattern.permute.xlu1 %v1216_v0  ;;  %1179 = vset.pattern.permute.xlu0 %v1216_v0  ;;  %s1098_s23 = sshll.u32 %s1413_s17, 5  ;;  %s1099_s29 = sshll.u32 %s1413_s17, 4  ;;  %497 = vst.msk [vmem:[#allocation2] sm:$0x1] %vm496_vm0, %v1217_v7  ;;  %vm550_vm1 = vcmask 261120   ;;  %vm1218_vm2 = vmmov 0  }
   0xe   : > { %s467_s26 = scalar_lea.vmem %s1397_s1, %s1098_s23  ;;  %1130 = vmatprep.subr.bf16.mxu1 %v1181_v1  ;;  %1122 = vmatprep.subr.bf16.mxu0 %v1217_v7  ;;  %s476_s13 = scalar_lea.vmem %s1398_s2, %s1099_s29  ;;  %v1109_v10 = vld [vmem:[%s1399_s3 + $0x8] sm:$0xff]   ;;  %v1102_v12 = vld [vmem:[%s1399_s3] sm:$0xff]   ;;  %vm874_vm3 = vcmask 1041408   ;;  %vm686_vm4 = vcmask 257024   ;;  %vm684_vm5 = vcmask 254976   ;;  %vm701_vm6 = vcmask 257026  }
   0xf   : > { %v508_v2 = vld [vmem:[%s467_s26 + $0x10] sm:$0xff]  ;;  %v506_v3 = vld [vmem:[%s467_s26] sm:$0xff]  ;;  %1131 = vmatpush3.bf16.msra.mxu1 %v1181_v1  ;;  %v509_v4 = vld [vmem:[%s467_s26 + $0x18] sm:$0xff]  ;;  %s1097_s14 = sshll.u32 %s1413_s17, 3  ;;  %1126 = vmatprep.mubr.msk.bf16.mxu0 %vm1218_vm2, %v1217_v7  ;;  %v1107_v14 = vunpack.c.l.bf16 %v1109_v10  ;;  %v1108_v15 = vunpack.c.h.bf16 %v1109_v10  ;;  %v1103_v16 = vunpack.c.l.bf16 %v1102_v12  ;;  %v1104_v17 = vunpack.c.h.bf16 %v1102_v12  ;;  %s1349_s22 = scalar_lea.vmem %s1406_s10, %s1099_s29 }
  0x10   : > { %522 = vperm.xlu0 %1179, %v508_v2   ;;  %512 = vperm.xlu1 %1180, %v506_v3   ;;  %v507_v5 = vld [vmem:[%s467_s26 + $0x8] sm:$0xff]  ;;  %v1183_v8 = vld [vmem:[%s476_s13] sm:$0xff]   ;;  %s461_s21 = scalar_lea.vmem %s1396_s0, %s1097_s14  ;;  %vm870_vm7 = vcmask 31744   ;;  %s490_s28 = scalar_lea.vmem %s1407_s11, %s1413_s17  ;;  %vm924_vm8 = vcmask 122880  }
  0x11   : > { %1132 = vmatprep.subr.bf16.mxu1 %v1182_v6  ;;  %v1184_v9 = vld [vmem:[%s476_s13 + $0x8] sm:$0xff]   ;;  %1134 = vmatprep.mubr.msk.bf16.mxu1 %vm550_vm1, %v1183_v8  ;;  %v1185_v26 = vld [vmem:[%s461_s21] sm:$0xff]  }
  0x12   : > { %v1186_v27 = vld [vmem:[%s1402_s6 + $0x8] sm:$0xff]   ;;  %v1187_v28 = vld [vmem:[%s1402_s6] sm:$0xff]  }
  0x13   : > { %1133 = vmatpush3.bf16.msra.mxu1 %v1182_v6  ;;  %v868_v29 = vld [vmem:[%s1404_s8] sm:$0x3] }
  0x14   : > { %527 = vperm.xlu0 %1179, %v509_v4   ;;  %517 = vperm.xlu1 %1180, %v507_v5   ;;  %v876_v30 = vsel %vm874_vm3, %v868_v29, 0  ;;  %v1081_v34 = vld [vmem:[%s1400_s4] ss:$0 sm:$0xff] }
  0x15   : > { %1146 = vmatprep.subr.bf16.mxu1 %v1217_v7 }
  0x16   : > { %1135 = vmatmul.mubr.msk.bf16.vlgmr.msra.gmra.mxu1 %vm550_vm1, %v1184_v9 }
  0x17   : > { %1148 = vmatprep.mubr.msk.bf16.mxu1 %vm1218_vm2, %v1217_v7  ;;  %1147 = vmatpush3.bf16.msra.mxu1 %v876_v30 }
  0x8b   : > { %v523_v11 = vpop.permute.xlu0 %522  ;;  %v513_v13 = vpop.permute.xlu1 %512 }
  0x8c   : > { %v532_v20 = vmul.f32 %v1107_v14, %v523_v11  ;;  %v530_v22 = vmul.f32 %v1103_v16, %v513_v13 }
  0x8f   : > { %v528_v18 = vpop.permute.xlu0 %527  ;;  %v518_v19 = vpop.permute.xlu1 %517 }
  0x90   : > { %v533_v21 = vmul.f32 %v1108_v15, %v528_v18  ;;  %v531_v23 = vmul.f32 %v1104_v17, %v518_v19 }
  0x92   : > { %v535_v24 = vpack.c.bf16 %v533_v21, %v532_v20  ;;  %v534_v25 = vpack.c.bf16 %v531_v23, %v530_v22 }
  0x94   : > { %1123 = vmatpush3.bf16.msra.mxu0 %v535_v24 }
  0x95   : > { %1124 = vmatprep.subr.bf16.mxu0 %v1217_v7 }
  0x98   : > { %1125 = vmatpush3.bf16.msra.mxu0 %v534_v25 }
  0x99   : > { %1138 = vmatprep.subr.bf16.mxu0 %v1217_v7 }
  0x9b   : > { %1127 = vmatmul.mubr.msk.bf16.vlgmr.msra.gmra.mxu0 %vm550_vm1, %v1185_v26 }
  0x9c   : > { %1142 = vmatprep.mubr.msk.bf16.mxu0 %vm1218_vm2, %v1217_v7  ;;  %1139 = vmatpush3.bf16.msra.mxu0 %v1186_v27 }
  0x9d   : > { %1140 = vmatprep.subr.bf16.mxu0 %v1217_v7 }
  0xa0   : > { %1141 = vmatpush3.bf16.msra.mxu0 %v1187_v28 }
  0xd6   : > { %v1136_v31 = vpop.f32.mrf.mxu1 }
  0xd8   : > { %v665_v32 = vpop.f32.mrf.mxu1 }
  0xda   : > { %v1137_v33 = vpop.f32.mrf.mxu1 }
  0xdc   : > { %v668_v36 = vpop.f32.mrf.mxu1 }
 0x15b   : > { %v588_v35 = vpop.f32.mrf.mxu0 }
 0x15c   : > { %v589_v37 = vadd.f32 %v1081_v34, %v588_v35 }
 0x15d   : > { %v1128_v38 = vpop.f32.mrf.mxu0 }
 0x15e   : > { %v681_v39 = vadd.f32 %v665_v32, %v589_v37  ;;  %v696_v40 = vrot.slane %v589_v37, 4  ;;  %v726_v41 = vadd.f32 %v668_v36, %v589_v37 }
 0x15f   : > { %v591_v42 = vpop.f32.mrf.mxu0 }
 0x160   : > { %v682_v43 = vmax.f32 %v681_v39, 0.0  ;;  %v698_v44 = vadd.f32 %v696_v40, %v665_v32  ;;  %v714_v45 = vadd.f32 %v696_v40, %v668_v36  ;;  %v727_v46 = vmax.f32 %v726_v41, 0.0  ;;  %v680_v32 = vld [vmem:[#allocation2] sm:$0x1] }
 0x161   : > { %v592_v47 = vadd.f32 %v1081_v34, %v591_v42  ;;  %v1129_v48 = vpop.f32.mrf.mxu0 }
 0x162   : > { %v683_v49 = vpack.c.bf16 %v682_v43, %v682_v43  ;;  %v687_v50 = vsel %vm686_vm4, %v682_v43, 0.0  ;;  %v699_v51 = vmax.f32 %v698_v44, 0.0  ;;  %v715_v52 = vmax.f32 %v714_v45, 0.0 }
 0x163   : > { %v688_v53 = vrot.slane %v687_v50, 4  ;;  %v728_v54 = vpack.c.bf16 %v727_v46, %v727_v46  ;;  %v731_v55 = vrot.slane %v727_v46, 4  ;;  %v741_v56 = vadd.f32 %v1136_v31, %v592_v47 }
 0x164   : > { %685 = vst.msk [vmem:[%s1349_s22] sm:$0x3] %vm684_vm5, %v683_v49  ;;  %v700_v57 = vpack.c.bf16 %v699_v51, %v699_v51  ;;  %v704_v58 = vrot.slane %v699_v51, 4  ;;  %v716_v59 = vpack.c.bf16 %v715_v52, %v715_v52  ;;  %v718_v60 = vsel %vm686_vm4, %v715_v52, 0.0 }
 0x165   : > { %v689_v61 = vadd.f32 %v688_v53, %v687_v50  ;;  %v719_v62 = vrot.slane %v718_v60, 4  ;;  %729 = vst.msk [vmem:[%s1349_s22 + $0x4] sm:$0xc] %vm701_vm6, %v728_v54  ;;  %v733_v63 = vsel %vm686_vm4, %v731_v55, 0.0  ;;  %v742_v0 = vmax.f32 %v741_v56, 0.0 }
 0x166   : > { %702 = vst.msk [vmem:[%s1349_s22] sm:$0xc] %vm701_vm6, %v700_v57  ;;  %v706_v1 = vsel %vm686_vm4, %v704_v58, 0.0  ;;  %v734_v2 = vrot.slane %v733_v63, 4  ;;  %v754_v3 = vrot.slane %v592_v47, 4  ;;  %v783_v4 = vadd.f32 %v1137_v33, %v592_v47 }
 0x167   : > { %717 = vst.msk [vmem:[%s1349_s22 + $0x4] sm:$0x3] %vm684_vm5, %v716_v59  ;;  %v690_v5 = vrot.slane %v689_v61, 2  ;;  %v707_v6 = vrot.slane %v706_v1, 4  ;;  %v720_v7 = vadd.f32 %v719_v62, %v718_v60  ;;  %v743_v8 = vpack.c.bf16 %v742_v0, %v742_v0 }
 0x168   : > { %v735_v9 = vadd.f32 %v734_v2, %v733_v63  ;;  %v745_v10 = vsel %vm686_vm4, %v742_v0, 0.0  ;;  %v756_v11 = vadd.f32 %v1136_v31, %v754_v3  ;;  %v771_v12 = vadd.f32 %v1137_v33, %v754_v3 }
 0x169   : > { %v691_v13 = vadd.f32 %v690_v5, %v689_v61  ;;  %v708_v14 = vadd.f32 %v707_v6, %v706_v1  ;;  %v721_v15 = vrot.slane %v720_v7, 2  ;;  %744 = vst.msk [vmem:[%s1349_s22 + $0x8] sm:$0x3] %vm684_vm5, %v743_v8  ;;  %v746_v16 = vrot.slane %v745_v10, 4 }
 0x16a   : > { %v736_v17 = vrot.slane %v735_v9, 2  ;;  %v757_v18 = vmax.f32 %v756_v11, 0.0  ;;  %v772_v19 = vmax.f32 %v771_v12, 0.0  ;;  %v784_v20 = vmax.f32 %v783_v4, 0.0  ;;  %v810_v12 = vld [vmem:[%s1403_s7] sm:$0x1] }
 0x16b   : > { %v692_v21 = vrot.slane %v691_v13, 1  ;;  %v709_v22 = vrot.slane %v708_v14, 2  ;;  %v722_v23 = vadd.f32 %v721_v15, %v720_v7  ;;  %v747_v24 = vadd.f32 %v746_v16, %v745_v10 }
 0x16c   : > { %v758_v25 = vpack.c.bf16 %v757_v18, %v757_v18  ;;  %v761_v26 = vrot.slane %v757_v18, 4  ;;  %v773_v27 = vpack.c.bf16 %v772_v19, %v772_v19  ;;  %v737_v30 = vadd.f32 %v736_v17, %v735_v9 }
 0x16d   : > { %v693_v28 = vadd.f32 %v692_v21, %v691_v13  ;;  %v710_v29 = vadd.f32 %v709_v22, %v708_v14  ;;  %v748_v31 = vrot.slane %v747_v24, 2  ;;  %v775_v34 = vsel %vm686_vm4, %v772_v19, 0.0 }
 0x16e   : > { %759 = vst.msk [vmem:[%s1349_s22 + $0x8] sm:$0xc] %vm701_vm6, %v758_v25  ;;  %v763_v33 = vsel %vm686_vm4, %v761_v26, 0.0  ;;  %v785_v35 = vpack.c.bf16 %v784_v20, %v784_v20  ;;  %v723_v37 = vrot.slane %v722_v23, 1  ;;  %v776_v40 = vrot.slane %v775_v34, 4 }
 0x16f   : > { %774 = vst.msk [vmem:[%s1349_s22 + $0xc] sm:$0x3] %vm684_vm5, %v773_v27  ;;  %v711_v36 = vrot.slane %v710_v29, 1  ;;  %v749_v38 = vadd.f32 %v748_v31, %v747_v24  ;;  %v764_v39 = vrot.slane %v763_v33, 4  ;;  %v788_v41 = vrot.slane %v784_v20, 4 }
 0x170   : > { %786 = vst.msk [vmem:[%s1349_s22 + $0xc] sm:$0xc] %vm701_vm6, %v785_v35  ;;  %v694_v42 = vadd.f32 %v693_v28, %v680_v32  ;;  %v738_v44 = vrot.slane %v737_v30, 1  ;;  %v777_v46 = vadd.f32 %v776_v40, %v775_v34  ;;  %v724_v49 = vadd.f32 %v723_v37, %v722_v23  ;;  %v869_v20 = vld [vmem:[%s1405_s9] sm:$0x1] }
 0x171   : > { %v712_v43 = vadd.f32 %v711_v36, %v710_v29  ;;  %v765_v45 = vadd.f32 %v764_v39, %v763_v33  ;;  %v790_v47 = vsel %vm686_vm4, %v788_v41, 0.0  ;;  %v750_v50 = vrot.slane %v749_v38, 1 }
 0x172   : > { %v791_v51 = vrot.slane %v790_v47, 4  ;;  %v778_v53 = vrot.slane %v777_v46, 2  ;;  %v739_v55 = vadd.f32 %v738_v44, %v737_v30 }
 0x173   : > { %v713_v48 = vadd.f32 %v712_v43, %v694_v42  ;;  %v766_v52 = vrot.slane %v765_v45, 2  ;;  %v751_v60 = vadd.f32 %v750_v50, %v749_v38 }
 0x174   : > { %v792_v56 = vadd.f32 %v791_v51, %v790_v47  ;;  %v779_v58 = vadd.f32 %v778_v53, %v777_v46 }
 0x175   : > { %v725_v54 = vadd.f32 %v724_v49, %v713_v48  ;;  %v767_v57 = vadd.f32 %v766_v52, %v765_v45 }
 0x176   : > { %v793_v61 = vrot.slane %v792_v56, 2  ;;  %v780_v63 = vrot.slane %v779_v58, 1 }
 0x177   : > { %v740_v59 = vadd.f32 %v739_v55, %v725_v54  ;;  %v768_v62 = vrot.slane %v767_v57, 1 }
 0x178   : > { %v794_v1 = vadd.f32 %v793_v61, %v792_v56  ;;  %v781_v5 = vadd.f32 %v780_v63, %v779_v58 }
 0x179   : > { %v752_v0 = vadd.f32 %v751_v60, %v740_v59  ;;  %v769_v2 = vadd.f32 %v768_v62, %v767_v57 }
 0x17a   : > { %v795_v3 = vrot.slane %v794_v1, 1 }
 0x17b   : > { %v770_v4 = vadd.f32 %v769_v2, %v752_v0 }
 0x17c   : > { %v796_v7 = vadd.f32 %v795_v3, %v794_v1 }
 0x17d   : > { %v782_v6 = vadd.f32 %v781_v5, %v770_v4 }
 0x17f   : > { %v797_v8 = vadd.f32 %v796_v7, %v782_v6 }
 0x181   : > { %799 = vst.msk [vmem:[#allocation2] sm:$0x1] %vm496_vm0, %v797_v8 }
 0x188   : > { %v803_v9 = vld [vmem:[#allocation2] sm:$0x1] }
 0x189   : > { %v804_v10 = vmul.f32 0.015625, %v803_v9 }
 0x18b   : > { %v805_v11 = vpack.c.bf16 %v804_v10, %v804_v10 }
 0x18d   : > { %1143 = vmatmul.mubr.msk.bf16.vlgmr.msra.gmra.mxu0 %vm550_vm1, %v805_v11 }
 0x24d   : > { %v860_v13 = vpop.f32.mrf.mxu0 }
 0x24e   : > { %v861_v14 = vadd.f32 %v860_v13, %v810_v12 }
 0x24f   : > { %v1144_v15 = vpop.f32.mrf.mxu0 }
 0x250   : > { %v866_v16 = vmax.f32 %v861_v14, 0.0 }
 0x251   : > { %v863_v17 = vpop.f32.mrf.mxu0 }
 0x252   : > { %v867_v18 = vpack.c.bf16 %v866_v16, %v866_v16 }
 0x253   : > { %v1145_v19 = vpop.f32.mrf.mxu0 }
 0x254   : > { %1149 = vmatmul.mubr.msk.bf16.vlgmr.msra.gmra.mxu1 %vm870_vm7, %v867_v18 }
 0x314   : > { %v912_v21 = vpop.f32.mrf.mxu1 }
 0x315   : > { %v913_v22 = vadd.f32 %v912_v21, %v869_v20 }
 0x316   : > { %v1150_v23 = vpop.f32.mrf.mxu1 }
 0x317   : > { %v1094_v24 = vmul.f32 -1.442695, %v913_v22 }
 0x318   : > { %v915_v25 = vpop.f32.mrf.mxu1 }
 0x319   : > { %1188 = vpow2.f32 %v1094_v24 }
 0x31a   : > { %v1151_v26 = vpop.f32.mrf.mxu1 }
 0x326   : > { %v1189_v27 = vpop.eup %1188 }
 0x327   : > { %v921_v28 = vadd.f32 1.0, %v1189_v27 }
 0x329   : > { %1190 = vrcp.f32 %v921_v28 }
 0x336   : > { %v1191_v29 = vpop.eup %1190 }
 0x337   : > { %925 = vst.msk [vmem:[%s490_s28] sm:$0x1] %vm924_vm8, %v1191_v29 }
 0x338 PF: > { %s22_s19 = sadd.s32 1, %s1214_s19   ;;  %s1408_s17 = smov %s1210_s18 }
 0x339   : > { %p19_p5 = scmp.ge.s32.totalorder %s22_s19, 4   ;;  %s1409_s18 = smov %s1411_s20 }
 0x33b   :  { %21 = sbr.rel (!%p19_p5) target bundleno = 2 (0x2), region = 116 }

</bundles_post_ra>
